<compile_context>
chip_gen: v5e
topology: v5e:2x2
jax: 0.10.0
libtpu: 0.0.40
codegen_flags: <defaults>
</compile_context>

<pallas_src>
import numpy as np

import jax
import jax.numpy as jnp
from jax.experimental import pallas as pl
from jax.experimental.pallas import tpu as pltpu


B_TILE = 8   # images processed per grid step (one full 8-sublane logits store)


# --------------------------------------------------------------------------
# Fused kernel: one grid step = B_TILE images end-to-end, entirely in VMEM.
# --------------------------------------------------------------------------

def _fused_cnn_kernel(
    xs_ref,                      # [B_TILE*28, 480] bf16  shifted conv1 LHS slab
    a1_ref, b1_ref,              # [480, 168] bf16, [1, 168] f32
    p1r_ref, p1c_ref,            # [2, 112, 224] bf16, [2, 168, 84] bf16
    a2_ref, b2_ref,              # [5, 84, 160] bf16, [1, 160] f32
    s2_ref,                      # [5, 80, 112] bf16   conv2 shifted-window selectors
    p2r_ref, p2c_ref,            # [2, 40, 80] bf16, [2, 160, 80] bf16
    w1_ref, fb1_ref,             # [5, 80, 128] bf16, [1, 128] f32
    w2_ref, fb2_ref,             # [128, 128] bf16, [1, 128] f32
    w3_ref, fb3_ref,             # [128, 128] bf16, [1, 128] f32
    o_ref,                       # [B_TILE, 128] f32
):
    bf16 = jnp.bfloat16

    def mm(a, b):
        return jnp.dot(a, b, preferred_element_type=jnp.float32)

    # ---- conv1 (5x5, 3->6) fused over the 5 row shifts: single K=480 matmul --
    h1 = jnp.maximum(mm(xs_ref[...], a1_ref[...]) + b1_ref[...], 0.0)   # [224,168] f32
    h1b = h1.astype(bf16)

    # ---- pool1 2x2: even/odd row selectors + max, then even/odd col ---------
    r1 = jnp.maximum(mm(p1r_ref[0], h1b), mm(p1r_ref[1], h1b))          # [112,168]
    r1b = r1.astype(bf16)
    p1 = jnp.maximum(mm(r1b, p1c_ref[0]), mm(r1b, p1c_ref[1]))          # [112, 84]
    p1b = p1.astype(bf16)

    # ---- conv2 (5x5, 6->16): 5 shifted-window selections + banded matmuls ---
    h2 = mm(mm(s2_ref[0], p1b).astype(bf16), a2_ref[0])                 # [80, 160]
    for i in range(1, 5):
        h2 = h2 + mm(mm(s2_ref[i], p1b).astype(bf16), a2_ref[i])
    h2 = jnp.maximum(h2 + b2_ref[...], 0.0)
    h2b = h2.astype(bf16)

    # ---- pool2 2x2 (row output is h-major: row = h*B_TILE + b) --------------
    r2 = jnp.maximum(mm(p2r_ref[0], h2b), mm(p2r_ref[1], h2b))          # [40, 160]
    r2b = r2.astype(bf16)
    p2 = jnp.maximum(mm(r2b, p2c_ref[0]), mm(r2b, p2c_ref[1]))          # [40, 80] f32

    # ---- fc1 / fc2 / fc3, batched over the whole tile ------------------------
    # rows h*8 .. h*8+7 of p2 are the 8 images' pooled row h (aligned slices).
    y = mm(p2[0:B_TILE, :].astype(bf16), w1_ref[0])                     # [8, 128]
    for h in range(1, 5):
        y = y + mm(p2[h * B_TILE:(h + 1) * B_TILE, :].astype(bf16), w1_ref[h])
    y = jnp.maximum(y + fb1_ref[...], 0.0)
    y = jnp.maximum(mm(y.astype(bf16), w2_ref[...]) + fb2_ref[...], 0.0)
    o_ref[...] = (mm(y.astype(bf16), w3_ref[...]) + fb3_ref[...]).astype(o_ref.dtype)


# --------------------------------------------------------------------------
# Host-side (one-time) construction of the VMEM-resident constant matrices.
# --------------------------------------------------------------------------

_CONST_NAMES = (
    "a1f", "b1row", "p1row", "p1col",
    "a2", "b2row", "s2", "p2row", "p2col",
    "w1p", "fb1", "w2p", "fb2", "w3p", "fb3",
)


def _banded_conv(w, w_in, ow):
    """w: [OC, IC, KH, KW] -> A: [KH, IC*w_in, OC*ow] with
    A[i, ic*w_in+iw, oc*ow+o] = w[oc, ic, i, iw-o] for 0 <= iw-o < KW else 0."""
    oc_n, ic_n, kh, kw = w.shape
    iw = np.arange(w_in)[:, None]
    o = np.arange(ow)[None, :]
    j = iw - o
    valid = (j >= 0) & (j < kw)
    jc = np.clip(j, 0, kw - 1)
    A = np.zeros((kh, ic_n * w_in, oc_n * ow), np.float32)
    for i in range(kh):
        Wi = w[:, :, i, :]                                  # [OC, IC, KW]
        T = Wi[:, :, jc] * valid                            # [OC, IC, w_in, ow]
        A[i] = T.transpose(1, 2, 0, 3).reshape(ic_n * w_in, oc_n * ow)
    return A


def _even_odd_select(n):
    m = n // 2
    even = np.zeros((n, m), np.float32)
    odd = np.zeros((n, m), np.float32)
    even[2 * np.arange(m), np.arange(m)] = 1.0
    odd[2 * np.arange(m) + 1, np.arange(m)] = 1.0
    return even, odd


def pack_params(params, n_classes=10):
    """Build the kernel's resident constants from PyTorch-layout parameters."""
    p = {k: np.asarray(v, np.float32) for k, v in params.items()}

    # conv1: fused-K banded matrix (shift-major rows: row = i*96 + c*32 + w).
    a1f = _banded_conv(p["conv1_w"], w_in=32, ow=28).reshape(5 * 96, 6 * 28)
    b1row = np.repeat(p["conv1_b"], 28)[None, :]            # [1, 168]

    # conv2: banded per shift. [5, 84, 160]
    a2 = _banded_conv(p["conv2_w"], w_in=14, ow=10)
    b2row = np.repeat(p["conv2_b"], 10)[None, :]             # [1, 160]

    e28, o28 = _even_odd_select(28)                          # [28, 14]
    e10, o10 = _even_odd_select(10)                          # [10, 5]
    eye6 = np.eye(6, dtype=np.float32)
    eye16 = np.eye(16, dtype=np.float32)
    eyeB = np.eye(B_TILE, dtype=np.float32)

    # pool1 row selectors over the whole tile: [2, 14*B, 28*B].
    p1row = np.stack([np.kron(eyeB, e28.T), np.kron(eyeB, o28.T)])
    # pool1 col selectors (per channel, image independent): [2, 168, 84].
    p1col = np.stack([np.kron(eye6, e28), np.kron(eye6, o28)])

    # conv2 shifted-window row selectors: s2[i, b*10+r, b*14+r+i] = 1.
    s2 = np.zeros((5, B_TILE * 10, B_TILE * 14), np.float32)
    for i in range(5):
        for b in range(B_TILE):
            for r in range(10):
                s2[i, b * 10 + r, b * 14 + r + i] = 1.0

    # pool2 row selectors, h-major output rows (row = h*B + b): [2, 40, 80].
    p2row = np.zeros((2, 5 * B_TILE, B_TILE * 10), np.float32)
    for j in range(5):
        for b in range(B_TILE):
            p2row[0, j * B_TILE + b, b * 10 + 2 * j] = 1.0
            p2row[1, j * B_TILE + b, b * 10 + 2 * j + 1] = 1.0
    # pool2 col selectors: [2, 160, 80].
    p2col = np.stack([np.kron(eye16, e10), np.kron(eye16, o10)])

    # fc1: fold the PyTorch NCHW flatten (c*25 + h*5 + w) into the weight.
    w1p = p["fc1_w"].T.reshape(16, 5, 5, 120)                # [c, h, w, n]
    w1p = w1p.transpose(1, 0, 2, 3).reshape(5, 80, 120)      # [h, c*5+w, n]
    w1p = np.pad(w1p, ((0, 0), (0, 0), (0, 8)))              # [5, 80, 128]
    fb1 = np.pad(p["fc1_b"], (0, 8))[None, :]                # [1, 128]
    w2p = np.pad(p["fc2_w"].T, ((0, 8), (0, 44)))            # [128, 128]
    fb2 = np.pad(p["fc2_b"], (0, 44))[None, :]               # [1, 128]
    w3p = np.pad(p["fc3_w"].T, ((0, 44), (0, 128 - n_classes)))
    fb3 = np.pad(p["fc3_b"], (0, 128 - n_classes))[None, :]

    bf, f32 = jnp.bfloat16, jnp.float32
    return {
        "a1f": jnp.asarray(a1f, bf), "b1row": jnp.asarray(b1row, f32),
        "p1row": jnp.asarray(p1row, bf), "p1col": jnp.asarray(p1col, bf),
        "a2": jnp.asarray(a2, bf), "b2row": jnp.asarray(b2row, f32),
        "s2": jnp.asarray(s2, bf),
        "p2row": jnp.asarray(p2row, bf), "p2col": jnp.asarray(p2col, bf),
        "w1p": jnp.asarray(w1p, bf), "fb1": jnp.asarray(fb1, f32),
        "w2p": jnp.asarray(w2p, bf), "fb2": jnp.asarray(fb2, f32),
        "w3p": jnp.asarray(w3p, bf), "fb3": jnp.asarray(fb3, f32),
    }


def _resident_spec(arr):
    idx = (0,) * arr.ndim
    return pl.BlockSpec(arr.shape, lambda t, _idx=idx: _idx)


# --------------------------------------------------------------------------
# Forward wrapper.
# --------------------------------------------------------------------------

def cnn_cifar_forward(packed, x_nchw, n_classes=10):
    """x_nchw: [B, 3, 32, 32] float32 (same as the PyTorch module)."""
    B = x_nchw.shape[0]
    B_pad = ((B + B_TILE - 1) // B_TILE) * B_TILE
    if B_pad != B:
        x_nchw = jnp.pad(x_nchw, ((0, B_pad - B), (0, 0), (0, 0), (0, 0)))

    # Channel-major 2-D slab per image: x2d[b, h, c*32 + w] = x[b, c, h, w].
    x2d = jnp.transpose(x_nchw, (0, 2, 1, 3)).reshape(B_pad, 32, 96)
    # Shifted conv1 LHS (im2col over the 5 kernel rows only), built with plain
    # XLA slicing/concat so the kernel needs no reshapes/concats:
    # xs[b*28 + r, i*96 + c*32 + w] = x[b, c, r + i, w].
    xs = jnp.concatenate([x2d[:, i:i + 28, :] for i in range(5)], axis=2)
    xs = xs.reshape(B_pad * 28, 5 * 96).astype(jnp.bfloat16)

    consts = [packed[name] for name in _CONST_NAMES]

    in_specs = [pl.BlockSpec((B_TILE * 28, 5 * 96), lambda t: (t, 0))]
    in_specs += [_resident_spec(c) for c in consts]

    out = pl.pallas_call(
        _fused_cnn_kernel,
        grid=(B_pad // B_TILE,),
        in_specs=in_specs,
        out_specs=pl.BlockSpec((B_TILE, 128), lambda t: (t, 0)),
        out_shape=jax.ShapeDtypeStruct((B_pad, 128), jnp.float32),
        compiler_params=pltpu.CompilerParams(
            dimension_semantics=("parallel",),
        ),
    )(xs, *consts)

    return out[:B, :n_classes]


# --------------------------------------------------------------------------
# Parameters (PyTorch layouts) and a plain-JAX reference for validation.
# --------------------------------------------------------------------------

def init_params(key, n_classes=10):
    """Deterministic synthetic init (PyTorch-style U(-1/sqrt(fan_in), +))."""
    ks = jax.random.split(key, 10)

    def u(k, shape, fan_in):
        bound = float(1.0 / np.sqrt(fan_in))
        return jax.random.uniform(k, shape, jnp.float32, -bound, bound)

    return {
        "conv1_w": u(ks[0], (6, 3, 5, 5), 3 * 25),
        "conv1_b": u(ks[1], (6,), 3 * 25),
        "conv2_w": u(ks[2], (16, 6, 5, 5), 6 * 25),
        "conv2_b": u(ks[3], (16,), 6 * 25),
        "fc1_w": u(ks[4], (120, 400), 400),
        "fc1_b": u(ks[5], (120,), 400),
        "fc2_w": u(ks[6], (84, 120), 120),
        "fc2_b": u(ks[7], (84,), 120),
        "fc3_w": u(ks[8], (n_classes, 84), 84),
        "fc3_b": u(ks[9], (n_classes,), 84),
    }


def _reference_forward(params, x):
    dn = ("NCHW", "OIHW", "NCHW")
    hp = jax.lax.Precision.HIGHEST
    h = jax.lax.conv_general_dilated(x, params["conv1_w"], (1, 1), "VALID",
                                     dimension_numbers=dn, precision=hp)
    h = jnp.maximum(h + params["conv1_b"][None, :, None, None], 0.0)
    h = jax.lax.reduce_window(h, -jnp.inf, jax.lax.max,
                              (1, 1, 2, 2), (1, 1, 2, 2), "VALID")
    h = jax.lax.conv_general_dilated(h, params["conv2_w"], (1, 1), "VALID",
                                     dimension_numbers=dn, precision=hp)
    h = jnp.maximum(h + params["conv2_b"][None, :, None, None], 0.0)
    h = jax.lax.reduce_window(h, -jnp.inf, jax.lax.max,
                              (1, 1, 2, 2), (1, 1, 2, 2), "VALID")
    f = h.reshape(x.shape[0], -1)
    f = jnp.maximum(jnp.dot(f, params["fc1_w"].T, precision=hp) + params["fc1_b"], 0.0)
    f = jnp.maximum(jnp.dot(f, params["fc2_w"].T, precision=hp) + params["fc2_b"], 0.0)
    return jnp.dot(f, params["fc3_w"].T, precision=hp) + params["fc3_b"]


if __name__ == "__main__":
    key = jax.random.PRNGKey(0)
    k_param, k_x = jax.random.split(key)

    n_classes = 10
    params = init_params(k_param, n_classes=n_classes)
    packed = pack_params(params, n_classes=n_classes)

    # CIFAR-shaped input (32x32 is required by the 16*5*5 flatten).
    # B=10 exercises both the batch-tile padding path and a multi-step grid.
    B = 10
    x = jax.random.normal(k_x, (B, 3, 32, 32), jnp.float32)

    out = jax.jit(cnn_cifar_forward)(packed, x)
    out = jax.block_until_ready(out)

    assert out.shape == (B, n_classes), out.shape
    assert bool(jnp.all(jnp.isfinite(out)))

    # Sanity-check against a plain-JAX f32 reference of the PyTorch module
    # (kernel matmuls run with bf16 operands, f32 accumulation).
    ref = _reference_forward(params, x)
    np.testing.assert_allclose(np.asarray(out), np.asarray(ref),
                               rtol=5e-2, atol=5e-2)

    print("KERNEL_OK")
</pallas_src>

<mosaic_0001>
module attributes {stable_mosaic.version = 11 : i64} {
  func.func @_fused_cnn_kernel(%arg0: i32, %arg1: memref<224x480xbf16, #tpu.memory_space<vmem>>, %arg2: memref<480x168xbf16, #tpu.memory_space<vmem>>, %arg3: memref<1x168xf32, #tpu.memory_space<vmem>>, %arg4: memref<2x112x224xbf16, #tpu.memory_space<vmem>>, %arg5: memref<2x168x84xbf16, #tpu.memory_space<vmem>>, %arg6: memref<5x84x160xbf16, #tpu.memory_space<vmem>>, %arg7: memref<1x160xf32, #tpu.memory_space<vmem>>, %arg8: memref<5x80x112xbf16, #tpu.memory_space<vmem>>, %arg9: memref<2x40x80xbf16, #tpu.memory_space<vmem>>, %arg10: memref<2x160x80xbf16, #tpu.memory_space<vmem>>, %arg11: memref<5x80x128xbf16, #tpu.memory_space<vmem>>, %arg12: memref<1x128xf32, #tpu.memory_space<vmem>>, %arg13: memref<128x128xbf16, #tpu.memory_space<vmem>>, %arg14: memref<1x128xf32, #tpu.memory_space<vmem>>, %arg15: memref<128x128xbf16, #tpu.memory_space<vmem>>, %arg16: memref<1x128xf32, #tpu.memory_space<vmem>>, %arg17: memref<8x128xf32, #tpu.memory_space<vmem>>) attributes {dimension_semantics = [#tpu.dimension_semantics<parallel>], iteration_bounds = array<i64: 2>, scalar_prefetch = 0 : i64, scratch_operands = 0 : i64, tpu.core_type = #tpu.core_type<tc>, window_params = [{transform_indices = @transform_0, window_bounds = array<i64: 224, 480>}, {pipeline_mode = #tpu.pipeline_mode<synchronous>, transform_indices = @transform_1, window_bounds = array<i64: 480, 168>}, {pipeline_mode = #tpu.pipeline_mode<synchronous>, transform_indices = @transform_2, window_bounds = array<i64: 1, 168>}, {pipeline_mode = #tpu.pipeline_mode<synchronous>, transform_indices = @transform_3, window_bounds = array<i64: 2, 112, 224>}, {pipeline_mode = #tpu.pipeline_mode<synchronous>, transform_indices = @transform_4, window_bounds = array<i64: 2, 168, 84>}, {pipeline_mode = #tpu.pipeline_mode<synchronous>, transform_indices = @transform_5, window_bounds = array<i64: 5, 84, 160>}, {pipeline_mode = #tpu.pipeline_mode<synchronous>, transform_indices = @transform_6, window_bounds = array<i64: 1, 160>}, {pipeline_mode = #tpu.pipeline_mode<synchronous>, transform_indices = @transform_7, window_bounds = array<i64: 5, 80, 112>}, {pipeline_mode = #tpu.pipeline_mode<synchronous>, transform_indices = @transform_8, window_bounds = array<i64: 2, 40, 80>}, {pipeline_mode = #tpu.pipeline_mode<synchronous>, transform_indices = @transform_9, window_bounds = array<i64: 2, 160, 80>}, {pipeline_mode = #tpu.pipeline_mode<synchronous>, transform_indices = @transform_10, window_bounds = array<i64: 5, 80, 128>}, {pipeline_mode = #tpu.pipeline_mode<synchronous>, transform_indices = @transform_11, window_bounds = array<i64: 1, 128>}, {pipeline_mode = #tpu.pipeline_mode<synchronous>, transform_indices = @transform_12, window_bounds = array<i64: 128, 128>}, {pipeline_mode = #tpu.pipeline_mode<synchronous>, transform_indices = @transform_13, window_bounds = array<i64: 1, 128>}, {pipeline_mode = #tpu.pipeline_mode<synchronous>, transform_indices = @transform_14, window_bounds = array<i64: 128, 128>}, {pipeline_mode = #tpu.pipeline_mode<synchronous>, transform_indices = @transform_15, window_bounds = array<i64: 1, 128>}, {transform_indices = @transform_16, window_bounds = array<i64: 8, 128>}]} {
    %c0 = arith.constant 0 : index
    %c0_0 = arith.constant 0 : index
    %0 = vector.load %arg1[%c0, %c0_0] : memref<224x480xbf16, #tpu.memory_space<vmem>>, vector<224x480xbf16>
    %c0_1 = arith.constant 0 : index
    %c0_2 = arith.constant 0 : index
    %1 = vector.load %arg2[%c0_1, %c0_2] : memref<480x168xbf16, #tpu.memory_space<vmem>>, vector<480x168xbf16>
    %cst = arith.constant dense<0.000000e+00> : vector<224x168xf32>
    %2 = tpu.matmul %0, %1, %cst {dimension_numbers = #tpu.dot_dimension_numbers<[1], [0], [0], [1], [0, 0, 1, 1], [], []>} : vector<224x480xbf16>, vector<480x168xbf16>, vector<224x168xf32> -> vector<224x168xf32>
    %c0_3 = arith.constant 0 : index
    %c0_4 = arith.constant 0 : index
    %3 = vector.load %arg3[%c0_3, %c0_4] : memref<1x168xf32, #tpu.memory_space<vmem>>, vector<1x168xf32>
    %4 = vector.broadcast %3 : vector<1x168xf32> to vector<224x168xf32>
    %5 = arith.addf %2, %4 : vector<224x168xf32>
    %cst_5 = arith.constant 0.000000e+00 : f32
    %6 = vector.broadcast %cst_5 : f32 to vector<224x168xf32>
    %7 = arith.maximumf %5, %6 : vector<224x168xf32>
    %8 = arith.truncf %7 : vector<224x168xf32> to vector<224x168xbf16>
    %c0_6 = arith.constant 0 : index
    %c0_7 = arith.constant 0 : index
    %c0_8 = arith.constant 0 : index
    %9 = vector.load %arg4[%c0_6, %c0_7, %c0_8] : memref<2x112x224xbf16, #tpu.memory_space<vmem>>, vector<1x112x224xbf16>
    %10 = vector.shape_cast %9 : vector<1x112x224xbf16> to vector<112x224xbf16>
    %cst_9 = arith.constant dense<0.000000e+00> : vector<112x168xf32>
    %11 = tpu.matmul %10, %8, %cst_9 {dimension_numbers = #tpu.dot_dimension_numbers<[1], [0], [0], [1], [0, 0, 1, 1], [], []>} : vector<112x224xbf16>, vector<224x168xbf16>, vector<112x168xf32> -> vector<112x168xf32>
    %c1 = arith.constant 1 : index
    %c0_10 = arith.constant 0 : index
    %c0_11 = arith.constant 0 : index
    %12 = vector.load %arg4[%c1, %c0_10, %c0_11] : memref<2x112x224xbf16, #tpu.memory_space<vmem>>, vector<1x112x224xbf16>
    %13 = vector.shape_cast %12 : vector<1x112x224xbf16> to vector<112x224xbf16>
    %cst_12 = arith.constant dense<0.000000e+00> : vector<112x168xf32>
    %14 = tpu.matmul %13, %8, %cst_12 {dimension_numbers = #tpu.dot_dimension_numbers<[1], [0], [0], [1], [0, 0, 1, 1], [], []>} : vector<112x224xbf16>, vector<224x168xbf16>, vector<112x168xf32> -> vector<112x168xf32>
    %15 = arith.maximumf %11, %14 : vector<112x168xf32>
    %16 = arith.truncf %15 : vector<112x168xf32> to vector<112x168xbf16>
    %c0_13 = arith.constant 0 : index
    %c0_14 = arith.constant 0 : index
    %c0_15 = arith.constant 0 : index
    %17 = vector.load %arg5[%c0_13, %c0_14, %c0_15] : memref<2x168x84xbf16, #tpu.memory_space<vmem>>, vector<1x168x84xbf16>
    %18 = vector.shape_cast %17 : vector<1x168x84xbf16> to vector<168x84xbf16>
    %cst_16 = arith.constant dense<0.000000e+00> : vector<112x84xf32>
    %19 = tpu.matmul %16, %18, %cst_16 {dimension_numbers = #tpu.dot_dimension_numbers<[1], [0], [0], [1], [0, 0, 1, 1], [], []>} : vector<112x168xbf16>, vector<168x84xbf16>, vector<112x84xf32> -> vector<112x84xf32>
    %c1_17 = arith.constant 1 : index
    %c0_18 = arith.constant 0 : index
    %c0_19 = arith.constant 0 : index
    %20 = vector.load %arg5[%c1_17, %c0_18, %c0_19] : memref<2x168x84xbf16, #tpu.memory_space<vmem>>, vector<1x168x84xbf16>
    %21 = vector.shape_cast %20 : vector<1x168x84xbf16> to vector<168x84xbf16>
    %cst_20 = arith.constant dense<0.000000e+00> : vector<112x84xf32>
    %22 = tpu.matmul %16, %21, %cst_20 {dimension_numbers = #tpu.dot_dimension_numbers<[1], [0], [0], [1], [0, 0, 1, 1], [], []>} : vector<112x168xbf16>, vector<168x84xbf16>, vector<112x84xf32> -> vector<112x84xf32>
    %23 = arith.maximumf %19, %22 : vector<112x84xf32>
    %24 = arith.truncf %23 : vector<112x84xf32> to vector<112x84xbf16>
    %c0_21 = arith.constant 0 : index
    %c0_22 = arith.constant 0 : index
    %c0_23 = arith.constant 0 : index
    %25 = vector.load %arg8[%c0_21, %c0_22, %c0_23] : memref<5x80x112xbf16, #tpu.memory_space<vmem>>, vector<1x80x112xbf16>
    %26 = vector.shape_cast %25 : vector<1x80x112xbf16> to vector<80x112xbf16>
    %cst_24 = arith.constant dense<0.000000e+00> : vector<80x84xf32>
    %27 = tpu.matmul %26, %24, %cst_24 {dimension_numbers = #tpu.dot_dimension_numbers<[1], [0], [0], [1], [0, 0, 1, 1], [], []>} : vector<80x112xbf16>, vector<112x84xbf16>, vector<80x84xf32> -> vector<80x84xf32>
    %28 = arith.truncf %27 : vector<80x84xf32> to vector<80x84xbf16>
    %c0_25 = arith.constant 0 : index
    %c0_26 = arith.constant 0 : index
    %c0_27 = arith.constant 0 : index
    %29 = vector.load %arg6[%c0_25, %c0_26, %c0_27] : memref<5x84x160xbf16, #tpu.memory_space<vmem>>, vector<1x84x160xbf16>
    %30 = vector.shape_cast %29 : vector<1x84x160xbf16> to vector<84x160xbf16>
    %cst_28 = arith.constant dense<0.000000e+00> : vector<80x160xf32>
    %31 = tpu.matmul %28, %30, %cst_28 {dimension_numbers = #tpu.dot_dimension_numbers<[1], [0], [0], [1], [0, 0, 1, 1], [], []>} : vector<80x84xbf16>, vector<84x160xbf16>, vector<80x160xf32> -> vector<80x160xf32>
    %c1_29 = arith.constant 1 : index
    %c0_30 = arith.constant 0 : index
    %c0_31 = arith.constant 0 : index
    %32 = vector.load %arg8[%c1_29, %c0_30, %c0_31] : memref<5x80x112xbf16, #tpu.memory_space<vmem>>, vector<1x80x112xbf16>
    %33 = vector.shape_cast %32 : vector<1x80x112xbf16> to vector<80x112xbf16>
    %cst_32 = arith.constant dense<0.000000e+00> : vector<80x84xf32>
    %34 = tpu.matmul %33, %24, %cst_32 {dimension_numbers = #tpu.dot_dimension_numbers<[1], [0], [0], [1], [0, 0, 1, 1], [], []>} : vector<80x112xbf16>, vector<112x84xbf16>, vector<80x84xf32> -> vector<80x84xf32>
    %35 = arith.truncf %34 : vector<80x84xf32> to vector<80x84xbf16>
    %c1_33 = arith.constant 1 : index
    %c0_34 = arith.constant 0 : index
    %c0_35 = arith.constant 0 : index
    %36 = vector.load %arg6[%c1_33, %c0_34, %c0_35] : memref<5x84x160xbf16, #tpu.memory_space<vmem>>, vector<1x84x160xbf16>
    %37 = vector.shape_cast %36 : vector<1x84x160xbf16> to vector<84x160xbf16>
    %cst_36 = arith.constant dense<0.000000e+00> : vector<80x160xf32>
    %38 = tpu.matmul %35, %37, %cst_36 {dimension_numbers = #tpu.dot_dimension_numbers<[1], [0], [0], [1], [0, 0, 1, 1], [], []>} : vector<80x84xbf16>, vector<84x160xbf16>, vector<80x160xf32> -> vector<80x160xf32>
    %39 = arith.addf %31, %38 : vector<80x160xf32>
    %c2 = arith.constant 2 : index
    %c0_37 = arith.constant 0 : index
    %c0_38 = arith.constant 0 : index
    %40 = vector.load %arg8[%c2, %c0_37, %c0_38] : memref<5x80x112xbf16, #tpu.memory_space<vmem>>, vector<1x80x112xbf16>
    %41 = vector.shape_cast %40 : vector<1x80x112xbf16> to vector<80x112xbf16>
    %cst_39 = arith.constant dense<0.000000e+00> : vector<80x84xf32>
    %42 = tpu.matmul %41, %24, %cst_39 {dimension_numbers = #tpu.dot_dimension_numbers<[1], [0], [0], [1], [0, 0, 1, 1], [], []>} : vector<80x112xbf16>, vector<112x84xbf16>, vector<80x84xf32> -> vector<80x84xf32>
    %43 = arith.truncf %42 : vector<80x84xf32> to vector<80x84xbf16>
    %c2_40 = arith.constant 2 : index
    %c0_41 = arith.constant 0 : index
    %c0_42 = arith.constant 0 : index
    %44 = vector.load %arg6[%c2_40, %c0_41, %c0_42] : memref<5x84x160xbf16, #tpu.memory_space<vmem>>, vector<1x84x160xbf16>
    %45 = vector.shape_cast %44 : vector<1x84x160xbf16> to vector<84x160xbf16>
    %cst_43 = arith.constant dense<0.000000e+00> : vector<80x160xf32>
    %46 = tpu.matmul %43, %45, %cst_43 {dimension_numbers = #tpu.dot_dimension_numbers<[1], [0], [0], [1], [0, 0, 1, 1], [], []>} : vector<80x84xbf16>, vector<84x160xbf16>, vector<80x160xf32> -> vector<80x160xf32>
    %47 = arith.addf %39, %46 : vector<80x160xf32>
    %c3 = arith.constant 3 : index
    %c0_44 = arith.constant 0 : index
    %c0_45 = arith.constant 0 : index
    %48 = vector.load %arg8[%c3, %c0_44, %c0_45] : memref<5x80x112xbf16, #tpu.memory_space<vmem>>, vector<1x80x112xbf16>
    %49 = vector.shape_cast %48 : vector<1x80x112xbf16> to vector<80x112xbf16>
    %cst_46 = arith.constant dense<0.000000e+00> : vector<80x84xf32>
    %50 = tpu.matmul %49, %24, %cst_46 {dimension_numbers = #tpu.dot_dimension_numbers<[1], [0], [0], [1], [0, 0, 1, 1], [], []>} : vector<80x112xbf16>, vector<112x84xbf16>, vector<80x84xf32> -> vector<80x84xf32>
    %51 = arith.truncf %50 : vector<80x84xf32> to vector<80x84xbf16>
    %c3_47 = arith.constant 3 : index
    %c0_48 = arith.constant 0 : index
    %c0_49 = arith.constant 0 : index
    %52 = vector.load %arg6[%c3_47, %c0_48, %c0_49] : memref<5x84x160xbf16, #tpu.memory_space<vmem>>, vector<1x84x160xbf16>
    %53 = vector.shape_cast %52 : vector<1x84x160xbf16> to vector<84x160xbf16>
    %cst_50 = arith.constant dense<0.000000e+00> : vector<80x160xf32>
    %54 = tpu.matmul %51, %53, %cst_50 {dimension_numbers = #tpu.dot_dimension_numbers<[1], [0], [0], [1], [0, 0, 1, 1], [], []>} : vector<80x84xbf16>, vector<84x160xbf16>, vector<80x160xf32> -> vector<80x160xf32>
    %55 = arith.addf %47, %54 : vector<80x160xf32>
    %c4 = arith.constant 4 : index
    %c0_51 = arith.constant 0 : index
    %c0_52 = arith.constant 0 : index
    %56 = vector.load %arg8[%c4, %c0_51, %c0_52] : memref<5x80x112xbf16, #tpu.memory_space<vmem>>, vector<1x80x112xbf16>
    %57 = vector.shape_cast %56 : vector<1x80x112xbf16> to vector<80x112xbf16>
    %cst_53 = arith.constant dense<0.000000e+00> : vector<80x84xf32>
    %58 = tpu.matmul %57, %24, %cst_53 {dimension_numbers = #tpu.dot_dimension_numbers<[1], [0], [0], [1], [0, 0, 1, 1], [], []>} : vector<80x112xbf16>, vector<112x84xbf16>, vector<80x84xf32> -> vector<80x84xf32>
    %59 = arith.truncf %58 : vector<80x84xf32> to vector<80x84xbf16>
    %c4_54 = arith.constant 4 : index
    %c0_55 = arith.constant 0 : index
    %c0_56 = arith.constant 0 : index
    %60 = vector.load %arg6[%c4_54, %c0_55, %c0_56] : memref<5x84x160xbf16, #tpu.memory_space<vmem>>, vector<1x84x160xbf16>
    %61 = vector.shape_cast %60 : vector<1x84x160xbf16> to vector<84x160xbf16>
    %cst_57 = arith.constant dense<0.000000e+00> : vector<80x160xf32>
    %62 = tpu.matmul %59, %61, %cst_57 {dimension_numbers = #tpu.dot_dimension_numbers<[1], [0], [0], [1], [0, 0, 1, 1], [], []>} : vector<80x84xbf16>, vector<84x160xbf16>, vector<80x160xf32> -> vector<80x160xf32>
    %63 = arith.addf %55, %62 : vector<80x160xf32>
    %c0_58 = arith.constant 0 : index
    %c0_59 = arith.constant 0 : index
    %64 = vector.load %arg7[%c0_58, %c0_59] : memref<1x160xf32, #tpu.memory_space<vmem>>, vector<1x160xf32>
    %65 = vector.broadcast %64 : vector<1x160xf32> to vector<80x160xf32>
    %66 = arith.addf %63, %65 : vector<80x160xf32>
    %cst_60 = arith.constant 0.000000e+00 : f32
    %67 = vector.broadcast %cst_60 : f32 to vector<80x160xf32>
    %68 = arith.maximumf %66, %67 : vector<80x160xf32>
    %69 = arith.truncf %68 : vector<80x160xf32> to vector<80x160xbf16>
    %c0_61 = arith.constant 0 : index
    %c0_62 = arith.constant 0 : index
    %c0_63 = arith.constant 0 : index
    %70 = vector.load %arg9[%c0_61, %c0_62, %c0_63] : memref<2x40x80xbf16, #tpu.memory_space<vmem>>, vector<1x40x80xbf16>
    %71 = vector.shape_cast %70 : vector<1x40x80xbf16> to vector<40x80xbf16>
    %cst_64 = arith.constant dense<0.000000e+00> : vector<40x160xf32>
    %72 = tpu.matmul %71, %69, %cst_64 {dimension_numbers = #tpu.dot_dimension_numbers<[1], [0], [0], [1], [0, 0, 1, 1], [], []>} : vector<40x80xbf16>, vector<80x160xbf16>, vector<40x160xf32> -> vector<40x160xf32>
    %c1_65 = arith.constant 1 : index
    %c0_66 = arith.constant 0 : index
    %c0_67 = arith.constant 0 : index
    %73 = vector.load %arg9[%c1_65, %c0_66, %c0_67] : memref<2x40x80xbf16, #tpu.memory_space<vmem>>, vector<1x40x80xbf16>
    %74 = vector.shape_cast %73 : vector<1x40x80xbf16> to vector<40x80xbf16>
    %cst_68 = arith.constant dense<0.000000e+00> : vector<40x160xf32>
    %75 = tpu.matmul %74, %69, %cst_68 {dimension_numbers = #tpu.dot_dimension_numbers<[1], [0], [0], [1], [0, 0, 1, 1], [], []>} : vector<40x80xbf16>, vector<80x160xbf16>, vector<40x160xf32> -> vector<40x160xf32>
    %76 = arith.maximumf %72, %75 : vector<40x160xf32>
    %77 = arith.truncf %76 : vector<40x160xf32> to vector<40x160xbf16>
    %c0_69 = arith.constant 0 : index
    %c0_70 = arith.constant 0 : index
    %c0_71 = arith.constant 0 : index
    %78 = vector.load %arg10[%c0_69, %c0_70, %c0_71] : memref<2x160x80xbf16, #tpu.memory_space<vmem>>, vector<1x160x80xbf16>
    %79 = vector.shape_cast %78 : vector<1x160x80xbf16> to vector<160x80xbf16>
    %cst_72 = arith.constant dense<0.000000e+00> : vector<40x80xf32>
    %80 = tpu.matmul %77, %79, %cst_72 {dimension_numbers = #tpu.dot_dimension_numbers<[1], [0], [0], [1], [0, 0, 1, 1], [], []>} : vector<40x160xbf16>, vector<160x80xbf16>, vector<40x80xf32> -> vector<40x80xf32>
    %c1_73 = arith.constant 1 : index
    %c0_74 = arith.constant 0 : index
    %c0_75 = arith.constant 0 : index
    %81 = vector.load %arg10[%c1_73, %c0_74, %c0_75] : memref<2x160x80xbf16, #tpu.memory_space<vmem>>, vector<1x160x80xbf16>
    %82 = vector.shape_cast %81 : vector<1x160x80xbf16> to vector<160x80xbf16>
    %cst_76 = arith.constant dense<0.000000e+00> : vector<40x80xf32>
    %83 = tpu.matmul %77, %82, %cst_76 {dimension_numbers = #tpu.dot_dimension_numbers<[1], [0], [0], [1], [0, 0, 1, 1], [], []>} : vector<40x160xbf16>, vector<160x80xbf16>, vector<40x80xf32> -> vector<40x80xf32>
    %84 = arith.maximumf %80, %83 : vector<40x80xf32>
    %85 = vector.extract_strided_slice %84 {offsets = [0, 0], sizes = [8, 80], strides = [1, 1]} : vector<40x80xf32> to vector<8x80xf32>
    %86 = arith.truncf %85 : vector<8x80xf32> to vector<8x80xbf16>
    %c0_77 = arith.constant 0 : index
    %c0_78 = arith.constant 0 : index
    %c0_79 = arith.constant 0 : index
    %87 = vector.load %arg11[%c0_77, %c0_78, %c0_79] : memref<5x80x128xbf16, #tpu.memory_space<vmem>>, vector<1x80x128xbf16>
    %88 = vector.shape_cast %87 : vector<1x80x128xbf16> to vector<80x128xbf16>
    %cst_80 = arith.constant dense<0.000000e+00> : vector<8x128xf32>
    %89 = tpu.matmul %86, %88, %cst_80 {dimension_numbers = #tpu.dot_dimension_numbers<[1], [0], [0], [1], [0, 0, 1, 1], [], []>} : vector<8x80xbf16>, vector<80x128xbf16>, vector<8x128xf32> -> vector<8x128xf32>
    %90 = vector.extract_strided_slice %84 {offsets = [8, 0], sizes = [8, 80], strides = [1, 1]} : vector<40x80xf32> to vector<8x80xf32>
    %91 = arith.truncf %90 : vector<8x80xf32> to vector<8x80xbf16>
    %c1_81 = arith.constant 1 : index
    %c0_82 = arith.constant 0 : index
    %c0_83 = arith.constant 0 : index
    %92 = vector.load %arg11[%c1_81, %c0_82, %c0_83] : memref<5x80x128xbf16, #tpu.memory_space<vmem>>, vector<1x80x128xbf16>
    %93 = vector.shape_cast %92 : vector<1x80x128xbf16> to vector<80x128xbf16>
    %cst_84 = arith.constant dense<0.000000e+00> : vector<8x128xf32>
    %94 = tpu.matmul %91, %93, %cst_84 {dimension_numbers = #tpu.dot_dimension_numbers<[1], [0], [0], [1], [0, 0, 1, 1], [], []>} : vector<8x80xbf16>, vector<80x128xbf16>, vector<8x128xf32> -> vector<8x128xf32>
    %95 = arith.addf %89, %94 : vector<8x128xf32>
    %96 = vector.extract_strided_slice %84 {offsets = [16, 0], sizes = [8, 80], strides = [1, 1]} : vector<40x80xf32> to vector<8x80xf32>
    %97 = arith.truncf %96 : vector<8x80xf32> to vector<8x80xbf16>
    %c2_85 = arith.constant 2 : index
    %c0_86 = arith.constant 0 : index
    %c0_87 = arith.constant 0 : index
    %98 = vector.load %arg11[%c2_85, %c0_86, %c0_87] : memref<5x80x128xbf16, #tpu.memory_space<vmem>>, vector<1x80x128xbf16>
    %99 = vector.shape_cast %98 : vector<1x80x128xbf16> to vector<80x128xbf16>
    %cst_88 = arith.constant dense<0.000000e+00> : vector<8x128xf32>
    %100 = tpu.matmul %97, %99, %cst_88 {dimension_numbers = #tpu.dot_dimension_numbers<[1], [0], [0], [1], [0, 0, 1, 1], [], []>} : vector<8x80xbf16>, vector<80x128xbf16>, vector<8x128xf32> -> vector<8x128xf32>
    %101 = arith.addf %95, %100 : vector<8x128xf32>
    %102 = vector.extract_strided_slice %84 {offsets = [24, 0], sizes = [8, 80], strides = [1, 1]} : vector<40x80xf32> to vector<8x80xf32>
    %103 = arith.truncf %102 : vector<8x80xf32> to vector<8x80xbf16>
    %c3_89 = arith.constant 3 : index
    %c0_90 = arith.constant 0 : index
    %c0_91 = arith.constant 0 : index
    %104 = vector.load %arg11[%c3_89, %c0_90, %c0_91] : memref<5x80x128xbf16, #tpu.memory_space<vmem>>, vector<1x80x128xbf16>
    %105 = vector.shape_cast %104 : vector<1x80x128xbf16> to vector<80x128xbf16>
    %cst_92 = arith.constant dense<0.000000e+00> : vector<8x128xf32>
    %106 = tpu.matmul %103, %105, %cst_92 {dimension_numbers = #tpu.dot_dimension_numbers<[1], [0], [0], [1], [0, 0, 1, 1], [], []>} : vector<8x80xbf16>, vector<80x128xbf16>, vector<8x128xf32> -> vector<8x128xf32>
    %107 = arith.addf %101, %106 : vector<8x128xf32>
    %108 = vector.extract_strided_slice %84 {offsets = [32, 0], sizes = [8, 80], strides = [1, 1]} : vector<40x80xf32> to vector<8x80xf32>
    %109 = arith.truncf %108 : vector<8x80xf32> to vector<8x80xbf16>
    %c4_93 = arith.constant 4 : index
    %c0_94 = arith.constant 0 : index
    %c0_95 = arith.constant 0 : index
    %110 = vector.load %arg11[%c4_93, %c0_94, %c0_95] : memref<5x80x128xbf16, #tpu.memory_space<vmem>>, vector<1x80x128xbf16>
    %111 = vector.shape_cast %110 : vector<1x80x128xbf16> to vector<80x128xbf16>
    %cst_96 = arith.constant dense<0.000000e+00> : vector<8x128xf32>
    %112 = tpu.matmul %109, %111, %cst_96 {dimension_numbers = #tpu.dot_dimension_numbers<[1], [0], [0], [1], [0, 0, 1, 1], [], []>} : vector<8x80xbf16>, vector<80x128xbf16>, vector<8x128xf32> -> vector<8x128xf32>
    %113 = arith.addf %107, %112 : vector<8x128xf32>
    %c0_97 = arith.constant 0 : index
    %c0_98 = arith.constant 0 : index
    %114 = vector.load %arg12[%c0_97, %c0_98] : memref<1x128xf32, #tpu.memory_space<vmem>>, vector<1x128xf32>
    %115 = vector.broadcast %114 : vector<1x128xf32> to vector<8x128xf32>
    %116 = arith.addf %113, %115 : vector<8x128xf32>
    %cst_99 = arith.constant 0.000000e+00 : f32
    %117 = vector.broadcast %cst_99 : f32 to vector<8x128xf32>
    %118 = arith.maximumf %116, %117 : vector<8x128xf32>
    %119 = arith.truncf %118 : vector<8x128xf32> to vector<8x128xbf16>
    %c0_100 = arith.constant 0 : index
    %c0_101 = arith.constant 0 : index
    %120 = vector.load %arg13[%c0_100, %c0_101] : memref<128x128xbf16, #tpu.memory_space<vmem>>, vector<128x128xbf16>
    %cst_102 = arith.constant dense<0.000000e+00> : vector<8x128xf32>
    %121 = tpu.matmul %119, %120, %cst_102 {dimension_numbers = #tpu.dot_dimension_numbers<[1], [0], [0], [1], [0, 0, 1, 1], [], []>} : vector<8x128xbf16>, vector<128x128xbf16>, vector<8x128xf32> -> vector<8x128xf32>
    %c0_103 = arith.constant 0 : index
    %c0_104 = arith.constant 0 : index
    %122 = vector.load %arg14[%c0_103, %c0_104] : memref<1x128xf32, #tpu.memory_space<vmem>>, vector<1x128xf32>
    %123 = vector.broadcast %122 : vector<1x128xf32> to vector<8x128xf32>
    %124 = arith.addf %121, %123 : vector<8x128xf32>
    %cst_105 = arith.constant 0.000000e+00 : f32
    %125 = vector.broadcast %cst_105 : f32 to vector<8x128xf32>
    %126 = arith.maximumf %124, %125 : vector<8x128xf32>
    %127 = arith.truncf %126 : vector<8x128xf32> to vector<8x128xbf16>
    %c0_106 = arith.constant 0 : index
    %c0_107 = arith.constant 0 : index
    %128 = vector.load %arg15[%c0_106, %c0_107] : memref<128x128xbf16, #tpu.memory_space<vmem>>, vector<128x128xbf16>
    %cst_108 = arith.constant dense<0.000000e+00> : vector<8x128xf32>
    %129 = tpu.matmul %127, %128, %cst_108 {dimension_numbers = #tpu.dot_dimension_numbers<[1], [0], [0], [1], [0, 0, 1, 1], [], []>} : vector<8x128xbf16>, vector<128x128xbf16>, vector<8x128xf32> -> vector<8x128xf32>
    %c0_109 = arith.constant 0 : index
    %c0_110 = arith.constant 0 : index
    %130 = vector.load %arg16[%c0_109, %c0_110] : memref<1x128xf32, #tpu.memory_space<vmem>>, vector<1x128xf32>
    %131 = vector.broadcast %130 : vector<1x128xf32> to vector<8x128xf32>
    %132 = arith.addf %129, %131 : vector<8x128xf32>
    %c0_111 = arith.constant 0 : index
    %c0_112 = arith.constant 0 : index
    %133 = vector.load %arg17[%c0_111, %c0_112] : memref<8x128xf32, #tpu.memory_space<vmem>>, vector<8x128xf32>
    tpu.vector_store %arg17[%c0_111, %c0_112], %132 {strides = array<i32>} : memref<8x128xf32, #tpu.memory_space<vmem>>, vector<8x128xf32>,
    return
  }
  func.func @transform_0(%arg0: i32) -> (i32, i32) {
    %c0_i32 = arith.constant 0 : i32
    %c0_i32_0 = arith.constant 0 : i32
    return %arg0, %c0_i32 : i32, i32
  }
  func.func @transform_1(%arg0: i32) -> (i32, i32) {
    %c0_i32 = arith.constant 0 : i32
    %c0_i32_0 = arith.constant 0 : i32
    %c0_i32_1 = arith.constant 0 : i32
    return %c0_i32, %c0_i32_0 : i32, i32
  }
  func.func @transform_2(%arg0: i32) -> (i32, i32) {
    %c0_i32 = arith.constant 0 : i32
    %c0_i32_0 = arith.constant 0 : i32
    %c0_i32_1 = arith.constant 0 : i32
    return %c0_i32, %c0_i32_0 : i32, i32
  }
  func.func @transform_3(%arg0: i32) -> (i32, i32, i32) {
    %c0_i32 = arith.constant 0 : i32
    %c0_i32_0 = arith.constant 0 : i32
    %c0_i32_1 = arith.constant 0 : i32
    %c0_i32_2 = arith.constant 0 : i32
    return %c0_i32, %c0_i32_0, %c0_i32_1 : i32, i32, i32
  }
  func.func @transform_4(%arg0: i32) -> (i32, i32, i32) {
    %c0_i32 = arith.constant 0 : i32
    %c0_i32_0 = arith.constant 0 : i32
    %c0_i32_1 = arith.constant 0 : i32
    %c0_i32_2 = arith.constant 0 : i32
    return %c0_i32, %c0_i32_0, %c0_i32_1 : i32, i32, i32
  }
  func.func @transform_5(%arg0: i32) -> (i32, i32, i32) {
    %c0_i32 = arith.constant 0 : i32
    %c0_i32_0 = arith.constant 0 : i32
    %c0_i32_1 = arith.constant 0 : i32
    %c0_i32_2 = arith.constant 0 : i32
    return %c0_i32, %c0_i32_0, %c0_i32_1 : i32, i32, i32
  }
  func.func @transform_6(%arg0: i32) -> (i32, i32) {
    %c0_i32 = arith.constant 0 : i32
    %c0_i32_0 = arith.constant 0 : i32
    %c0_i32_1 = arith.constant 0 : i32
    return %c0_i32, %c0_i32_0 : i32, i32
  }
  func.func @transform_7(%arg0: i32) -> (i32, i32, i32) {
    %c0_i32 = arith.constant 0 : i32
    %c0_i32_0 = arith.constant 0 : i32
    %c0_i32_1 = arith.constant 0 : i32
    %c0_i32_2 = arith.constant 0 : i32
    return %c0_i32, %c0_i32_0, %c0_i32_1 : i32, i32, i32
  }
  func.func @transform_8(%arg0: i32) -> (i32, i32, i32) {
    %c0_i32 = arith.constant 0 : i32
    %c0_i32_0 = arith.constant 0 : i32
    %c0_i32_1 = arith.constant 0 : i32
    %c0_i32_2 = arith.constant 0 : i32
    return %c0_i32, %c0_i32_0, %c0_i32_1 : i32, i32, i32
  }
  func.func @transform_9(%arg0: i32) -> (i32, i32, i32) {
    %c0_i32 = arith.constant 0 : i32
    %c0_i32_0 = arith.constant 0 : i32
    %c0_i32_1 = arith.constant 0 : i32
    %c0_i32_2 = arith.constant 0 : i32
    return %c0_i32, %c0_i32_0, %c0_i32_1 : i32, i32, i32
  }
  func.func @transform_10(%arg0: i32) -> (i32, i32, i32) {
    %c0_i32 = arith.constant 0 : i32
    %c0_i32_0 = arith.constant 0 : i32
    %c0_i32_1 = arith.constant 0 : i32
    %c0_i32_2 = arith.constant 0 : i32
    return %c0_i32, %c0_i32_0, %c0_i32_1 : i32, i32, i32
  }
  func.func @transform_11(%arg0: i32) -> (i32, i32) {
    %c0_i32 = arith.constant 0 : i32
    %c0_i32_0 = arith.constant 0 : i32
    %c0_i32_1 = arith.constant 0 : i32
    return %c0_i32, %c0_i32_0 : i32, i32
  }
  func.func @transform_12(%arg0: i32) -> (i32, i32) {
    %c0_i32 = arith.constant 0 : i32
    %c0_i32_0 = arith.constant 0 : i32
    %c0_i32_1 = arith.constant 0 : i32
    return %c0_i32, %c0_i32_0 : i32, i32
  }
  func.func @transform_13(%arg0: i32) -> (i32, i32) {
    %c0_i32 = arith.constant 0 : i32
    %c0_i32_0 = arith.constant 0 : i32
    %c0_i32_1 = arith.constant 0 : i32
    return %c0_i32, %c0_i32_0 : i32, i32
  }
  func.func @transform_14(%arg0: i32) -> (i32, i32) {
    %c0_i32 = arith.constant 0 : i32
    %c0_i32_0 = arith.constant 0 : i32
    %c0_i32_1 = arith.constant 0 : i32
    return %c0_i32, %c0_i32_0 : i32, i32
  }
  func.func @transform_15(%arg0: i32) -> (i32, i32) {
    %c0_i32 = arith.constant 0 : i32
    %c0_i32_0 = arith.constant 0 : i32
    %c0_i32_1 = arith.constant 0 : i32
    return %c0_i32, %c0_i32_0 : i32, i32
  }
  func.func @transform_16(%arg0: i32) -> (i32, i32) {
    %c0_i32 = arith.constant 0 : i32
    %c0_i32_0 = arith.constant 0 : i32
    return %arg0, %c0_i32 : i32, i32
  }
}

</mosaic_0001>

<bundles_post_ra>
// kernel: cnn_cifar_forward.1
= control target key start
LH: loop header
LB: loop body
LE: loop exit
PB: predicated region body
PF: predicated region fallthrough
CT: control target
= control target key end

     0   :  { %s10012_s0 = inlined_call_operand.vmem [shape: bf16[448,480], index: 0, kind: input, shape index: {}]   ;;  %s10013_s1 = inlined_call_operand.vmem [shape: bf16[480,168], index: 1, kind: input, shape index: {}]   ;;  %s10014_s2 = inlined_call_operand.vmem [shape: f32[1,168], index: 2, kind: input, shape index: {}]   ;;  %s10015_s3 = inlined_call_operand.vmem [shape: bf16[2,112,224], index: 3, kind: input, shape index: {}]   ;;  %s10016_s4 = inlined_call_operand.vmem [shape: bf16[2,168,84], index: 4, kind: input, shape index: {}]   ;;  %s10017_s5 = inlined_call_operand.vmem [shape: bf16[5,84,160], index: 5, kind: input, shape index: {}]   ;;  %s10018_s6 = inlined_call_operand.vmem [shape: f32[1,160], index: 6, kind: input, shape index: {}]   ;;  %s10019_s7 = inlined_call_operand.vmem [shape: bf16[5,80,112], index: 7, kind: input, shape index: {}]   ;;  %s10020_s8 = inlined_call_operand.vmem [shape: bf16[2,40,80], index: 8, kind: input, shape index: {}]   ;;  %s10021_s9 = inlined_call_operand.vmem [shape: bf16[2,160,80], index: 9, kind: input, shape index: {}]   ;;  %s10022_s10 = inlined_call_operand.vmem [shape: bf16[5,80,128], index: 10, kind: input, shape index: {}]   ;;  %s10023_s11 = inlined_call_operand.vmem [shape: f32[1,128], index: 11, kind: input, shape index: {}]   ;;  %s10024_s12 = inlined_call_operand.vmem [shape: bf16[128,128], index: 12, kind: input, shape index: {}]   ;;  %s10025_s13 = inlined_call_operand.vmem [shape: f32[1,128], index: 13, kind: input, shape index: {}]   ;;  %s10026_s14 = inlined_call_operand.vmem [shape: bf16[128,128], index: 14, kind: input, shape index: {}]   ;;  %s10027_s15 = inlined_call_operand.vmem [shape: f32[1,128], index: 15, kind: input, shape index: {}]   ;;  %s10028_s16 = inlined_call_operand.hbm [shape: f32[16,128], index: 16, kind: output, shape index: {}]  }
   0x1   :  { %10066 = sst [smem:[#allocation40_spill]] %s10012_s0 }
   0x2   :  { %10067 = sst [smem:[#allocation41_spill]] %s10013_s1 }
   0x3   :  { %21 = vsyncpa [#allocation3], 0 }
   0x4   :  { %23 = vsyncpa [#allocation3 + $0x1], 0  ;;  %s7352_s21 = smov 0   ;;  %s7354_s22 = smov 0  }
   0x5   :  { %s7356_s23 = smov 0   ;;  %s7358_s24 = smov 0  }
   0x6 LB: > { %10068 = sst [smem:[#allocation5_spill]] %s7253_s21  ;;  %s7373_s25 = sadd.s32 4294967295, %s7265_s24   ;;  %s7265_s24 = sphi %s7358_s24, %s10147_s24   ;;  %s7261_s23 = sphi %s7356_s23, %s10149_s23   ;;  %s7257_s22 = sphi %s7354_s22, %s10151_s22   ;;  %s7253_s21 = sphi %s7352_s21, %s10150_s21  }
   0x7   : > { %10069 = sst [smem:[#allocation6_spill]] %s7261_s23  ;;  %s5277_s26 = sadd.s32 4294967294, %s7265_s24  }
   0x8   : > { %10070 = sst [smem:[#allocation7_spill]] %s7265_s24  ;;  %s7377_s27 = sadd.s32 1, %s7265_s24  }
   0x9   : > { %10071 = sst [smem:[#allocation8_spill]] %s7377_s27  ;;  %s377_s28 = sadd.s32 1, %s7261_s23 }
   0xa   : > { %s374_s29 = ssub.s32 %s7265_s24, %s7377_s27  ;;  %p387_p0 = scmp.ne.s32.totalorder %s7261_s23, %s7257_s22 }
   0xb   : > { %p375_p1 = scmp.eq.s32.totalorder %s374_s29, 0  ;;  %p388_p2 = scmp.eq.s32.totalorder %s7373_s25, 1 }
   0xc   : > { %p393_p3 = scmp.ne.s32.totalorder %s7257_s22, %s7253_s21  ;;  %p394_p4 = scmp.eq.s32.totalorder %s5277_s26, 1 }
   0xd   : > { %s7388_s30 = scalar_select %p375_p1, %s7261_s23, %s377_s28  }
   0xe   : > { %p7390_p5 = por %p388_p2, %p387_p0  ;;  %p7394_p6 = por %p394_p4, %p393_p3 }
   0xf   : > { %10072 = sst [smem:[#allocation9_spill]] %s7388_s30  ;;  %p5280_p7 = scmp.ge.s32.totalorder %s7265_s24, 1 }
  0x10   : > { %s10074_s17 = scalar_select %p7394_p6, 1, 0 }
  0x11   : > { %p467_p8 = scmp.lt.s32.totalorder %s7265_s24, 3 }
  0x12   : > { %10075 = sst [smem:[#allocation10_spill]] %s10074_s17 }
  0x13   : > { %p468_p9 = pnand %p5280_p7, %p467_p8 }
  0x15   : > { %471 = sbr.rel (%p468_p9) target bundleno = 2771 (0xad3), region = 84 }
  0x1a   : > { %s10076_s1 = sld [smem:[#allocation41_spill]]  ;;  %s518_s21 = smul.u32 28, %s7373_s25  ;;  %vm1214_vm0 = vcmask 785408   ;;  %vm2670_vm1 = vcmask 1043456   ;;  %vm2648_vm2 = vcmask 326656   ;;  %vm3233_vm3 = vcmask 1041408  }
  0x1b   : > { %s10077_s26 = sld [smem:[#allocation40_spill]]  ;;  %vm2994_vm4 = vcmask 916480   ;;  %vm3217_vm5 = vcmask 687104   ;;  %vm4324_vm6 = vcmask 654336   ;;  %vm4550_vm7 = vcmask 261120   ;;  %s6853_s29 = sshll.u32 %s7373_s25, 3 }
  0x1c   : > { %p519_p10 = scmp.lt.s32.totalorder %s518_s21, 55  ;;  %s7223_s20 = scalar_lea.hbm %s10028_s16, 16 }
  0x1e   : > { %s10153_s21 = smov (!%p519_p10, %s518_s21), 55 }
  0x1f   : > { %s6856_s27 = sshll.u32 %s10153_s21, 4 }
  0x20   : > { %v5566_v0 = vld [vmem:[%s10076_s1 + $0x70] sm:$0xf]  ;;  %v6928_v1 = vld [vmem:[%s10076_s1 + $0x74] sm:$0xf0]  ;;  %v5558_v11 = vld [vmem:[%s10076_s1 + $0x60] sm:$0xf] }
  0x21   : > { %v5630_v2 = vld [vmem:[%s10076_s1 + $0xf0] sm:$0xf]  ;;  %v5567_v3 = vor.u32 %v6928_v1, %v5566_v0  ;;  %v6944_v4 = vld [vmem:[%s10076_s1 + $0xf4] sm:$0xf0]  ;;  %v6926_v13 = vld [vmem:[%s10076_s1 + $0x64] sm:$0xf0]  ;;  %s7566_s28 = scalar_lea.vmem %s10077_s26, %s6856_s27  ;;  %s5213_s26 = scalar_lea.hbm %s10028_s16, %s6853_s29 }
  0x22   : > { %v5694_v5 = vld [vmem:[%s10076_s1 + $0x170] sm:$0xf]  ;;  %v6960_v6 = vld [vmem:[%s10076_s1 + $0x174] sm:$0xf0]  ;;  %v5631_v7 = vor.u32 %v6944_v4, %v5630_v2  ;;  %v5622_v14 = vld [vmem:[%s10076_s1 + $0xe0] sm:$0xf]  ;;  %v5559_v16 = vor.u32 %v6926_v13, %v5558_v11 }
  0x23   : > { %v5695_v8 = vor.u32 %v6960_v6, %v5694_v5  ;;  %v5742_v9 = vld [vmem:[%s10076_s1 + $0x1d0] sm:$0xf]  ;;  %v6972_v10 = vld [vmem:[%s10076_s1 + $0x1d4] sm:$0xf0]  ;;  %1257 = vmatpush.bf16.msra.mxu0 %v5567_v3  ;;  %v6942_v15 = vld [vmem:[%s10076_s1 + $0xe4] sm:$0xf0] }
  0x24   : > { %v5743_v12 = vor.u32 %v6972_v10, %v5742_v9  ;;  %1336 = vmatpush.bf16.msra.mxu1 %v5631_v7  ;;  %v5623_v17 = vor.u32 %v6942_v15, %v5622_v14  ;;  %v5686_v18 = vld [vmem:[%s10076_s1 + $0x160] sm:$0xf]  ;;  %v6958_v19 = vld [vmem:[%s10076_s1 + $0x164] sm:$0xf0]  ;;  %v5550_v23 = vld [vmem:[%s10076_s1 + $0x50] sm:$0xf] }
  0x25   : > { %1415 = vmatpush.bf16.msra.mxu2 %v5695_v8  ;;  %v5734_v20 = vld [vmem:[%s10076_s1 + $0x1c0] sm:$0xf]  ;;  %v5687_v21 = vor.u32 %v6958_v19, %v5686_v18  ;;  %v6970_v22 = vld [vmem:[%s10076_s1 + $0x1c4] sm:$0xf0]  ;;  %v6924_v24 = vld [vmem:[%s10076_s1 + $0x54] sm:$0xf0] }
  0x26   : > { %1496 = vmatpush.bf16.msra.mxu3 %v5743_v12  ;;  %v5735_v25 = vor.u32 %v6970_v22, %v5734_v20  ;;  %v5614_v26 = vld [vmem:[%s10076_s1 + $0xd0] sm:$0xf]  ;;  %v6940_v27 = vld [vmem:[%s10076_s1 + $0xd4] sm:$0xf0]  ;;  %v5551_v29 = vor.u32 %v6924_v24, %v5550_v23  ;;  %v5542_v35 = vld [vmem:[%s10076_s1 + $0x40] sm:$0xf] }
  0x27   : > { %v5678_v28 = vld [vmem:[%s10076_s1 + $0x150] sm:$0xf]  ;;  %1258 = vmatpush.bf16.msra.mxu0 %v5559_v16  ;;  %v6956_v30 = vld [vmem:[%s10076_s1 + $0x154] sm:$0xf0]  ;;  %v5615_v33 = vor.u32 %v6940_v27, %v5614_v26  ;;  %v6922_v36 = vld [vmem:[%s10076_s1 + $0x44] sm:$0xf0] }
  0x28   : > { %v5726_v31 = vld [vmem:[%s10076_s1 + $0x1b0] sm:$0xf]  ;;  %v6968_v32 = vld [vmem:[%s10076_s1 + $0x1b4] sm:$0xf0]  ;;  %1337 = vmatpush.bf16.msra.mxu1 %v5623_v17  ;;  %v5679_v34 = vor.u32 %v6956_v30, %v5678_v28  ;;  %v5606_v37 = vld [vmem:[%s10076_s1 + $0xc0] sm:$0xf]  ;;  %v5543_v44 = vor.u32 %v6922_v36, %v5542_v35 }
  0x29   : > { %1416 = vmatpush.bf16.msra.mxu2 %v5687_v21  ;;  %v5727_v38 = vor.u32 %v6968_v32, %v5726_v31  ;;  %v6938_v39 = vld [vmem:[%s10076_s1 + $0xc4] sm:$0xf0]  ;;  %v5670_v40 = vld [vmem:[%s10076_s1 + $0x140] sm:$0xf]  ;;  %v5534_v47 = vld [vmem:[%s10076_s1 + $0x30] sm:$0xf] }
  0x2a   : > { %1497 = vmatpush.bf16.msra.mxu3 %v5735_v25  ;;  %v6954_v41 = vld [vmem:[%s10076_s1 + $0x144] sm:$0xf0]  ;;  %v5718_v42 = vld [vmem:[%s10076_s1 + $0x1a0] sm:$0xf]  ;;  %v5607_v45 = vor.u32 %v6938_v39, %v5606_v37  ;;  %v6920_v48 = vld [vmem:[%s10076_s1 + $0x34] sm:$0xf0] }
  0x2b   : > { %v6966_v43 = vld [vmem:[%s10076_s1 + $0x1a4] sm:$0xf0]  ;;  %1259 = vmatpush.bf16.msra.mxu0 %v5551_v29  ;;  %v5671_v46 = vor.u32 %v6954_v41, %v5670_v40  ;;  %v5598_v49 = vld [vmem:[%s10076_s1 + $0xb0] sm:$0xf]  ;;  %v6936_v51 = vld [vmem:[%s10076_s1 + $0xb4] sm:$0xf0]  ;;  %v5535_v56 = vor.u32 %v6920_v48, %v5534_v47 }
  0x2c   : > { %1338 = vmatpush.bf16.msra.mxu1 %v5615_v33  ;;  %v5719_v50 = vor.u32 %v6966_v43, %v5718_v42  ;;  %v5662_v52 = vld [vmem:[%s10076_s1 + $0x130] sm:$0xf]  ;;  %v6952_v53 = vld [vmem:[%s10076_s1 + $0x134] sm:$0xf0]  ;;  %v5526_v57 = vld [vmem:[%s10076_s1 + $0x20] sm:$0xf]  ;;  %v5599_v58 = vor.u32 %v6936_v51, %v5598_v49 }
  0x2d   : > { %1417 = vmatpush.bf16.msra.mxu2 %v5679_v34  ;;  %v5710_v54 = vld [vmem:[%s10076_s1 + $0x190] sm:$0xf]  ;;  %v6964_v55 = vld [vmem:[%s10076_s1 + $0x194] sm:$0xf0]  ;;  %v5663_v59 = vor.u32 %v6952_v53, %v5662_v52  ;;  %v6918_v60 = vld [vmem:[%s10076_s1 + $0x24] sm:$0xf0] }
  0x2e   : > { %1498 = vmatpush.bf16.msra.mxu3 %v5727_v38  ;;  %v5590_v61 = vld [vmem:[%s10076_s1 + $0xa0] sm:$0xf]  ;;  %v5711_v62 = vor.u32 %v6964_v55, %v5710_v54  ;;  %v6934_v63 = vld [vmem:[%s10076_s1 + $0xa4] sm:$0xf0]  ;;  %v5527_v4 = vor.u32 %v6918_v60, %v5526_v57  ;;  %v5518_v5 = vld [vmem:[%s10076_s1 + $0x10] sm:$0xf] }
  0x2f   : > { %1260 = vmatpush.bf16.msra.mxu0 %v5543_v44  ;;  %v5654_v0 = vld [vmem:[%s10076_s1 + $0x120] sm:$0xf]  ;;  %v6950_v1 = vld [vmem:[%s10076_s1 + $0x124] sm:$0xf0]  ;;  %v6916_v6 = vld [vmem:[%s10076_s1 + $0x14] sm:$0xf0]  ;;  %v5591_v7 = vor.u32 %v6934_v63, %v5590_v61 }
  0x30   : > { %1339 = vmatpush.bf16.msra.mxu1 %v5607_v45  ;;  %v5702_v2 = vld [vmem:[%s10076_s1 + $0x180] sm:$0xf]  ;;  %v6962_v3 = vld [vmem:[%s10076_s1 + $0x184] sm:$0xf0]  ;;  %v5655_v8 = vor.u32 %v6950_v1, %v5654_v0  ;;  %v5582_v9 = vld [vmem:[%s10076_s1 + $0x90] sm:$0xf]  ;;  %v5519_v14 = vor.u32 %v6916_v6, %v5518_v5 }
  0x31   : > { %1418 = vmatpush.bf16.msra.mxu2 %v5671_v46  ;;  %v6932_v10 = vld [vmem:[%s10076_s1 + $0x94] sm:$0xf0]  ;;  %v5703_v11 = vor.u32 %v6962_v3, %v5702_v2  ;;  %v5646_v12 = vld [vmem:[%s10076_s1 + $0x110] sm:$0xf]  ;;  %v5510_v15 = vld [vmem:[%s10076_s1] sm:$0xf] }
  0x32   : > { %1499 = vmatpush.bf16.msra.mxu3 %v5719_v50  ;;  %v6948_v13 = vld [vmem:[%s10076_s1 + $0x114] sm:$0xf0]  ;;  %v6858_v16 = vld [vmem:[%s7566_s28 + $0xc] sm:$0xf]  ;;  %v5296_v17 = vld [vmem:[%s7566_s28 + $0x18] sm:$0xf0]  ;;  %v5583_v18 = vor.u32 %v6932_v10, %v5582_v9 }
  0x33   : > { %1261 = vmatpush.bf16.msra.mxu0 %v5535_v56  ;;  %v6914_v19 = vld [vmem:[%s10076_s1 + $0x4] sm:$0xf0]  ;;  %v7576_v20 = vor.u32 %v6858_v16, %v5296_v17  ;;  %v5647_v21 = vor.u32 %v6948_v13, %v5646_v12  ;;  %v5574_v22 = vld [vmem:[%s10076_s1 + $0x80] sm:$0xf]  ;;  %v6859_v28 = vld [vmem:[%s7566_s28 + $0xc] sm:$0xf0] }
  0x34   : > { %1340 = vmatpush.bf16.msra.mxu1 %v5599_v58  ;;  %v6930_v23 = vld [vmem:[%s10076_s1 + $0x84] sm:$0xf0]  ;;  %v5638_v24 = vld [vmem:[%s10076_s1 + $0x100] sm:$0xf]  ;;  %v5511_v26 = vor.u32 %v6914_v19, %v5510_v15  ;;  %v6857_v30 = vld [vmem:[%s7566_s28 + $0x4] sm:$0xf] }
  0x35   : > { %1419 = vmatpush.bf16.msra.mxu2 %v5663_v59  ;;  %v6946_v25 = vld [vmem:[%s10076_s1 + $0x104] sm:$0xf0]  ;;  %v5286_v27 = vld [vmem:[%s7566_s28] sm:$0xf]  ;;  %v5575_v29 = vor.u32 %v6930_v23, %v5574_v22  ;;  %v5288_v31 = vld [vmem:[%s7566_s28 + $0x10] sm:$0xf0] }
  0x36   : > { %1500 = vmatpush.bf16.msra.mxu3 %v5711_v62  ;;  %v5639_v32 = vor.u32 %v6946_v25, %v5638_v24  ;;  %v5294_v33 = vld [vmem:[%s7566_s28 + $0x8] sm:$0xf]  ;;  %v6860_v34 = vld [vmem:[%s7566_s28 + $0x14] sm:$0xf0]  ;;  %v7598_v35 = vor.u32 %v6859_v28, %v5286_v27  ;;  %v7600_v36 = vor.u32 %v6857_v30, %v5288_v31  ;;  %v6862_v38 = vld [vmem:[%s7566_s28 + $0x2c] sm:$0xf] }
  0x37   : > { %1262 = vmatpush.bf16.msra.mxu0 %v5527_v4  ;;  %v7602_v37 = vor.u32 %v6860_v34, %v5294_v33  ;;  %v5312_v39 = vld [vmem:[%s7566_s28 + $0x38] sm:$0xf0]  ;;  %v5302_v41 = vld [vmem:[%s7566_s28 + $0x20] sm:$0xf]  ;;  %v6863_v42 = vld [vmem:[%s7566_s28 + $0x2c] sm:$0xf0] }
  0x38   : > { %1341 = vmatpush.bf16.msra.mxu1 %v5591_v7  ;;  %v7609_v40 = vor.u32 %v6862_v38, %v5312_v39  ;;  %v6861_v43 = vld [vmem:[%s7566_s28 + $0x24] sm:$0xf]  ;;  %v5304_v44 = vld [vmem:[%s7566_s28 + $0x30] sm:$0xf0]  ;;  %v5310_v45 = vld [vmem:[%s7566_s28 + $0x28] sm:$0xf]  ;;  %v7619_v47 = vor.u32 %v6863_v42, %v5302_v41 }
  0x39   : > { %1420 = vmatpush.bf16.msra.mxu2 %v5655_v8  ;;  %v6864_v46 = vld [vmem:[%s7566_s28 + $0x34] sm:$0xf0]  ;;  %v7621_v48 = vor.u32 %v6861_v43, %v5304_v44  ;;  %v6866_v50 = vld [vmem:[%s7566_s28 + $0x4c] sm:$0xf]  ;;  %v5328_v51 = vld [vmem:[%s7566_s28 + $0x58] sm:$0xf0] }
  0x3a   : > { %1501 = vmatpush.bf16.msra.mxu3 %v5703_v11  ;;  %v7623_v49 = vor.u32 %v6864_v46, %v5310_v45  ;;  %v7630_v52 = vor.u32 %v6866_v50, %v5328_v51  ;;  %v5318_v53 = vld [vmem:[%s7566_s28 + $0x40] sm:$0xf]  ;;  %v6867_v54 = vld [vmem:[%s7566_s28 + $0x4c] sm:$0xf0]  ;;  %v6865_v55 = vld [vmem:[%s7566_s28 + $0x44] sm:$0xf] }
  0x3b   : > { %1263 = vmatpush.bf16.msra.mxu0 %v5519_v14  ;;  %v5320_v56 = vld [vmem:[%s7566_s28 + $0x50] sm:$0xf0]  ;;  %v5326_v57 = vld [vmem:[%s7566_s28 + $0x48] sm:$0xf]  ;;  %v6868_v58 = vld [vmem:[%s7566_s28 + $0x54] sm:$0xf0]  ;;  %v7640_v59 = vor.u32 %v6867_v54, %v5318_v53 }
  0x3c   : > { %1342 = vmatpush.bf16.msra.mxu1 %v5583_v18  ;;  %v7642_v60 = vor.u32 %v6865_v55, %v5320_v56  ;;  %v7644_v61 = vor.u32 %v6868_v58, %v5326_v57  ;;  %v6870_v62 = vld [vmem:[%s7566_s28 + $0x6c] sm:$0xf]  ;;  %v5344_v63 = vld [vmem:[%s7566_s28 + $0x78] sm:$0xf0]  ;;  %v5334_v1 = vld [vmem:[%s7566_s28 + $0x60] sm:$0xf] }
  0x3d   : > { %5748 = vmatmul.msk.bf16.vlgmr.msra.gmra.mxu3 %vm1214_vm0, %v7576_v20  ;;  %1421 = vmatpush.bf16.msra.mxu2 %v5647_v21  ;;  %v7651_v0 = vor.u32 %v6870_v62, %v5344_v63  ;;  %v6871_v2 = vld [vmem:[%s7566_s28 + $0x6c] sm:$0xf0]  ;;  %v6869_v3 = vld [vmem:[%s7566_s28 + $0x64] sm:$0xf]  ;;  %v5336_v4 = vld [vmem:[%s7566_s28 + $0x70] sm:$0xf0] }
  0x3e   : > { %v5342_v5 = vld [vmem:[%s7566_s28 + $0x68] sm:$0xf]  ;;  %v6872_v6 = vld [vmem:[%s7566_s28 + $0x74] sm:$0xf0]  ;;  %v7661_v7 = vor.u32 %v6871_v2, %v5334_v1  ;;  %v7663_v8 = vor.u32 %v6869_v3, %v5336_v4  ;;  %v6874_v10 = vld [vmem:[%s7566_s28 + $0x8c] sm:$0xf] }
  0x3f   : > { %1264 = vmatpush.bf16.msra.mxu0 %v5511_v26  ;;  %v7665_v9 = vor.u32 %v6872_v6, %v5342_v5  ;;  %v5360_v11 = vld [vmem:[%s7566_s28 + $0x98] sm:$0xf0]  ;;  %v5350_v13 = vld [vmem:[%s7566_s28 + $0x80] sm:$0xf]  ;;  %v6875_v14 = vld [vmem:[%s7566_s28 + $0x8c] sm:$0xf0] }
  0x40   : > { %1343 = vmatpush.bf16.msra.mxu1 %v5575_v29  ;;  %v7672_v12 = vor.u32 %v6874_v10, %v5360_v11  ;;  %v6873_v15 = vld [vmem:[%s7566_s28 + $0x84] sm:$0xf]  ;;  %v5352_v16 = vld [vmem:[%s7566_s28 + $0x90] sm:$0xf0]  ;;  %v5358_v17 = vld [vmem:[%s7566_s28 + $0x88] sm:$0xf]  ;;  %v7682_v19 = vor.u32 %v6875_v14, %v5350_v13 }
  0x41   : > { %1422 = vmatpush.bf16.msra.mxu2 %v5639_v32  ;;  %v6876_v18 = vld [vmem:[%s7566_s28 + $0x94] sm:$0xf0]  ;;  %v7684_v21 = vor.u32 %v6873_v15, %v5352_v16  ;;  %v6878_v23 = vld [vmem:[%s7566_s28 + $0xac] sm:$0xf]  ;;  %v5376_v24 = vld [vmem:[%s7566_s28 + $0xb8] sm:$0xf0] }
  0x42   : > { %1265 = vmatmul.bf16.vlgmr.msra.gmra.mxu0 %v7598_v35  ;;  %v7686_v22 = vor.u32 %v6876_v18, %v5358_v17  ;;  %v7693_v25 = vor.u32 %v6878_v23, %v5376_v24  ;;  %v5366_v26 = vld [vmem:[%s7566_s28 + $0xa0] sm:$0xf]  ;;  %v6879_v27 = vld [vmem:[%s7566_s28 + $0xac] sm:$0xf0]  ;;  %v6877_v28 = vld [vmem:[%s7566_s28 + $0xa4] sm:$0xf] }
  0x43   : > { %1344 = vmatmul.bf16.vlgmr.msra.gmra.mxu1 %v7600_v36  ;;  %v5368_v29 = vld [vmem:[%s7566_s28 + $0xb0] sm:$0xf0]  ;;  %v5374_v30 = vld [vmem:[%s7566_s28 + $0xa8] sm:$0xf]  ;;  %v6880_v31 = vld [vmem:[%s7566_s28 + $0xb4] sm:$0xf0]  ;;  %v7703_v32 = vor.u32 %v6879_v27, %v5366_v26 }
  0x44   : > { %1423 = vmatmul.bf16.vlgmr.msra.gmra.mxu2 %v7602_v37  ;;  %v7705_v33 = vor.u32 %v6877_v28, %v5368_v29  ;;  %v7707_v34 = vor.u32 %v6880_v31, %v5374_v30  ;;  %v6882_v38 = vld [vmem:[%s7566_s28 + $0xcc] sm:$0xf]  ;;  %v5392_v39 = vld [vmem:[%s7566_s28 + $0xd8] sm:$0xf0]  ;;  %v5382_v42 = vld [vmem:[%s7566_s28 + $0xc0] sm:$0xf] }
  0x45   : > { %v7714_v41 = vor.u32 %v6882_v38, %v5392_v39  ;;  %v6883_v43 = vld [vmem:[%s7566_s28 + $0xcc] sm:$0xf0]  ;;  %v6881_v44 = vld [vmem:[%s7566_s28 + $0xc4] sm:$0xf]  ;;  %v5384_v45 = vld [vmem:[%s7566_s28 + $0xd0] sm:$0xf0] }
  0x46   : > { %v5390_v46 = vld [vmem:[%s7566_s28 + $0xc8] sm:$0xf]  ;;  %v6884_v50 = vld [vmem:[%s7566_s28 + $0xd4] sm:$0xf0]  ;;  %v7724_v51 = vor.u32 %v6883_v43, %v5382_v42  ;;  %v7726_v53 = vor.u32 %v6881_v44, %v5384_v45  ;;  %v6886_v55 = vld [vmem:[%s7566_s28 + $0xec] sm:$0xf] }
  0x47   : > { %v7728_v54 = vor.u32 %v6884_v50, %v5390_v46  ;;  %v5408_v56 = vld [vmem:[%s7566_s28 + $0xf8] sm:$0xf0]  ;;  %v5398_v58 = vld [vmem:[%s7566_s28 + $0xe0] sm:$0xf]  ;;  %v6887_v62 = vld [vmem:[%s7566_s28 + $0xec] sm:$0xf0] }
  0x48   : > { %v7735_v57 = vor.u32 %v6886_v55, %v5408_v56  ;;  %v6885_v63 = vld [vmem:[%s7566_s28 + $0xe4] sm:$0xf]  ;;  %v5400_v1 = vld [vmem:[%s7566_s28 + $0xf0] sm:$0xf0]  ;;  %v5406_v2 = vld [vmem:[%s7566_s28 + $0xe8] sm:$0xf]  ;;  %v7745_v4 = vor.u32 %v6887_v62, %v5398_v58 }
  0x49   : > { %v6888_v3 = vld [vmem:[%s7566_s28 + $0xf4] sm:$0xf0]  ;;  %v7747_v5 = vor.u32 %v6885_v63, %v5400_v1  ;;  %v6890_v10 = vld [vmem:[%s7566_s28 + $0x10c] sm:$0xf]  ;;  %v5424_v11 = vld [vmem:[%s7566_s28 + $0x118] sm:$0xf0] }
  0x4a   : > { %10078 = vst [vmem:[#allocation11_spill] sm:$0xff] %v7735_v57  ;;  %v7749_v6 = vor.u32 %v6888_v3, %v5406_v2  ;;  %v7756_v13 = vor.u32 %v6890_v10, %v5424_v11  ;;  %v7761_v14 = vld [vmem:[%s10014_s2] sm:$0x3]  ;;  %v6891_v16 = vld [vmem:[%s7566_s28 + $0x10c] sm:$0xf0]  ;;  %s515_s27 = sand.u32 1, %s7257_s22  }
  0x4b   : > { %10079 = vst [vmem:[#allocation12_spill] sm:$0xff] %v7745_v4  ;;  %v5414_v15 = vld [vmem:[%s7566_s28 + $0x100] sm:$0xf]  ;;  %v7768_v17 = vperm.slane %v7761_v14, 0  ;;  %v6889_v18 = vld [vmem:[%s7566_s28 + $0x104] sm:$0xf] }
  0x4c   : > { %10080 = vst [vmem:[#allocation13_spill] sm:$0xff] %v7747_v5  ;;  %v5416_v23 = vld [vmem:[%s7566_s28 + $0x110] sm:$0xf0]  ;;  %v5422_v24 = vld [vmem:[%s7566_s28 + $0x108] sm:$0xf]  ;;  %v7774_v27 = vor.u32 %v6891_v16, %v5414_v15  ;;  %s5281_s18 = sshll.u32 %s515_s27, 3 }
  0x4d   : > { %5749 = vmatmul.msk.bf16.gmra.mxu3 %vm1214_vm0, %v7609_v40  ;;  %10081 = vst [vmem:[#allocation14_spill] sm:$0xff] %v7749_v6  ;;  %v6892_v26 = vld [vmem:[%s7566_s28 + $0x114] sm:$0xf0]  ;;  %v7776_v30 = vor.u32 %v6889_v18, %v5416_v23  ;;  %v6894_v43 = vld [vmem:[%s7566_s28 + $0x12c] sm:$0xf]  ;;  %s5217_s17 = sshll.u32 %s5213_s26, 4  ;;  %s5218_s17 = int_to_ptr.hbm [resolvable:$true] %s5217_s17 }
  0x4e   : > { %10082 = vst [vmem:[#allocation15_spill] sm:$0xff] %v7756_v13  ;;  %v7779_v39 = vor.u32 %v6892_v26, %v5422_v24  ;;  %v5440_v44 = vld [vmem:[%s7566_s28 + $0x138] sm:$0xf0]  ;;  %v5430_v2 = vld [vmem:[%s7566_s28 + $0x120] sm:$0xf]  ;;  %s5203_s24 = scalar_lea.sflag [#allocation3], %s515_s27 }
  0x4f   : > { %10083 = vst [vmem:[#allocation16_spill] sm:$0xff] %v7761_v14  ;;  %v7786_v58 = vor.u32 %v6894_v43, %v5440_v44  ;;  %v6895_v3 = vld [vmem:[%s7566_s28 + $0x12c] sm:$0xf0]  ;;  %v6893_v10 = vld [vmem:[%s7566_s28 + $0x124] sm:$0xf]  ;;  %s7217_s25 = sshra.s32 %s5218_s17, 4  ;;  %s7218_s25 = int_to_ptr.hbm [resolvable:$true] %s7217_s25 }
  0x50   : > { %10084 = vst [vmem:[#allocation17_spill] sm:$0xff] %v7774_v27  ;;  %v5432_v11 = vld [vmem:[%s7566_s28 + $0x130] sm:$0xf0]  ;;  %v5438_v15 = vld [vmem:[%s7566_s28 + $0x128] sm:$0xf]  ;;  %v7797_v18 = vor.u32 %v6895_v3, %v5430_v2  ;;  %p7224_p0 = scmp.lt.s32.totalorder %s7218_s25, %s10028_s16 }
  0x51   : > { %10085 = vst [vmem:[#allocation18_spill] sm:$0xff] %v7776_v30  ;;  %v6896_v16 = vld [vmem:[%s7566_s28 + $0x134] sm:$0xf0]  ;;  %v7799_v26 = vor.u32 %v6893_v10, %v5432_v11 }
  0x52   : > { %1270 = vmatmul.bf16.gmra.mxu0 %v7619_v47  ;;  %10086 = vst [vmem:[#allocation19_spill] sm:$0xff] %v7779_v39 }
  0x53   : > { %1349 = vmatmul.bf16.gmra.mxu1 %v7621_v48  ;;  %10087 = vst [vmem:[#allocation20_spill] sm:$0xff] %v7786_v58 }
  0x54   : > { %1428 = vmatmul.bf16.gmra.mxu2 %v7623_v49  ;;  %10088 = vst [vmem:[#allocation21_spill] sm:$0xff] %v7797_v18 }
  0x55   : > { %10089 = vst [vmem:[#allocation22_spill] sm:$0xff] %v7799_v26 }
  0x5d   : > { %5750 = vmatmul.msk.bf16.gmra.mxu3 %vm1214_vm0, %v7630_v52 }
  0x62   : > { %1275 = vmatmul.bf16.gmra.mxu0 %v7640_v59 }
  0x63   : > { %1354 = vmatmul.bf16.gmra.mxu1 %v7642_v60 }
  0x64   : > { %1433 = vmatmul.bf16.gmra.mxu2 %v7644_v61 }
  0x6d   : > { %5751 = vmatmul.msk.bf16.gmra.mxu3 %vm1214_vm0, %v7651_v0 }
  0x72   : > { %1280 = vmatmul.bf16.gmra.mxu0 %v7661_v7 }
  0x73   : > { %1359 = vmatmul.bf16.gmra.mxu1 %v7663_v8 }
  0x74   : > { %1438 = vmatmul.bf16.gmra.mxu2 %v7665_v9 }
  0x7d   : > { %5752 = vmatmul.msk.bf16.gmra.mxu3 %vm1214_vm0, %v7672_v12 }
  0x82   : > { %1285 = vmatmul.bf16.gmra.mxu0 %v7682_v19 }
  0x83   : > { %1364 = vmatmul.bf16.gmra.mxu1 %v7684_v21 }
  0x84   : > { %1443 = vmatmul.bf16.gmra.mxu2 %v7686_v22 }
  0x8d   : > { %5753 = vmatmul.msk.bf16.gmra.mxu3 %vm1214_vm0, %v7693_v25 }
  0x92   : > { %1290 = vmatmul.bf16.gmra.mxu0 %v7703_v32 }
  0x93   : > { %1369 = vmatmul.bf16.gmra.mxu1 %v7705_v33 }
  0x94   : > { %1448 = vmatmul.bf16.gmra.mxu2 %v7707_v34 }
  0x9d   : > { %5754 = vmatmul.msk.bf16.gmra.mxu3 %vm1214_vm0, %v7714_v41 }
  0xa2   : > { %1295 = vmatmul.bf16.gmra.mxu0 %v7724_v51 }
  0xa3   : > { %1374 = vmatmul.bf16.gmra.mxu1 %v7726_v53 }
  0xa4   : > { %1453 = vmatmul.bf16.gmra.mxu2 %v7728_v54 }
  0xad   : > { %5755 = vmatmul.msk.bf16.gmra.mxu3 %vm1214_vm0, %v7735_v57 }
  0xb2   : > { %1300 = vmatmul.bf16.gmra.mxu0 %v7745_v4 }
  0xb3   : > { %1379 = vmatmul.bf16.gmra.mxu1 %v7747_v5 }
  0xb4   : > { %1458 = vmatmul.bf16.gmra.mxu2 %v7749_v6 }
  0xbd   : > { %5756 = vmatmul.msk.bf16.gmra.mxu3 %vm1214_vm0, %v7756_v13 }
  0xbf   : > { %v1266_v29 = vpop.f32.mrf.mxu0 }
  0xc0   : > { %v1503_v28 = vpop.f32.mrf.mxu3  ;;  %v1267_v31 = vadd.f32 %v1266_v29, %v7768_v17  ;;  %v1345_v38 = vpop.f32.mrf.mxu1 }
  0xc2   : > { %v1346_v42 = vadd.f32 %v1345_v38, %v1267_v31  ;;  %1305 = vmatmul.bf16.gmra.mxu0 %v7774_v27  ;;  %v7801_v38 = vor.u32 %v6896_v16, %v5438_v15  ;;  %v6927_v16 = vld [vmem:[%s10076_s1 + $0x74] sm:$0xf] }
  0xc3   : > { %1384 = vmatmul.bf16.gmra.mxu1 %v7776_v30 }
  0xc4   : > { %1463 = vmatmul.bf16.gmra.mxu2 %v7779_v39  ;;  %10090 = vst [vmem:[#allocation23_spill] sm:$0xff] %v7801_v38 }
  0xc7   : > { %v1424_v45 = vpop.f32.mrf.mxu2  ;;  %v1268_v55 = vpop.f32.mrf.mxu0 }
  0xc8   : > { %v1505_v46 = vpop.f32.mrf.mxu3  ;;  %v1425_v50 = vadd.f32 %v1424_v45, %v1346_v42  ;;  %v1347_v56 = vpop.f32.mrf.mxu1  ;;  %v1269_v62 = vadd.f32 %v1268_v55, %v7768_v17  ;;  %v6898_v55 = vld [vmem:[%s7566_s28 + $0x14c] sm:$0xf] }
  0xca   : > { %v1504_v63 = vadd.f32 %v1503_v28, %v1425_v50  ;;  %v1348_v1 = vadd.f32 %v1347_v56, %v1269_v62  ;;  %v5456_v56 = vld [vmem:[%s7566_s28 + $0x158] sm:$0xf0] }
  0xcb   : > { %v7811_v11 = vor.u32 %v6898_v55, %v5456_v56  ;;  %v6925_v55 = vld [vmem:[%s10076_s1 + $0x64] sm:$0xf]  ;;  %v5560_v56 = vld [vmem:[%s10076_s1 + $0x68] sm:$0xf0] }
  0xcc   : > { %v1889_v45 = vmax.f32 %v1504_v63, 0.0 }
  0xcd   : > { %5757 = vmatmul.msk.bf16.gmra.mxu3 %vm1214_vm0, %v7786_v58  ;;  %10091 = vst [vmem:[#allocation24_spill] sm:$0xff] %v7811_v11  ;;  %v6903_v58 = vld [vmem:[%s7566_s28 + $0x16c] sm:$0xf0] }
  0xcf   : > { %v1426_v23 = vpop.f32.mrf.mxu2  ;;  %v1271_v28 = vpop.f32.mrf.mxu0 }
  0xd0   : > { %v1508_v24 = vpop.f32.mrf.mxu3  ;;  %v1427_v29 = vadd.f32 %v1426_v23, %v1348_v1  ;;  %v1350_v31 = vpop.f32.mrf.mxu1  ;;  %v1272_v42 = vadd.f32 %v1271_v28, %v7768_v17  ;;  %v5568_v23 = vld [vmem:[%s10076_s1 + $0x78] sm:$0xf0]  ;;  %v5446_v28 = vld [vmem:[%s7566_s28 + $0x140] sm:$0xf] }
  0xd2   : > { %v1506_v43 = vadd.f32 %v1505_v46, %v1427_v29  ;;  %1310 = vmatmul.bf16.gmra.mxu0 %v7797_v18  ;;  %v1351_v44 = vadd.f32 %v1350_v31, %v1272_v42  ;;  %v6899_v31 = vld [vmem:[%s7566_s28 + $0x14c] sm:$0xf0]  ;;  %v5571_v42 = vor.u32 %v6927_v16, %v5568_v23 }
  0xd3   : > { %1389 = vmatmul.bf16.gmra.mxu1 %v7799_v26  ;;  %v6901_v26 = vld [vmem:[%s7566_s28 + $0x164] sm:$0xf] }
  0xd4   : > { %v1891_v50 = vmax.f32 %v1506_v43, 0.0  ;;  %1468 = vmatmul.bf16.gmra.mxu2 %v7801_v38  ;;  %v6897_v43 = vld [vmem:[%s7566_s28 + $0x144] sm:$0xf]  ;;  %1573 = vmatpush.bf16.msrb.mxu3 %v5571_v42 }
  0xd6   : > { %v7809_v62 = vpack.c.bf16 %v1891_v50, %v1889_v45  ;;  %v5454_v45 = vld [vmem:[%s7566_s28 + $0x148] sm:$0xf]  ;;  %v6900_v50 = vld [vmem:[%s7566_s28 + $0x154] sm:$0xf0] }
  0xd7   : > { %v1429_v1 = vpop.f32.mrf.mxu2  ;;  %v1273_v3 = vpop.f32.mrf.mxu0 }
  0xd8   : > { %v1510_v2 = vpop.f32.mrf.mxu3  ;;  %v1430_v46 = vadd.f32 %v1429_v1, %v1351_v44  ;;  %v1352_v10 = vpop.f32.mrf.mxu1  ;;  %v1274_v63 = vadd.f32 %v1273_v3, %v7768_v17  ;;  %v5448_v44 = vld [vmem:[%s7566_s28 + $0x150] sm:$0xf0] }
  0xd9   : > { %v7836_v3 = vor.u32 %v6897_v43, %v5448_v44  ;;  %v6923_v43 = vld [vmem:[%s10076_s1 + $0x54] sm:$0xf] }
  0xda   : > { %v1509_v15 = vadd.f32 %v1508_v24, %v1430_v46  ;;  %v1353_v29 = vadd.f32 %v1352_v10, %v1274_v63  ;;  %v7828_v24 = vor.u32 %v6899_v31, %v5446_v28  ;;  %v5563_v10 = vor.u32 %v6925_v55, %v5560_v56  ;;  %v6943_v44 = vld [vmem:[%s10076_s1 + $0xf4] sm:$0xf]  ;;  %v5632_v55 = vld [vmem:[%s10076_s1 + $0xf8] sm:$0xf0] }
  0xdb   : > { %10093 = vst [vmem:[#allocation26_spill] sm:$0xff] %v7836_v3  ;;  %v6959_v56 = vld [vmem:[%s10076_s1 + $0x174] sm:$0xf] }
  0xdc   : > { %10092 = vst [vmem:[#allocation25_spill] sm:$0xff] %v7828_v24  ;;  %1574 = vmatpush.bf16.msrb.mxu3 %v5563_v10  ;;  %v5472_v10 = vld [vmem:[%s7566_s28 + $0x178] sm:$0xf0] }
  0xdd   : > { %5758 = vmatmul.msk.bf16.gmra.mxu3 %vm1214_vm0, %v7811_v11  ;;  %v7838_v11 = vor.u32 %v6900_v50, %v5454_v45  ;;  %v1893_v45 = vmax.f32 %v1509_v15, 0.0 }
  0xdf   : > { %v1431_v1 = vpop.f32.mrf.mxu2  ;;  %v1276_v16 = vpop.f32.mrf.mxu0  ;;  %10094 = vst [vmem:[#allocation27_spill] sm:$0xff] %v7838_v11 }
  0xe0   : > { %v1513_v46 = vpop.f32.mrf.mxu3  ;;  %v1432_v63 = vadd.f32 %v1431_v1, %v1353_v29  ;;  %v1355_v23 = vpop.f32.mrf.mxu1  ;;  %v1277_v28 = vadd.f32 %v1276_v16, %v7768_v17  ;;  %v5552_v29 = vld [vmem:[%s10076_s1 + $0x58] sm:$0xf0]  ;;  %v6902_v1 = vld [vmem:[%s7566_s28 + $0x16c] sm:$0xf] }
  0xe1   : > { %v5696_v16 = vld [vmem:[%s10076_s1 + $0x178] sm:$0xf0] }
  0xe2   : > { %v1511_v31 = vadd.f32 %v1510_v2, %v1432_v63  ;;  %1315 = vmatmul.bf16.gmra.mxu0 %v7828_v24  ;;  %v1356_v42 = vadd.f32 %v1355_v23, %v1277_v28  ;;  %v5555_v2 = vor.u32 %v6923_v43, %v5552_v29  ;;  %v5635_v63 = vor.u32 %v6943_v44, %v5632_v55  ;;  %v6921_v23 = vld [vmem:[%s10076_s1 + $0x44] sm:$0xf]  ;;  %v5544_v28 = vld [vmem:[%s10076_s1 + $0x48] sm:$0xf0]  ;;  %v5462_v24 = vld [vmem:[%s7566_s28 + $0x160] sm:$0xf] }
  0xe3   : > { %1394 = vmatmul.bf16.gmra.mxu1 %v7836_v3  ;;  %v5699_v15 = vor.u32 %v6959_v56, %v5696_v16  ;;  %v5624_v55 = vld [vmem:[%s10076_s1 + $0xe8] sm:$0xf0]  ;;  %v6957_v56 = vld [vmem:[%s10076_s1 + $0x164] sm:$0xf]  ;;  %v7886_v3 = vor.u32 %v6902_v1, %v5472_v10  ;;  %v5536_v1 = vld [vmem:[%s10076_s1 + $0x38] sm:$0xf0] }
  0xe4   : > { %v1895_v50 = vmax.f32 %v1511_v31, 0.0  ;;  %1473 = vmatmul.bf16.gmra.mxu2 %v7838_v11  ;;  %1575 = vmatpush.bf16.msrb.mxu3 %v5555_v2  ;;  %v6941_v31 = vld [vmem:[%s10076_s1 + $0xe4] sm:$0xf]  ;;  %v5547_v2 = vor.u32 %v6921_v23, %v5544_v28  ;;  %v6939_v10 = vld [vmem:[%s10076_s1 + $0xd4] sm:$0xf] }
  0xe5   : > { %1652 = vmatpush.bf16.msrb.mxu0 %v5635_v63  ;;  %10095 = vst [vmem:[#allocation28_spill] sm:$0xff] %v7886_v3  ;;  %1731 = vmatpush.bf16.msrb.mxu1 %v5699_v15  ;;  %v5627_v63 = vor.u32 %v6941_v31, %v5624_v55  ;;  %v5616_v31 = vld [vmem:[%s10076_s1 + $0xd8] sm:$0xf0]  ;;  %v5464_v55 = vld [vmem:[%s7566_s28 + $0x170] sm:$0xf0] }
  0xe6   : > { %v7873_v43 = vpack.c.bf16 %v1895_v50, %v1893_v45  ;;  %v5688_v45 = vld [vmem:[%s10076_s1 + $0x168] sm:$0xf0] }
  0xe7   : > { %v1434_v29 = vpop.f32.mrf.mxu2  ;;  %v1278_v16 = vpop.f32.mrf.mxu0  ;;  %v5691_v23 = vor.u32 %v6957_v56, %v5688_v45  ;;  %v6971_v45 = vld [vmem:[%s10076_s1 + $0x1d4] sm:$0xf] }
  0xe8   : > { %v7875_v44 = vpop.f32.mrf.mxu3  ;;  %v1435_v50 = vadd.f32 %v1434_v29, %v1356_v42  ;;  %v1357_v11 = vpop.f32.mrf.mxu1  ;;  %v1279_v28 = vadd.f32 %v1278_v16, %v7768_v17  ;;  %1576 = vmatpush.bf16.msrb.mxu3 %v5547_v2  ;;  %v6919_v42 = vld [vmem:[%s10076_s1 + $0x34] sm:$0xf]  ;;  %v5680_v2 = vld [vmem:[%s10076_s1 + $0x158] sm:$0xf0]  ;;  %v5470_v16 = vld [vmem:[%s7566_s28 + $0x168] sm:$0xf] }
  0xe9   : > { %1653 = vmatpush.bf16.msrb.mxu0 %v5627_v63  ;;  %v6955_v29 = vld [vmem:[%s10076_s1 + $0x154] sm:$0xf]  ;;  %1732 = vmatpush.bf16.msrb.mxu1 %v5691_v23  ;;  %v6904_v63 = vld [vmem:[%s7566_s28 + $0x174] sm:$0xf0]  ;;  %v6917_v23 = vld [vmem:[%s10076_s1 + $0x24] sm:$0xf] }
  0xea   : > { %v7891_v38 = vadd.f32 %v1513_v46, %v1435_v50  ;;  %v1358_v15 = vadd.f32 %v1357_v11, %v1279_v28  ;;  %v5539_v46 = vor.u32 %v6919_v42, %v5536_v1  ;;  %v5619_v11 = vor.u32 %v6939_v10, %v5616_v31  ;;  %v5744_v50 = vld [vmem:[%s10076_s1 + $0x1d8] sm:$0xf0]  ;;  %v5528_v1 = vld [vmem:[%s10076_s1 + $0x28] sm:$0xf0]  ;;  %v6937_v10 = vld [vmem:[%s10076_s1 + $0xc4] sm:$0xf] }
  0xeb   : > { %v5683_v56 = vor.u32 %v6955_v29, %v5680_v2  ;;  %v5747_v28 = vor.u32 %v6971_v45, %v5744_v50  ;;  %v7923_v42 = vor.u32 %v6903_v58, %v5462_v24  ;;  %v7936_v2 = vor.u32 %v6901_v26, %v5464_v55  ;;  %v5608_v24 = vld [vmem:[%s10076_s1 + $0xc8] sm:$0xf0] }
  0xec   : > { %1577 = vmatpush.bf16.msrb.mxu3 %v5539_v46  ;;  %v5531_v58 = vor.u32 %v6917_v23, %v5528_v1  ;;  %v6953_v46 = vld [vmem:[%s10076_s1 + $0x144] sm:$0xf]  ;;  %v5672_v45 = vld [vmem:[%s10076_s1 + $0x148] sm:$0xf0]  ;;  %v7947_v55 = vor.u32 %v6904_v63, %v5470_v16  ;;  %v5488_v63 = vld [vmem:[%s7566_s28 + $0x198] sm:$0xf0] }
  0xed   : > { %5759 = vmatmul.msk.bf16.gmra.mxu3 %vm1214_vm0, %v7886_v3  ;;  %10096 = vst [vmem:[#allocation29_spill] sm:$0xff] %v7923_v42  ;;  %1654 = vmatpush.bf16.msrb.mxu0 %v5619_v11  ;;  %v5611_v11 = vor.u32 %v6937_v10, %v5608_v24  ;;  %v6969_v23 = vld [vmem:[%s10076_s1 + $0x1c4] sm:$0xf]  ;;  %v5736_v1 = vld [vmem:[%s10076_s1 + $0x1c8] sm:$0xf0] }
  0xee   : > { %10097 = vst [vmem:[#allocation30_spill] sm:$0xff] %v7936_v2  ;;  %1812 = vmatpush.bf16.msrb.mxu2 %v5747_v28  ;;  %1733 = vmatpush.bf16.msrb.mxu1 %v5683_v56  ;;  %v5675_v28 = vor.u32 %v6953_v46, %v5672_v45  ;;  %v6906_v56 = vld [vmem:[%s7566_s28 + $0x18c] sm:$0xf]  ;;  %v6915_v10 = vld [vmem:[%s10076_s1 + $0x14] sm:$0xf] }
  0xef   : > { %v1436_v31 = vpop.f32.mrf.mxu2  ;;  %v1281_v3 = vpop.f32.mrf.mxu0  ;;  %10098 = vst [vmem:[#allocation31_spill] sm:$0xff] %v7947_v55  ;;  %v5600_v46 = vld [vmem:[%s10076_s1 + $0xb8] sm:$0xf0]  ;;  %v6951_v45 = vld [vmem:[%s10076_s1 + $0x134] sm:$0xf] }
  0xf0   : > { %v7934_v29 = vpop.f32.mrf.mxu3  ;;  %v1437_v50 = vadd.f32 %v1436_v31, %v1358_v15  ;;  %v1360_v26 = vpop.f32.mrf.mxu1  ;;  %v1282_v18 = vadd.f32 %v1281_v3, %v7768_v17  ;;  %v5739_v15 = vor.u32 %v6969_v23, %v5736_v1  ;;  %1578 = vmatpush.bf16.msrb.mxu3 %v5531_v58  ;;  %v5520_v3 = vld [vmem:[%s10076_s1 + $0x18] sm:$0xf0]  ;;  %v1897_v58 = vmax.f32 %v7891_v38, 0.0  ;;  %v6967_v38 = vld [vmem:[%s10076_s1 + $0x1b4] sm:$0xf] }
  0xf1   : > { %1655 = vmatpush.bf16.msrb.mxu0 %v5611_v11  ;;  %v5523_v24 = vor.u32 %v6915_v10, %v5520_v3  ;;  %v5728_v11 = vld [vmem:[%s10076_s1 + $0x1b8] sm:$0xf0]  ;;  %v6913_v1 = vld [vmem:[%s10076_s1 + $0x4] sm:$0xf] }
  0xf2   : > { %v1516_v31 = vadd.f32 %v7875_v44, %v1437_v50  ;;  %1320 = vmatmul.bf16.gmra.mxu0 %v7923_v42  ;;  %v1361_v16 = vadd.f32 %v1360_v26, %v1282_v18  ;;  %v6935_v44 = vld [vmem:[%s10076_s1 + $0xb4] sm:$0xf]  ;;  %1734 = vmatpush.bf16.msrb.mxu1 %v5675_v28  ;;  %v5664_v26 = vld [vmem:[%s10076_s1 + $0x138] sm:$0xf0]  ;;  %v5731_v23 = vor.u32 %v6967_v38, %v5728_v11  ;;  %v5478_v42 = vld [vmem:[%s7566_s28 + $0x180] sm:$0xf] }
  0xf3   : > { %1399 = vmatmul.bf16.gmra.mxu1 %v7936_v2  ;;  %1813 = vmatpush.bf16.msrb.mxu2 %v5739_v15  ;;  %v5603_v50 = vor.u32 %v6935_v44, %v5600_v46  ;;  %v5667_v28 = vor.u32 %v6951_v45, %v5664_v26  ;;  %v5512_v15 = vld [vmem:[%s10076_s1 + $0x8] sm:$0xf0]  ;;  %v6949_v45 = vld [vmem:[%s10076_s1 + $0x124] sm:$0xf]  ;;  %v8007_v11 = vor.u32 %v6906_v56, %v5488_v63 }
  0xf4   : > { %v1899_v18 = vmax.f32 %v1516_v31, 0.0  ;;  %1478 = vmatmul.bf16.gmra.mxu2 %v7947_v55  ;;  %1579 = vmatpush.bf16.msrb.mxu3 %v5523_v24  ;;  %v6933_v31 = vld [vmem:[%s10076_s1 + $0xa4] sm:$0xf]  ;;  %v5515_v24 = vor.u32 %v6913_v1, %v5512_v15  ;;  %v5592_v46 = vld [vmem:[%s10076_s1 + $0xa8] sm:$0xf0] }
  0xf5   : > { %1656 = vmatpush.bf16.msrb.mxu0 %v5603_v50  ;;  %v5656_v26 = vld [vmem:[%s10076_s1 + $0x128] sm:$0xf0]  ;;  %10099 = vst [vmem:[#allocation32_spill] sm:$0xff] %v8007_v11  ;;  %v5595_v50 = vor.u32 %v6933_v31, %v5592_v46  ;;  %v6965_v15 = vld [vmem:[%s10076_s1 + $0x1a4] sm:$0xf] }
  0xf6   : > { %v7996_v10 = vpack.c.bf16 %v1899_v18, %v1897_v58  ;;  %1735 = vmatpush.bf16.msrb.mxu1 %v5667_v28  ;;  %v5659_v1 = vor.u32 %v6949_v45, %v5656_v26  ;;  %v5720_v55 = vld [vmem:[%s10076_s1 + $0x1a8] sm:$0xf0]  ;;  %v6931_v28 = vld [vmem:[%s10076_s1 + $0x94] sm:$0xf]  ;;  %v5584_v31 = vld [vmem:[%s10076_s1 + $0x98] sm:$0xf0] }
  0xf7   : > { %v1439_v3 = vpop.f32.mrf.mxu2  ;;  %v1283_v18 = vpop.f32.mrf.mxu0  ;;  %1814 = vmatpush.bf16.msrb.mxu2 %v5731_v23  ;;  %v5723_v56 = vor.u32 %v6965_v15, %v5720_v55  ;;  %v5587_v55 = vor.u32 %v6931_v28, %v5584_v31  ;;  %v6963_v23 = vld [vmem:[%s10076_s1 + $0x194] sm:$0xf]  ;;  %v6905_v45 = vld [vmem:[%s7566_s28 + $0x184] sm:$0xf]  ;;  %v5576_v28 = vld [vmem:[%s10076_s1 + $0x88] sm:$0xf0] }
  0xf8   : > { %v1520_v44 = vpop.f32.mrf.mxu3  ;;  %v1440_v58 = vadd.f32 %v1439_v3, %v1361_v16  ;;  %v1362_v38 = vpop.f32.mrf.mxu1  ;;  %v1284_v2 = vadd.f32 %v1283_v18, %v7768_v17  ;;  %v6907_v16 = vld [vmem:[%s7566_s28 + $0x18c] sm:$0xf0]  ;;  %1580 = vmatpush.bf16.msrb.mxu3 %v5515_v24  ;;  %v6947_v3 = vld [vmem:[%s10076_s1 + $0x114] sm:$0xf]  ;;  %v5712_v24 = vld [vmem:[%s10076_s1 + $0x198] sm:$0xf0] }
  0xf9   : > { %1657 = vmatpush.bf16.msrb.mxu0 %v5595_v50  ;;  %v5480_v26 = vld [vmem:[%s7566_s28 + $0x190] sm:$0xf0]  ;;  %v6908_v18 = vld [vmem:[%s7566_s28 + $0x194] sm:$0xf0]  ;;  %v8043_v50 = vor.u32 %v6907_v16, %v5478_v42  ;;  %v6929_v15 = vld [vmem:[%s10076_s1 + $0x84] sm:$0xf] }
  0xfa   : > { %v1519_v63 = vadd.f32 %v7934_v29, %v1440_v58  ;;  %v1363_v46 = vadd.f32 %v1362_v38, %v1284_v2  ;;  %v5648_v29 = vld [vmem:[%s10076_s1 + $0x118] sm:$0xf0]  ;;  %1736 = vmatpush.bf16.msrb.mxu1 %v5659_v1  ;;  %v5486_v58 = vld [vmem:[%s7566_s28 + $0x188] sm:$0xf]  ;;  %v5715_v38 = vor.u32 %v6963_v23, %v5712_v24  ;;  %v6945_v31 = vld [vmem:[%s10076_s1 + $0x104] sm:$0xf] }
  0xfb   : > { %v5651_v2 = vor.u32 %v6947_v3, %v5648_v29  ;;  %1815 = vmatpush.bf16.msrb.mxu2 %v5723_v56  ;;  %10100 = vst [vmem:[#allocation33_spill] sm:$0xff] %v8043_v50  ;;  %v8054_v29 = vor.u32 %v6905_v45, %v5480_v26  ;;  %v5579_v56 = vor.u32 %v6929_v15, %v5576_v28  ;;  %v5640_v42 = vld [vmem:[%s10076_s1 + $0x108] sm:$0xf0]  ;;  %v6961_v16 = vld [vmem:[%s10076_s1 + $0x184] sm:$0xf] }
  0xfc   : > { %v5704_v23 = vld [vmem:[%s10076_s1 + $0x188] sm:$0xf0]  ;;  %v8065_v45 = vor.u32 %v6908_v18, %v5486_v58  ;;  %s7219_s1 = scalar_lea.hbm %s7218_s25, 8 }
  0xfd   : > { %5760 = vmatmul.msk.bf16.gmra.mxu3 %vm1214_vm0, %v8007_v11  ;;  %10101 = vst [vmem:[#allocation34_spill] sm:$0xff] %v8054_v29  ;;  %1658 = vmatpush.bf16.msrb.mxu0 %v5587_v55  ;;  %v5643_v55 = vor.u32 %v6945_v31, %v5640_v42  ;;  %v5707_v15 = vor.u32 %v6961_v16, %v5704_v23  ;;  %v5494_v16 = vld [vmem:[%s7566_s28 + $0x1a0] sm:$0xf]  ;;  %v6911_v23 = vld [vmem:[%s7566_s28 + $0x1ac] sm:$0xf0]  ;;  %p7220_p11 = scmp.ne.s32.totalorder %s7218_s25, %s7219_s1  ;;  %p7225_p1 = scmp.lt.s32.totalorder %s7223_s20, %s7219_s1 }
  0xfe   : > { %10102 = vst [vmem:[#allocation35_spill] sm:$0xff] %v8065_v45  ;;  %1737 = vmatpush.bf16.msrb.mxu1 %v5651_v2  ;;  %v6910_v2 = vld [vmem:[%s7566_s28 + $0x1ac] sm:$0xf] }
  0xff   : > { %v1441_v1 = vpop.f32.mrf.mxu2  ;;  %v1286_v11 = vpop.f32.mrf.mxu0  ;;  %1816 = vmatpush.bf16.msrb.mxu2 %v5715_v38  ;;  %p7221_p12 = pnand %p7220_p11, %p7390_p5  ;;  %p7226_p2 = por %p7225_p1, %p7224_p0 }
 0x100   : > { %v1523_v3 = vpop.f32.mrf.mxu3  ;;  %v1442_v24 = vadd.f32 %v1441_v1, %v1363_v46  ;;  %v1365_v13 = vpop.f32.mrf.mxu1  ;;  %v1287_v26 = vadd.f32 %v1286_v11, %v7768_v17  ;;  %v1901_v46 = vmax.f32 %v1519_v63, 0.0  ;;  %v5504_v11 = vld [vmem:[%s7566_s28 + $0x1b8] sm:$0xf0] }
 0x101   : > { %1659 = vmatpush.bf16.msrb.mxu0 %v5579_v56  ;;  %v8075_v31 = vor.u32 %v6910_v2, %v5504_v11  ;;  %p7222_p13 = pneg %p7221_p12 }
 0x102   : > { %v1521_v28 = vadd.f32 %v1520_v44, %v1442_v24  ;;  %1325 = vmatmul.bf16.gmra.mxu0 %v8043_v50  ;;  %v1366_v39 = vadd.f32 %v1365_v13, %v1287_v26  ;;  %1738 = vmatpush.bf16.msrb.mxu1 %v5643_v55  ;;  %v6909_v24 = vld [vmem:[%s7566_s28 + $0x1a4] sm:$0xf]  ;;  %v5496_v55 = vld [vmem:[%s7566_s28 + $0x1b0] sm:$0xf0]  ;;  %v5502_v26 = vld [vmem:[%s7566_s28 + $0x1a8] sm:$0xf] }
 0x103   : > { %1404 = vmatmul.bf16.gmra.mxu1 %v8054_v29  ;;  %1817 = vmatpush.bf16.msrb.mxu2 %v5707_v15  ;;  %10103 = vst [vmem:[#allocation36_spill] sm:$0xff] %v8075_v31  ;;  %v6912_v15 = vld [vmem:[%s7566_s28 + $0x1b4] sm:$0xf0]  ;;  %v8090_v2 = vor.u32 %v6909_v24, %v5496_v55  ;;  %s517_s28 = scalar_lea.vmem [#allocation2], %s5281_s18  ;;  %p7227_p3 = pnand %p7226_p2, %p7222_p13 }
 0x104   : > { %v1903_v1 = vmax.f32 %v1521_v28, 0.0  ;;  %1483 = vmatmul.bf16.gmra.mxu2 %v8065_v45  ;;  %s5215_s21 = sshll.u32 %s517_s28, 4  ;;  %s5216_s21 = int_to_ptr.vmem [resolvable:$true] %s5215_s21 }
 0x105   : > { %10105 = vst [vmem:[#allocation38_spill] sm:$0xff] %v8090_v2 }
 0x106   : > { %v8073_v44 = vpack.c.bf16 %v1903_v1, %v1901_v46  ;;  %v8086_v46 = vor.u32 %v6911_v23, %v5494_v16 }
 0x107   : > { %v1444_v13 = vpop.f32.mrf.mxu2  ;;  %v1288_v38 = vpop.f32.mrf.mxu0 }
 0x108   : > { %v1525_v58 = vpop.f32.mrf.mxu3  ;;  %v1445_v18 = vadd.f32 %v1444_v13, %v1366_v39  ;;  %v1367_v63 = vpop.f32.mrf.mxu1  ;;  %v1289_v42 = vadd.f32 %v1288_v38, %v7768_v17  ;;  %10104 = vst [vmem:[#allocation37_spill] sm:$0xff] %v8086_v46 }
 0x10a   : > { %v1524_v56 = vadd.f32 %v1523_v3, %v1445_v18  ;;  %v1368_v28 = vadd.f32 %v1367_v63, %v1289_v42  ;;  %v8092_v18 = vor.u32 %v6912_v15, %v5502_v26 }
 0x10c   : > { %10106 = vst [vmem:[#allocation39_spill] sm:$0xff] %v8092_v18 }
 0x10d   : > { %5761 = vmatmul.msk.bf16.gmra.mxu3 %vm1214_vm0, %v8075_v31  ;;  %v1905_v31 = vmax.f32 %v1524_v56, 0.0 }
 0x10f   : > { %v1446_v39 = vpop.f32.mrf.mxu2  ;;  %v1291_v11 = vpop.f32.mrf.mxu0 }
 0x110   : > { %v8088_v1 = vpop.f32.mrf.mxu3  ;;  %v1447_v3 = vadd.f32 %v1446_v39, %v1368_v28  ;;  %v1370_v13 = vpop.f32.mrf.mxu1 }
 0x112   : > { %v1526_v38 = vadd.f32 %v1525_v58, %v1447_v3  ;;  %1330 = vmatmul.bf16.gmra.mxu0 %v8086_v46 }
 0x113   : > { %1409 = vmatmul.bf16.gmra.mxu1 %v8090_v2 }
 0x114   : > { %v1907_v45 = vmax.f32 %v1526_v38, 0.0  ;;  %1488 = vmatmul.bf16.gmra.mxu2 %v8092_v18 }
 0x116   : > { %v8097_v63 = vpack.c.bf16 %v1907_v45, %v1905_v31 }
 0x117   : > { %v1449_v42 = vpop.f32.mrf.mxu2  ;;  %v1293_v23 = vpop.f32.mrf.mxu0 }
 0x118   : > { %v1530_v16 = vpop.f32.mrf.mxu3  ;;  %v1372_v24 = vpop.f32.mrf.mxu1 }
 0x11d   : > { %1581 = vmatmul.bf16.vlgmr.msrb.gmra.mxu3 %v7598_v35 }
 0x11f   : > { %v1451_v55 = vpop.f32.mrf.mxu2  ;;  %v1296_v15 = vpop.f32.mrf.mxu0 }
 0x120   : > { %v1533_v26 = vpop.f32.mrf.mxu3  ;;  %v1375_v58 = vpop.f32.mrf.mxu1 }
 0x122   : > { %1660 = vmatmul.bf16.vlgmr.msrb.gmra.mxu0 %v7600_v36 }
 0x123   : > { %1739 = vmatmul.bf16.vlgmr.msrb.gmra.mxu1 %v7602_v37 }
 0x124   : > { %5762 = vmatmul.msk.bf16.vlgmr.msrb.gmra.mxu2 %vm1214_vm0, %v7576_v20 }
 0x127   : > { %v1454_v56 = vpop.f32.mrf.mxu2  ;;  %v1298_v31 = vpop.f32.mrf.mxu0 }
 0x128   : > { %v1535_v45 = vpop.f32.mrf.mxu3  ;;  %v1377_v28 = vpop.f32.mrf.mxu1  ;;  %v1299_v29 = vadd.f32 %v1298_v31, %v7768_v17 }
 0x12d   : > { %1586 = vmatmul.bf16.gmra.mxu3 %v7619_v47  ;;  %v1297_v47 = vadd.f32 %v1296_v15, %v7768_v17 }
 0x12f   : > { %v1456_v39 = vpop.f32.mrf.mxu2  ;;  %v1301_v35 = vpop.f32.mrf.mxu0 }
 0x130   : > { %v1538_v3 = vpop.f32.mrf.mxu3  ;;  %v1380_v38 = vpop.f32.mrf.mxu1  ;;  %v1302_v36 = vadd.f32 %v1301_v35, %v7768_v17  ;;  %v1376_v35 = vadd.f32 %v1375_v58, %v1297_v47 }
 0x132   : > { %1665 = vmatmul.bf16.gmra.mxu0 %v7621_v48  ;;  %v1381_v18 = vadd.f32 %v1380_v38, %v1302_v36  ;;  %v1292_v48 = vadd.f32 %v1291_v11, %v7768_v17 }
 0x133   : > { %1744 = vmatmul.bf16.gmra.mxu1 %v7623_v49  ;;  %v1294_v49 = vadd.f32 %v1293_v23, %v7768_v17 }
 0x134   : > { %5763 = vmatmul.msk.bf16.gmra.mxu2 %vm1214_vm0, %v7609_v40  ;;  %v1378_v40 = vadd.f32 %v1377_v28, %v1299_v29  ;;  %v1371_v31 = vadd.f32 %v1370_v13, %v1292_v48 }
 0x135   : > { %v1373_v4 = vadd.f32 %v1372_v24, %v1294_v49 }
 0x136   : > { %v1457_v27 = vadd.f32 %v1456_v39, %v1378_v40 }
 0x137   : > { %v1459_v20 = vpop.f32.mrf.mxu2  ;;  %v1303_v2 = vpop.f32.mrf.mxu0  ;;  %v1452_v11 = vadd.f32 %v1451_v55, %v1373_v4 }
 0x138   : > { %v1540_v37 = vpop.f32.mrf.mxu3  ;;  %v1382_v46 = vpop.f32.mrf.mxu1  ;;  %v1304_v50 = vadd.f32 %v1303_v2, %v7768_v17  ;;  %v1460_v30 = vadd.f32 %v1459_v20, %v1381_v18  ;;  %v1455_v2 = vadd.f32 %v1454_v56, %v1376_v35  ;;  %v1536_v23 = vadd.f32 %v1535_v45, %v1457_v27 }
 0x139   : > { %v1531_v13 = vadd.f32 %v1530_v16, %v1452_v11 }
 0x13a   : > { %v1383_v14 = vadd.f32 %v1382_v46, %v1304_v50  ;;  %v1539_v57 = vadd.f32 %v1538_v3, %v1460_v30  ;;  %v1534_v30 = vadd.f32 %v1533_v26, %v1455_v2  ;;  %v1915_v24 = vmax.f32 %v1536_v23, 0.0 }
 0x13b   : > { %v1911_v55 = vmax.f32 %v1531_v13, 0.0 }
 0x13c   : > { %v1917_v50 = vmax.f32 %v1539_v57, 0.0  ;;  %v1913_v27 = vmax.f32 %v1534_v30, 0.0 }
 0x13d   : > { %1591 = vmatmul.bf16.gmra.mxu3 %v7640_v59 }
 0x13f   : > { %v1461_v38 = vpop.f32.mrf.mxu2  ;;  %v1306_v15 = vpop.f32.mrf.mxu0 }
 0x140   : > { %v1543_v36 = vpop.f32.mrf.mxu3  ;;  %v1462_v6 = vadd.f32 %v1461_v38, %v1383_v14  ;;  %v1385_v5 = vpop.f32.mrf.mxu1  ;;  %v1307_v18 = vadd.f32 %v1306_v15, %v7768_v17  ;;  %v1450_v14 = vadd.f32 %v1449_v42, %v1371_v31 }
 0x142   : > { %v1541_v59 = vadd.f32 %v1540_v37, %v1462_v6  ;;  %1670 = vmatmul.bf16.gmra.mxu0 %v7642_v60  ;;  %v1386_v58 = vadd.f32 %v1385_v5, %v1307_v18  ;;  %v1529_v5 = vadd.f32 %v8088_v1, %v1450_v14 }
 0x143   : > { %1749 = vmatmul.bf16.gmra.mxu1 %v7644_v61 }
 0x144   : > { %v1919_v29 = vmax.f32 %v1541_v59, 0.0  ;;  %5764 = vmatmul.msk.bf16.gmra.mxu2 %vm1214_vm0, %v7630_v52  ;;  %v1957_v52 = vpack.c.bf16 %v1915_v24, %v1913_v27  ;;  %v1909_v42 = vmax.f32 %v1529_v5, 0.0 }
 0x146   : > { %v1959_v46 = vpack.c.bf16 %v1919_v29, %v1917_v50  ;;  %v1955_v39 = vpack.c.bf16 %v1911_v55, %v1909_v42 }
 0x147   : > { %v1464_v56 = vpop.f32.mrf.mxu2  ;;  %v1308_v60 = vpop.f32.mrf.mxu0 }
 0x148   : > { %v1545_v28 = vpop.f32.mrf.mxu3  ;;  %v1465_v6 = vadd.f32 %v1464_v56, %v1386_v58  ;;  %2071 = vmatpush.bf16.msra.mxu3 %v1959_v46  ;;  %v1387_v4 = vpop.f32.mrf.mxu1  ;;  %v1309_v61 = vadd.f32 %v1308_v60, %v7768_v17 }
 0x14a   : > { %v1544_v57 = vadd.f32 %v1543_v36, %v1465_v6  ;;  %v1388_v45 = vadd.f32 %v1387_v4, %v1309_v61 }
 0x14c   : > { %2072 = vmatpush.bf16.msra.mxu3 %v1957_v52  ;;  %v1921_v49 = vmax.f32 %v1544_v57, 0.0 }
 0x14d   : > { %1596 = vmatmul.bf16.gmra.mxu3 %v7661_v7 }
 0x14f   : > { %v1466_v16 = vpop.f32.mrf.mxu2  ;;  %v1311_v20 = vpop.f32.mrf.mxu0 }
 0x150   : > { %v1548_v26 = vpop.f32.mrf.mxu3  ;;  %v1467_v3 = vadd.f32 %v1466_v16, %v1388_v45  ;;  %v1390_v37 = vpop.f32.mrf.mxu1  ;;  %2073 = vmatpush.bf16.msra.mxu3 %v1955_v39  ;;  %v1312_v1 = vadd.f32 %v1311_v20, %v7768_v17 }
 0x152   : > { %v1546_v47 = vadd.f32 %v1545_v28, %v1467_v3  ;;  %1675 = vmatmul.bf16.gmra.mxu0 %v7663_v8  ;;  %v1391_v48 = vadd.f32 %v1390_v37, %v1312_v1  ;;  %v10108_v1 = vld [vmem:[#allocation13_spill] sm:$0xff] }
 0x153   : > { %1754 = vmatmul.bf16.gmra.mxu1 %v7665_v9 }
 0x154   : > { %v1923_v35 = vmax.f32 %v1546_v47, 0.0  ;;  %5765 = vmatmul.msk.bf16.gmra.mxu2 %vm1214_vm0, %v7651_v0  ;;  %2074 = vmatpush.bf16.msra.mxu3 %v8097_v63 }
 0x156   : > { %v8130_v7 = vpack.c.bf16 %v1923_v35, %v1921_v49 }
 0x157   : > { %v1469_v40 = vpop.f32.mrf.mxu2  ;;  %v1313_v15 = vpop.f32.mrf.mxu0 }
 0x158   : > { %v1550_v38 = vpop.f32.mrf.mxu3  ;;  %v1470_v36 = vadd.f32 %v1469_v40, %v1391_v48  ;;  %v1392_v31 = vpop.f32.mrf.mxu1  ;;  %2075 = vmatpush.bf16.msra.mxu3 %v8073_v44  ;;  %v1314_v8 = vadd.f32 %v1313_v15, %v7768_v17 }
 0x15a   : > { %v1549_v2 = vadd.f32 %v1548_v26, %v1470_v36  ;;  %v1393_v9 = vadd.f32 %v1392_v31, %v1314_v8 }
 0x15c   : > { %2076 = vmatpush.bf16.msra.mxu3 %v7996_v10  ;;  %v1925_v14 = vmax.f32 %v1549_v2, 0.0 }
 0x15d   : > { %1601 = vmatmul.bf16.gmra.mxu3 %v7682_v19 }
 0x15f   : > { %v1471_v0 = vpop.f32.mrf.mxu2  ;;  %v1316_v11 = vpop.f32.mrf.mxu0 }
 0x160   : > { %v1553_v18 = vpop.f32.mrf.mxu3  ;;  %v1472_v59 = vadd.f32 %v1471_v0, %v1393_v9  ;;  %v1395_v23 = vpop.f32.mrf.mxu1  ;;  %2077 = vmatpush.bf16.msra.mxu3 %v7873_v43  ;;  %v1317_v58 = vadd.f32 %v1316_v11, %v7768_v17  ;;  %v10111_v0 = vld [vmem:[#allocation17_spill] sm:$0xff] }
 0x162   : > { %v1551_v50 = vadd.f32 %v1550_v38, %v1472_v59  ;;  %1680 = vmatmul.bf16.gmra.mxu0 %v7684_v21  ;;  %v1396_v29 = vadd.f32 %v1395_v23, %v1317_v58 }
 0x163   : > { %1759 = vmatmul.bf16.gmra.mxu1 %v7686_v22 }
 0x164   : > { %v1927_v30 = vmax.f32 %v1551_v50, 0.0  ;;  %5766 = vmatmul.msk.bf16.gmra.mxu2 %vm1214_vm0, %v7672_v12  ;;  %2078 = vmatpush.bf16.msra.mxu3 %v7809_v62 }
 0x166   : > { %v8143_v19 = vpack.c.bf16 %v1927_v30, %v1925_v14 }
 0x167   : > { %v1474_v13 = vpop.f32.mrf.mxu2  ;;  %v1318_v28 = vpop.f32.mrf.mxu0 }
 0x168   : > { %2346 = vmatpush.bf16.msrb.mxu3 %v1959_v46  ;;  %v1555_v24 = vpop.f32.mrf.mxu3  ;;  %v1475_v56 = vadd.f32 %v1474_v13, %v1396_v29  ;;  %v1397_v6 = vpop.f32.mrf.mxu1  ;;  %v1319_v21 = vadd.f32 %v1318_v28, %v7768_v17 }
 0x16a   : > { %v1554_v60 = vadd.f32 %v1553_v18, %v1475_v56  ;;  %v1398_v22 = vadd.f32 %v1397_v6, %v1319_v21  ;;  %v10112_v18 = vld [vmem:[#allocation16_spill] sm:$0xff] }
 0x16b   : > { %v8180_v59 = vperm.slane %v10112_v18, 1 }
 0x16c   : > { %2347 = vmatpush.bf16.msrb.mxu3 %v1957_v52  ;;  %v1929_v57 = vmax.f32 %v1554_v60, 0.0 }
 0x16d   : > { %1606 = vmatmul.bf16.gmra.mxu3 %v7703_v32 }
 0x16f   : > { %v1476_v4 = vpop.f32.mrf.mxu2  ;;  %v1321_v46 = vpop.f32.mrf.mxu0 }
 0x170   : > { %2348 = vmatpush.bf16.msrb.mxu3 %v1955_v39  ;;  %v8147_v12 = vpop.f32.mrf.mxu3  ;;  %v1477_v5 = vadd.f32 %v1476_v4, %v1398_v22  ;;  %v1400_v27 = vpop.f32.mrf.mxu1  ;;  %v1322_v15 = vadd.f32 %v1321_v46, %v7768_v17  ;;  %v10113_v4 = vld [vmem:[#allocation18_spill] sm:$0xff]  ;;  %v10114_v46 = vld [vmem:[#allocation19_spill] sm:$0xff] }
 0x172   : > { %v1556_v61 = vadd.f32 %v1555_v24, %v1477_v5  ;;  %1685 = vmatmul.bf16.gmra.mxu0 %v7705_v33  ;;  %v1401_v58 = vadd.f32 %v1400_v27, %v1322_v15 }
 0x173   : > { %1764 = vmatmul.bf16.gmra.mxu1 %v7707_v34 }
 0x174   : > { %2349 = vmatpush.bf16.msrb.mxu3 %v8097_v63  ;;  %v1931_v55 = vmax.f32 %v1556_v61, 0.0  ;;  %5767 = vmatmul.msk.bf16.gmra.mxu2 %vm1214_vm0, %v7693_v25 }
 0x176   : > { %v8155_v32 = vpack.c.bf16 %v1931_v55, %v1929_v57 }
 0x177   : > { %v1479_v45 = vpop.f32.mrf.mxu2  ;;  %v1323_v42 = vpop.f32.mrf.mxu0 }
 0x178   : > { %2350 = vmatpush.bf16.msrb.mxu3 %v8073_v44  ;;  %v8157_v52 = vpop.f32.mrf.mxu3  ;;  %v1402_v16 = vpop.f32.mrf.mxu1  ;;  %v1324_v31 = vadd.f32 %v1323_v42, %v7768_v17  ;;  %v1480_v5 = vadd.f32 %v1479_v45, %v1401_v58  ;;  %v10115_v42 = vld [vmem:[#allocation15_spill] sm:$0xff] }
 0x17a   : > { %v1403_v50 = vadd.f32 %v1402_v16, %v1324_v31  ;;  %v10119_v31 = vld [vmem:[#allocation20_spill] sm:$0xff] }
 0x17c   : > { %2351 = vmatpush.bf16.msrb.mxu3 %v7996_v10 }
 0x17d   : > { %1611 = vmatmul.bf16.gmra.mxu3 %v7724_v51  ;;  %v10107_v51 = vld [vmem:[#allocation12_spill] sm:$0xff] }
 0x17f   : > { %v1481_v33 = vpop.f32.mrf.mxu2  ;;  %v1326_v63 = vpop.f32.mrf.mxu0 }
 0x180   : > { %2352 = vmatpush.bf16.msrb.mxu3 %v7873_v43  ;;  %v1563_v34 = vpop.f32.mrf.mxu3  ;;  %v1405_v26 = vpop.f32.mrf.mxu1  ;;  %v1327_v48 = vadd.f32 %v1326_v63, %v7768_v17  ;;  %v1482_v6 = vadd.f32 %v1481_v33, %v1403_v50 }
 0x182   : > { %1690 = vmatmul.bf16.gmra.mxu0 %v7726_v53  ;;  %v1406_v8 = vadd.f32 %v1405_v26, %v1327_v48  ;;  %v1561_v16 = vadd.f32 %v8157_v52, %v1482_v6 }
 0x183   : > { %1769 = vmatmul.bf16.gmra.mxu1 %v7728_v54  ;;  %v10110_v54 = vld [vmem:[#allocation11_spill] sm:$0xff] }
 0x184   : > { %2353 = vmatpush.bf16.msrb.mxu3 %v7809_v62  ;;  %5768 = vmatmul.msk.bf16.gmra.mxu2 %vm1214_vm0, %v7714_v41  ;;  %v10109_v62 = vld [vmem:[#allocation14_spill] sm:$0xff] }
 0x187   : > { %v1484_v25 = vpop.f32.mrf.mxu2  ;;  %v1328_v10 = vpop.f32.mrf.mxu0 }
 0x188   : > { %v1565_v44 = vpop.f32.mrf.mxu3  ;;  %v1407_v39 = vpop.f32.mrf.mxu1  ;;  %v1329_v49 = vadd.f32 %v1328_v10, %v7768_v17  ;;  %v1485_v30 = vadd.f32 %v1484_v25, %v1406_v8 }
 0x18a   : > { %v1408_v2 = vadd.f32 %v1407_v39, %v1329_v49  ;;  %v1564_v27 = vadd.f32 %v1563_v34, %v1485_v30 }
 0x18c   : > { %v1937_v10 = vmax.f32 %v1564_v27, 0.0 }
 0x18d   : > { %1616 = vmatmul.bf16.gmra.mxu3 %v10107_v51 }
 0x18f   : > { %v1486_v43 = vpop.f32.mrf.mxu2  ;;  %v1331_v20 = vpop.f32.mrf.mxu0 }
 0x190   : > { %v1568_v3 = vpop.f32.mrf.mxu3  ;;  %v1410_v37 = vpop.f32.mrf.mxu1  ;;  %v1332_v53 = vadd.f32 %v1331_v20, %v7768_v17  ;;  %v1487_v11 = vadd.f32 %v1486_v43, %v1408_v2  ;;  %v1935_v43 = vmax.f32 %v1561_v16, 0.0 }
 0x192   : > { %1695 = vmatmul.bf16.gmra.mxu0 %v10108_v1  ;;  %v1411_v35 = vadd.f32 %v1410_v37, %v1332_v53  ;;  %v1566_v60 = vadd.f32 %v1565_v44, %v1487_v11  ;;  %v1559_v44 = vadd.f32 %v8147_v12, %v1480_v5  ;;  %v10123_v5 = vld [vmem:[#allocation24_spill] sm:$0xff] }
 0x193   : > { %1774 = vmatmul.bf16.gmra.mxu1 %v10109_v62  ;;  %v10116_v62 = vld [vmem:[#allocation21_spill] sm:$0xff] }
 0x194   : > { %5769 = vmatmul.msk.bf16.gmra.mxu2 %vm1214_vm0, %v10110_v54  ;;  %v1939_v63 = vmax.f32 %v1566_v60, 0.0  ;;  %v1933_v37 = vmax.f32 %v1559_v44, 0.0 }
 0x196   : > { %v1969_v20 = vpack.c.bf16 %v1939_v63, %v1937_v10  ;;  %v1967_v52 = vpack.c.bf16 %v1935_v43, %v1933_v37 }
 0x197   : > { %v1489_v41 = vpop.f32.mrf.mxu2  ;;  %v1333_v40 = vpop.f32.mrf.mxu0 }
 0x198   : > { %v1570_v47 = vpop.f32.mrf.mxu3  ;;  %v1412_v38 = vpop.f32.mrf.mxu1  ;;  %v1334_v36 = vadd.f32 %v1333_v40, %v7768_v17  ;;  %v1490_v9 = vadd.f32 %v1489_v41, %v1411_v35 }
 0x19a   : > { %v1413_v23 = vadd.f32 %v1412_v38, %v1334_v36  ;;  %v1569_v13 = vadd.f32 %v1568_v3, %v1490_v9  ;;  %v10117_v38 = vld [vmem:[#allocation22_spill] sm:$0xff]  ;;  %v10118_v36 = vld [vmem:[#allocation23_spill] sm:$0xff] }
 0x19c   : > { %v1941_v61 = vmax.f32 %v1569_v13, 0.0 }
 0x19d   : > { %1621 = vmatmul.bf16.gmra.mxu3 %v10111_v0 }
 0x19f   : > { %v1491_v29 = vpop.f32.mrf.mxu2  ;;  %v1661_v17 = vpop.f32.mrf.mxu0 }
 0x1a0   : > { %v1582_v14 = vpop.f32.mrf.mxu3  ;;  %v1492_v24 = vadd.f32 %v1491_v29, %v1413_v23  ;;  %v1740_v28 = vpop.f32.mrf.mxu1  ;;  %v10120_v29 = vld [vmem:[#allocation25_spill] sm:$0xff] }
 0x1a1   : > { %v1583_v56 = vadd.f32 %v1582_v14, %v8180_v59 }
 0x1a2   : > { %v1571_v21 = vadd.f32 %v1570_v47, %v1492_v24  ;;  %1700 = vmatmul.bf16.gmra.mxu0 %v10113_v4 }
 0x1a3   : > { %v1662_v22 = vadd.f32 %v1661_v17, %v1583_v56  ;;  %1779 = vmatmul.bf16.gmra.mxu1 %v10114_v46 }
 0x1a4   : > { %v1943_v57 = vmax.f32 %v1571_v21, 0.0  ;;  %5770 = vmatmul.msk.bf16.gmra.mxu2 %vm1214_vm0, %v10115_v42  ;;  %v10121_v21 = vld [vmem:[#allocation26_spill] sm:$0xff] }
 0x1a5   : > { %v1741_v55 = vadd.f32 %v1740_v28, %v1662_v22  ;;  %v10122_v22 = vld [vmem:[#allocation27_spill] sm:$0xff] }
 0x1a6   : > { %v1971_v26 = vpack.c.bf16 %v1943_v57, %v1941_v61 }
 0x1a7   : > { %v1819_v25 = vpop.f32.mrf.mxu2  ;;  %v1663_v34 = vpop.f32.mrf.mxu0 }
 0x1a8   : > { %v1584_v33 = vpop.f32.mrf.mxu3  ;;  %v1820_v39 = vadd.f32 %v1819_v25, %v1741_v55  ;;  %2117 = vmatpush.bf16.msra.mxu0 %v1971_v26  ;;  %v1742_v51 = vpop.f32.mrf.mxu1 }
 0x1a9   : > { %v1585_v45 = vadd.f32 %v1584_v33, %v8180_v59 }
 0x1aa   : > { %v1890_v49 = vmax.f32 %v1820_v39, 0.0 }
 0x1ab   : > { %v1664_v3 = vadd.f32 %v1663_v34, %v1585_v45 }
 0x1ac   : > { %2118 = vmatpush.bf16.msra.mxu0 %v1969_v20 }
 0x1ad   : > { %v1743_v1 = vadd.f32 %v1742_v51, %v1664_v3  ;;  %1626 = vmatmul.bf16.gmra.mxu3 %v10116_v62 }
 0x1af   : > { %v1821_v54 = vpop.f32.mrf.mxu2  ;;  %v1666_v47 = vpop.f32.mrf.mxu0 }
 0x1b0   : > { %v1587_v53 = vpop.f32.mrf.mxu3  ;;  %v1822_v41 = vadd.f32 %v1821_v54, %v1743_v1  ;;  %2119 = vmatpush.bf16.msra.mxu0 %v1967_v52  ;;  %v1745_v48 = vpop.f32.mrf.mxu1  ;;  %v10127_v1 = vld [vmem:[#allocation28_spill] sm:$0xff] }
 0x1b1   : > { %v1588_v12 = vadd.f32 %v1587_v53, %v8180_v59 }
 0x1b2   : > { %v1892_v35 = vmax.f32 %v1822_v41, 0.0  ;;  %1705 = vmatmul.bf16.gmra.mxu0 %v10117_v38 }
 0x1b3   : > { %v1667_v40 = vadd.f32 %v1666_v47, %v1588_v12  ;;  %1784 = vmatmul.bf16.gmra.mxu1 %v10118_v36  ;;  %v10128_v47 = vld [vmem:[#allocation33_spill] sm:$0xff] }
 0x1b4   : > { %5771 = vmatmul.msk.bf16.gmra.mxu2 %vm1214_vm0, %v10119_v31  ;;  %2120 = vmatpush.bf16.msra.mxu0 %v8155_v32  ;;  %v8197_v8 = vpack.c.bf16 %v1892_v35, %v1890_v49 }
 0x1b5   : > { %v1746_v15 = vadd.f32 %v1745_v48, %v1667_v40 }
 0x1b7   : > { %v1824_v9 = vpop.f32.mrf.mxu2  ;;  %v1668_v11 = vpop.f32.mrf.mxu0 }
 0x1b8   : > { %v1589_v2 = vpop.f32.mrf.mxu3  ;;  %v1825_v18 = vadd.f32 %v1824_v9, %v1746_v15  ;;  %2121 = vmatpush.bf16.msra.mxu0 %v8143_v19  ;;  %v1747_v23 = vpop.f32.mrf.mxu1 }
 0x1b9   : > { %v1590_v0 = vadd.f32 %v1589_v2, %v8180_v59 }
 0x1ba   : > { %v1894_v28 = vmax.f32 %v1825_v18, 0.0  ;;  %v10130_v18 = vld [vmem:[#allocation35_spill] sm:$0xff] }
 0x1bb   : > { %v1669_v58 = vadd.f32 %v1668_v11, %v1590_v0  ;;  %v10129_v0 = vld [vmem:[#allocation34_spill] sm:$0xff] }
 0x1bc   : > { %2122 = vmatpush.bf16.msra.mxu0 %v8130_v7 }
 0x1bd   : > { %v1748_v50 = vadd.f32 %v1747_v23, %v1669_v58  ;;  %1631 = vmatmul.bf16.gmra.mxu3 %v10120_v29  ;;  %v10131_v23 = vld [vmem:[#allocation32_spill] sm:$0xff] }
 0x1bf   : > { %v1826_v30 = vpop.f32.mrf.mxu2  ;;  %v1671_v56 = vpop.f32.mrf.mxu0 }
 0x1c0   : > { %2392 = vmatpush.bf16.msrb.mxu0 %v1971_v26  ;;  %v1592_v14 = vpop.f32.mrf.mxu3  ;;  %v1827_v24 = vadd.f32 %v1826_v30, %v1748_v50  ;;  %v1750_v17 = vpop.f32.mrf.mxu1  ;;  %v10124_v26 = vld [vmem:[#allocation29_spill] sm:$0xff] }
 0x1c1   : > { %v1593_v13 = vadd.f32 %v1592_v14, %v8180_v59 }
 0x1c2   : > { %v1896_v6 = vmax.f32 %v1827_v24, 0.0  ;;  %1710 = vmatmul.bf16.gmra.mxu0 %v10121_v21  ;;  %v10132_v24 = vld [vmem:[#allocation37_spill] sm:$0xff]  ;;  %v10134_v21 = vld [vmem:[#allocation39_spill] sm:$0xff] }
 0x1c3   : > { %v1672_v60 = vadd.f32 %v1671_v56, %v1593_v13  ;;  %1789 = vmatmul.bf16.gmra.mxu1 %v10122_v22  ;;  %v10135_v22 = vld [vmem:[#allocation36_spill] sm:$0xff] }
 0x1c4   : > { %2393 = vmatpush.bf16.msrb.mxu0 %v1969_v20  ;;  %5772 = vmatmul.msk.bf16.gmra.mxu2 %vm1214_vm0, %v10123_v5  ;;  %v8208_v46 = vpack.c.bf16 %v1896_v6, %v1894_v28  ;;  %v10125_v20 = vld [vmem:[#allocation30_spill] sm:$0xff] }
 0x1c5   : > { %v1751_v4 = vadd.f32 %v1750_v17, %v1672_v60  ;;  %v10133_v60 = vld [vmem:[#allocation38_spill] sm:$0xff] }
 0x1c7   : > { %v1829_v61 = vpop.f32.mrf.mxu2  ;;  %v1673_v42 = vpop.f32.mrf.mxu0 }
 0x1c8   : > { %2394 = vmatpush.bf16.msrb.mxu0 %v1967_v52  ;;  %v1594_v27 = vpop.f32.mrf.mxu3  ;;  %v1830_v55 = vadd.f32 %v1829_v61, %v1751_v4  ;;  %v1752_v16 = vpop.f32.mrf.mxu1 }
 0x1c9   : > { %v1595_v57 = vadd.f32 %v1594_v27, %v8180_v59 }
 0x1ca   : > { %v1898_v51 = vmax.f32 %v1830_v55, 0.0  ;;  %v6974_v55 = vld [vmem:[%s10015_s3 + $0x4] sm:$0xf0] }
 0x1cb   : > { %v1674_v63 = vadd.f32 %v1673_v42, %v1595_v57  ;;  %v5778_v57 = vld [vmem:[%s10015_s3] sm:$0xf] }
 0x1cc   : > { %2395 = vmatpush.bf16.msrb.mxu0 %v8155_v32  ;;  %v10126_v32 = vld [vmem:[#allocation31_spill] sm:$0xff]  ;;  %v8258_v42 = vor.u32 %v6974_v55, %v5778_v57 }
 0x1cd   : > { %1636 = vmatmul.bf16.gmra.mxu3 %v10124_v26  ;;  %v1753_v33 = vadd.f32 %v1752_v16, %v1674_v63 }
 0x1cf   : > { %v1831_v44 = vpop.f32.mrf.mxu2  ;;  %v1676_v39 = vpop.f32.mrf.mxu0 }
 0x1d0   : > { %2396 = vmatpush.bf16.msrb.mxu0 %v8143_v19  ;;  %v1597_v25 = vpop.f32.mrf.mxu3  ;;  %v1832_v45 = vadd.f32 %v1831_v44, %v1753_v33  ;;  %v1755_v34 = vpop.f32.mrf.mxu1  ;;  %v5780_v44 = vld [vmem:[%s10015_s3 + $0x8] sm:$0xf0] }
 0x1d1   : > { %v1598_v10 = vadd.f32 %v1597_v25, %v8180_v59  ;;  %v6973_v25 = vld [vmem:[%s10015_s3 + $0x4] sm:$0xf] }
 0x1d2   : > { %v1900_v43 = vmax.f32 %v1832_v45, 0.0  ;;  %1715 = vmatmul.bf16.gmra.mxu0 %v10125_v20 }
 0x1d3   : > { %v1677_v3 = vadd.f32 %v1676_v39, %v1598_v10  ;;  %1794 = vmatmul.bf16.gmra.mxu1 %v10126_v32  ;;  %v8269_v10 = vor.u32 %v6973_v25, %v5780_v44 }
 0x1d4   : > { %2397 = vmatpush.bf16.msrb.mxu0 %v8130_v7  ;;  %5773 = vmatmul.msk.bf16.gmra.mxu2 %vm1214_vm0, %v10127_v1  ;;  %v8220_v19 = vpack.c.bf16 %v1900_v43, %v1898_v51  ;;  %v5786_v43 = vld [vmem:[%s10015_s3 + $0x10] sm:$0xf] }
 0x1d5   : > { %v1756_v37 = vadd.f32 %v1755_v34, %v1677_v3  ;;  %v6976_v3 = vld [vmem:[%s10015_s3 + $0x14] sm:$0xf0] }
 0x1d6   : > { %v8279_v20 = vor.u32 %v6976_v3, %v5786_v43 }
 0x1d7   : > { %v1834_v52 = vpop.f32.mrf.mxu2  ;;  %v1678_v12 = vpop.f32.mrf.mxu0 }
 0x1d8   : > { %v1599_v62 = vpop.f32.mrf.mxu3  ;;  %v1835_v54 = vadd.f32 %v1834_v52, %v1756_v37  ;;  %v1757_v7 = vpop.f32.mrf.mxu1  ;;  %v6975_v52 = vld [vmem:[%s10015_s3 + $0x14] sm:$0xf] }
 0x1d9   : > { %v1600_v53 = vadd.f32 %v1599_v62, %v8180_v59 }
 0x1da   : > { %v1902_v31 = vmax.f32 %v1835_v54, 0.0 }
 0x1db   : > { %v1679_v41 = vadd.f32 %v1678_v12, %v1600_v53  ;;  %v5788_v53 = vld [vmem:[%s10015_s3 + $0x18] sm:$0xf0] }
 0x1dc   : > { %v8289_v12 = vor.u32 %v6975_v52, %v5788_v53 }
 0x1dd   : > { %1641 = vmatmul.bf16.gmra.mxu3 %v10128_v47  ;;  %v1758_v48 = vadd.f32 %v1757_v7, %v1679_v41 }
 0x1df   : > { %v1836_v35 = vpop.f32.mrf.mxu2  ;;  %v1681_v36 = vpop.f32.mrf.mxu0 }
 0x1e0   : > { %v1602_v49 = vpop.f32.mrf.mxu3  ;;  %v1837_v38 = vadd.f32 %v1836_v35, %v1758_v48  ;;  %v1760_v15 = vpop.f32.mrf.mxu1 }
 0x1e1   : > { %v1603_v40 = vadd.f32 %v1602_v49, %v8180_v59 }
 0x1e2   : > { %v1904_v2 = vmax.f32 %v1837_v38, 0.0  ;;  %1720 = vmatmul.bf16.gmra.mxu0 %v10129_v0 }
 0x1e3   : > { %v1682_v9 = vadd.f32 %v1681_v36, %v1603_v40  ;;  %1799 = vmatmul.bf16.gmra.mxu1 %v10130_v18  ;;  %v5794_v18 = vld [vmem:[%s10015_s3 + $0x20] sm:$0xf] }
 0x1e4   : > { %5774 = vmatmul.msk.bf16.gmra.mxu2 %vm1214_vm0, %v10131_v23  ;;  %v8229_v58 = vpack.c.bf16 %v1904_v2, %v1902_v31 }
 0x1e5   : > { %v1761_v11 = vadd.f32 %v1760_v15, %v1682_v9 }
 0x1e7   : > { %v1839_v29 = vpop.f32.mrf.mxu2  ;;  %v8235_v30 = vpop.f32.mrf.mxu0 }
 0x1e8   : > { %v8231_v50 = vpop.f32.mrf.mxu3  ;;  %v8233_v14 = vadd.f32 %v1839_v29, %v1761_v11  ;;  %v8237_v13 = vpop.f32.mrf.mxu1  ;;  %v6978_v11 = vld [vmem:[%s10015_s3 + $0x24] sm:$0xf0] }
 0x1e9   : > { %v8304_v23 = vor.u32 %v6978_v11, %v5794_v18  ;;  %v1605_v29 = vadd.f32 %v8231_v50, %v8180_v59 }
 0x1ed   : > { %1646 = vmatmul.bf16.gmra.mxu3 %v10132_v24 }
 0x1ef   : > { %v8240_v17 = vpop.f32.mrf.mxu2  ;;  %v1686_v28 = vpop.f32.mrf.mxu0 }
 0x1f0   : > { %v1607_v56 = vpop.f32.mrf.mxu3  ;;  %v8242_v6 = vpop.f32.mrf.mxu1 }
 0x1f1   : > { %v1608_v36 = vadd.f32 %v1607_v56, %v8180_v59 }
 0x1f2   : > { %1725 = vmatmul.bf16.gmra.mxu0 %v10133_v60 }
 0x1f3   : > { %1804 = vmatmul.bf16.gmra.mxu1 %v10134_v21  ;;  %v1687_v24 = vadd.f32 %v1686_v28, %v1608_v36 }
 0x1f4   : > { %5775 = vmatmul.msk.bf16.gmra.mxu2 %vm1214_vm0, %v10135_v22 }
 0x1f5   : > { %v1766_v50 = vadd.f32 %v8242_v6, %v1687_v24 }
 0x1f7   : > { %v8248_v5 = vpop.f32.mrf.mxu2  ;;  %v1688_v27 = vpop.f32.mrf.mxu0 }
 0x1f8   : > { %v1609_v4 = vpop.f32.mrf.mxu3  ;;  %v8250_v61 = vpop.f32.mrf.mxu1 }
 0x1f9   : > { %v1610_v15 = vadd.f32 %v1609_v4, %v8180_v59 }
 0x1fb   : > { %v1689_v56 = vadd.f32 %v1688_v27, %v1610_v15 }
 0x1fd   : > { %2079 = vmatmul.bf16.vlgmr.msra.gmra.mxu3 %v8258_v42  ;;  %v1768_v28 = vadd.f32 %v8250_v61, %v1689_v56 }
 0x1ff   : > { %v8261_v63 = vpop.f32.mrf.mxu2  ;;  %v1691_v26 = vpop.f32.mrf.mxu0 }
 0x200   : > { %v1612_v16 = vpop.f32.mrf.mxu3  ;;  %v1770_v33 = vpop.f32.mrf.mxu1 }
 0x201   : > { %v1613_v7 = vadd.f32 %v1612_v16, %v8180_v59 }
 0x202   : > { %5832 = vmatmul.msk.bf16.vlgmr.msra.gmra.mxu0 %vm1214_vm0, %v8269_v10 }
 0x203   : > { %v1692_v31 = vadd.f32 %v1691_v26, %v1613_v7 }
 0x205   : > { %v1771_v60 = vadd.f32 %v1770_v33, %v1692_v31  ;;  %v6977_v33 = vld [vmem:[%s10015_s3 + $0x24] sm:$0xf]  ;;  %v1906_v31 = vmax.f32 %v8233_v14, 0.0  ;;  %v5804_v14 = vld [vmem:[%s10015_s3 + $0x38] sm:$0xf0] }
 0x207   : > { %v1849_v39 = vpop.f32.mrf.mxu2  ;;  %v1693_v34 = vpop.f32.mrf.mxu0 }
 0x208   : > { %v1614_v45 = vpop.f32.mrf.mxu3  ;;  %v1772_v51 = vpop.f32.mrf.mxu1  ;;  %v1850_v27 = vadd.f32 %v1849_v39, %v1771_v60  ;;  %v6979_v60 = vld [vmem:[%s10015_s3 + $0x34] sm:$0xf] }
 0x209   : > { %v1615_v41 = vadd.f32 %v1614_v45, %v8180_v59 }
 0x20a   : > { %v1914_v52 = vmax.f32 %v1850_v27, 0.0  ;;  %v5810_v27 = vld [vmem:[%s10015_s3 + $0x40] sm:$0xf] }
 0x20b   : > { %v1694_v2 = vadd.f32 %v1693_v34, %v1615_v41  ;;  %v1684_v34 = vadd.f32 %v8235_v30, %v1605_v29  ;;  %v1847_v30 = vadd.f32 %v8261_v63, %v1768_v28 }
 0x20d   : > { %2084 = vmatmul.bf16.gmra.mxu3 %v8279_v20  ;;  %v1773_v21 = vadd.f32 %v1772_v51, %v1694_v2  ;;  %v5796_v51 = vld [vmem:[%s10015_s3 + $0x28] sm:$0xf0]  ;;  %v1763_v39 = vadd.f32 %v8237_v13, %v1684_v34  ;;  %v1912_v41 = vmax.f32 %v1847_v30, 0.0  ;;  %v5802_v13 = vld [vmem:[%s10015_s3 + $0x30] sm:$0xf] }
 0x20f   : > { %v1851_v37 = vpop.f32.mrf.mxu2  ;;  %v1696_v1 = vpop.f32.mrf.mxu0  ;;  %v1842_v53 = vadd.f32 %v8240_v17, %v1763_v39  ;;  %v6980_v17 = vld [vmem:[%s10015_s3 + $0x34] sm:$0xf0] }
 0x210   : > { %v1617_v32 = vpop.f32.mrf.mxu3  ;;  %v1775_v62 = vpop.f32.mrf.mxu1  ;;  %v1852_v16 = vadd.f32 %v1851_v37, %v1773_v21  ;;  %v8319_v37 = vor.u32 %v6977_v33, %v5796_v51  ;;  %v8340_v15 = vor.u32 %v6980_v17, %v5802_v13  ;;  %v6982_v33 = vld [vmem:[%s10015_s3 + $0x44] sm:$0xf0] }
 0x211   : > { %v1618_v54 = vadd.f32 %v1617_v32, %v8180_v59  ;;  %v8366_v51 = vor.u32 %v6982_v33, %v5810_v27  ;;  %v5864_v33 = vld [vmem:[%s10015_s3 + $0x78] sm:$0xf0] }
 0x212   : > { %5833 = vmatmul.msk.bf16.gmra.mxu0 %vm1214_vm0, %v8289_v12 }
 0x213   : > { %v1697_v47 = vadd.f32 %v1696_v1, %v1618_v54  ;;  %v1916_v1 = vmax.f32 %v1852_v16, 0.0 }
 0x215   : > { %v1776_v9 = vadd.f32 %v1775_v62, %v1697_v47  ;;  %v1845_v62 = vadd.f32 %v8248_v5, %v1766_v50  ;;  %v1908_v5 = vmax.f32 %v1842_v53, 0.0 }
 0x217   : > { %v1854_v49 = vpop.f32.mrf.mxu2  ;;  %v1698_v40 = vpop.f32.mrf.mxu0  ;;  %v1954_v56 = vpack.c.bf16 %v1908_v5, %v1906_v31 }
 0x218   : > { %v1619_v48 = vpop.f32.mrf.mxu3  ;;  %v1777_v38 = vpop.f32.mrf.mxu1  ;;  %v1855_v22 = vadd.f32 %v1854_v49, %v1776_v9 }
 0x219   : > { %v1620_v35 = vadd.f32 %v1619_v48, %v8180_v59 }
 0x21a   : > { %v1918_v43 = vmax.f32 %v1855_v22, 0.0 }
 0x21b   : > { %v1699_v0 = vadd.f32 %v1698_v40, %v1620_v35  ;;  %v8331_v35 = vpack.c.bf16 %v1916_v1, %v1914_v52  ;;  %v1910_v40 = vmax.f32 %v1845_v62, 0.0  ;;  %v6981_v62 = vld [vmem:[%s10015_s3 + $0x44] sm:$0xf]  ;;  %v5812_v52 = vld [vmem:[%s10015_s3 + $0x48] sm:$0xf0] }
 0x21d   : > { %v1778_v4 = vadd.f32 %v1777_v38, %v1699_v0  ;;  %2089 = vmatmul.bf16.gmra.mxu3 %v8304_v23  ;;  %v1956_v36 = vpack.c.bf16 %v1912_v41, %v1910_v40  ;;  %v8378_v41 = vor.u32 %v6981_v62, %v5812_v52 }
 0x21f   : > { %v1856_v55 = vpop.f32.mrf.mxu2  ;;  %v1701_v44 = vpop.f32.mrf.mxu0 }
 0x220   : > { %v1622_v57 = vpop.f32.mrf.mxu3  ;;  %v1857_v25 = vadd.f32 %v1856_v55, %v1778_v4  ;;  %v1780_v45 = vpop.f32.mrf.mxu1 }
 0x221   : > { %v1623_v26 = vadd.f32 %v1622_v57, %v8180_v59  ;;  %v8351_v57 = vor.u32 %v6979_v60, %v5804_v14 }
 0x222   : > { %v1920_v3 = vmax.f32 %v1857_v25, 0.0  ;;  %5834 = vmatmul.msk.bf16.gmra.mxu0 %vm1214_vm0, %v8319_v37 }
 0x223   : > { %v1702_v32 = vadd.f32 %v1701_v44, %v1623_v26 }
 0x224   : > { %v8322_v6 = vpack.c.bf16 %v1920_v3, %v1918_v43 }
 0x225   : > { %v1781_v61 = vadd.f32 %v1780_v45, %v1702_v32 }
 0x226   : > { %2159 = vmatpush.bf16.msra.mxu1 %v8322_v6 }
 0x227   : > { %v1859_v7 = vpop.f32.mrf.mxu2  ;;  %v1703_v48 = vpop.f32.mrf.mxu0 }
 0x228   : > { %v1624_v54 = vpop.f32.mrf.mxu3  ;;  %v1860_v47 = vadd.f32 %v1859_v7, %v1781_v61  ;;  %v1782_v49 = vpop.f32.mrf.mxu1 }
 0x229   : > { %v1625_v63 = vadd.f32 %v1624_v54, %v8180_v59 }
 0x22a   : > { %2160 = vmatpush.bf16.msra.mxu1 %v8331_v35  ;;  %v1922_v21 = vmax.f32 %v1860_v47, 0.0 }
 0x22b   : > { %v1704_v38 = vadd.f32 %v1703_v48, %v1625_v63 }
 0x22d   : > { %v1783_v2 = vadd.f32 %v1782_v49, %v1704_v38  ;;  %2094 = vmatmul.bf16.gmra.mxu3 %v8340_v15 }
 0x22e   : > { %2161 = vmatpush.bf16.msra.mxu1 %v1956_v36 }
 0x22f   : > { %v1861_v0 = vpop.f32.mrf.mxu2  ;;  %v1706_v29 = vpop.f32.mrf.mxu0 }
 0x230   : > { %v1627_v9 = vpop.f32.mrf.mxu3  ;;  %v1862_v11 = vadd.f32 %v1861_v0, %v1783_v2  ;;  %v1785_v24 = vpop.f32.mrf.mxu1 }
 0x231   : > { %v1628_v18 = vadd.f32 %v1627_v9, %v8180_v59  ;;  %v5820_v9 = vld [vmem:[%s10015_s3 + $0x58] sm:$0xf0] }
 0x232   : > { %v1924_v22 = vmax.f32 %v1862_v11, 0.0  ;;  %2162 = vmatpush.bf16.msra.mxu1 %v1954_v56  ;;  %5835 = vmatmul.msk.bf16.gmra.mxu0 %vm1214_vm0, %v8351_v57 }
 0x233   : > { %v1707_v4 = vadd.f32 %v1706_v29, %v1628_v18 }
 0x234   : > { %v8353_v16 = vpack.c.bf16 %v1924_v22, %v1922_v21  ;;  %v5828_v22 = vld [vmem:[%s10015_s3 + $0x68] sm:$0xf0] }
 0x235   : > { %v1786_v55 = vadd.f32 %v1785_v24, %v1707_v4 }
 0x236   : > { %2163 = vmatpush.bf16.msra.mxu1 %v8229_v58 }
 0x237   : > { %v1864_v25 = vpop.f32.mrf.mxu2  ;;  %v1708_v34 = vpop.f32.mrf.mxu0 }
 0x238   : > { %v1629_v26 = vpop.f32.mrf.mxu3  ;;  %v1865_v45 = vadd.f32 %v1864_v25, %v1786_v55  ;;  %v1787_v50 = vpop.f32.mrf.mxu1 }
 0x239   : > { %v1630_v44 = vadd.f32 %v1629_v26, %v8180_v59 }
 0x23a   : > { %2164 = vmatpush.bf16.msra.mxu1 %v8220_v19  ;;  %v1926_v53 = vmax.f32 %v1865_v45, 0.0  ;;  %v6988_v45 = vld [vmem:[%s10015_s3 + $0x74] sm:$0xf0] }
 0x23b   : > { %v1709_v28 = vadd.f32 %v1708_v34, %v1630_v44  ;;  %v5862_v44 = vld [vmem:[%s10015_s3 + $0x70] sm:$0xf] }
 0x23c   : > { %v8457_v34 = vor.u32 %v6988_v45, %v5862_v44 }
 0x23d   : > { %v1788_v43 = vadd.f32 %v1787_v50, %v1709_v28  ;;  %2099 = vmatmul.bf16.gmra.mxu3 %v8366_v51 }
 0x23e   : > { %2165 = vmatpush.bf16.msra.mxu1 %v8208_v46 }
 0x23f   : > { %v1866_v32 = vpop.f32.mrf.mxu2  ;;  %v1711_v61 = vpop.f32.mrf.mxu0 }
 0x240   : > { %v1632_v3 = vpop.f32.mrf.mxu3  ;;  %v1867_v1 = vadd.f32 %v1866_v32, %v1788_v43  ;;  %v1790_v39 = vpop.f32.mrf.mxu1 }
 0x241   : > { %v1633_v30 = vadd.f32 %v1632_v3, %v8180_v59 }
 0x242   : > { %v1928_v54 = vmax.f32 %v1867_v1, 0.0  ;;  %2166 = vmatpush.bf16.msra.mxu1 %v8197_v8  ;;  %5836 = vmatmul.msk.bf16.gmra.mxu0 %vm1214_vm0, %v8378_v41 }
 0x243   : > { %v1712_v7 = vadd.f32 %v1711_v61, %v1633_v30 }
 0x244   : > { %v8381_v47 = vpack.c.bf16 %v1928_v54, %v1926_v53 }
 0x245   : > { %v1791_v63 = vadd.f32 %v1790_v39, %v1712_v7  ;;  %2167 = vmatmul.bf16.vlgmr.msra.gmra.mxu1 %v8258_v42  ;;  %v6984_v42 = vld [vmem:[%s10015_s3 + $0x54] sm:$0xf0] }
 0x246   : > { %2434 = vmatpush.bf16.msrb.mxu1 %v8322_v6  ;;  %v5818_v6 = vld [vmem:[%s10015_s3 + $0x50] sm:$0xf] }
 0x247   : > { %v1869_v49 = vpop.f32.mrf.mxu2  ;;  %v8391_v38 = vpop.f32.mrf.mxu0  ;;  %v8401_v17 = vor.u32 %v6984_v42, %v5818_v6 }
 0x248   : > { %v8386_v48 = vpop.f32.mrf.mxu3  ;;  %v8389_v40 = vadd.f32 %v1869_v49, %v1791_v63  ;;  %v8393_v13 = vpop.f32.mrf.mxu1 }
 0x24a   : > { %2435 = vmatpush.bf16.msrb.mxu1 %v8331_v35 }
 0x24d   : > { %2104 = vmatmul.bf16.gmra.mxu3 %v8401_v17 }
 0x24e   : > { %2436 = vmatpush.bf16.msrb.mxu1 %v1956_v36  ;;  %v6983_v36 = vld [vmem:[%s10015_s3 + $0x54] sm:$0xf] }
 0x24f   : > { %v8404_v5 = vpop.f32.mrf.mxu2  ;;  %v8406_v31 = vpop.f32.mrf.mxu0  ;;  %v8416_v0 = vor.u32 %v6983_v36, %v5820_v9  ;;  %v6990_v36 = vld [vmem:[%s10015_s3 + $0x84] sm:$0xf0] }
 0x250   : > { %v1637_v35 = vpop.f32.mrf.mxu3  ;;  %v8408_v2 = vpop.f32.mrf.mxu1 }
 0x251   : > { %v1638_v54 = vadd.f32 %v1637_v35, %v8180_v59 }
 0x252   : > { %2437 = vmatpush.bf16.msrb.mxu1 %v1954_v56  ;;  %5837 = vmatmul.msk.bf16.gmra.mxu0 %vm1214_vm0, %v8416_v0  ;;  %v5826_v56 = vld [vmem:[%s10015_s3 + $0x60] sm:$0xf] }
 0x253   : > { %v1717_v35 = vadd.f32 %v8406_v31, %v1638_v54  ;;  %v6989_v31 = vld [vmem:[%s10015_s3 + $0x84] sm:$0xf] }
 0x255   : > { %2172 = vmatmul.bf16.gmra.mxu1 %v8279_v20 }
 0x256   : > { %2438 = vmatpush.bf16.msrb.mxu1 %v8229_v58  ;;  %v6986_v58 = vld [vmem:[%s10015_s3 + $0x64] sm:$0xf0] }
 0x257   : > { %v8422_v11 = vpop.f32.mrf.mxu2  ;;  %v1718_v29 = vpop.f32.mrf.mxu0  ;;  %v8434_v60 = vor.u32 %v6986_v58, %v5826_v56  ;;  %v1635_v56 = vadd.f32 %v8386_v48, %v8180_v59 }
 0x258   : > { %v1639_v18 = vpop.f32.mrf.mxu3  ;;  %v8425_v24 = vpop.f32.mrf.mxu1 }
 0x259   : > { %v1640_v7 = vadd.f32 %v1639_v18, %v8180_v59  ;;  %v1714_v45 = vadd.f32 %v8391_v38, %v1635_v56 }
 0x25a   : > { %2439 = vmatpush.bf16.msrb.mxu1 %v8220_v19 }
 0x25b   : > { %v1719_v18 = vadd.f32 %v1718_v29, %v1640_v7  ;;  %v5872_v29 = vld [vmem:[%s10015_s3 + $0x88] sm:$0xf0] }
 0x25c   : > { %v8502_v38 = vor.u32 %v6989_v31, %v5872_v29 }
 0x25d   : > { %2109 = vmatmul.bf16.gmra.mxu3 %v8434_v60 }
 0x25e   : > { %2440 = vmatpush.bf16.msrb.mxu1 %v8208_v46  ;;  %v6985_v46 = vld [vmem:[%s10015_s3 + $0x64] sm:$0xf] }
 0x25f   : > { %v8437_v14 = vpop.f32.mrf.mxu2  ;;  %v1721_v19 = vpop.f32.mrf.mxu0  ;;  %v8446_v4 = vor.u32 %v6985_v46, %v5828_v22 }
 0x260   : > { %v1642_v20 = vpop.f32.mrf.mxu3  ;;  %v1800_v21 = vpop.f32.mrf.mxu1 }
 0x261   : > { %v1643_v30 = vadd.f32 %v1642_v20, %v8180_v59 }
 0x262   : > { %2441 = vmatpush.bf16.msrb.mxu1 %v8197_v8  ;;  %5838 = vmatmul.msk.bf16.gmra.mxu0 %vm1214_vm0, %v8446_v4 }
 0x263   : > { %v1722_v63 = vadd.f32 %v1721_v19, %v1643_v30 }
 0x265   : > { %2177 = vmatmul.bf16.gmra.mxu1 %v8304_v23  ;;  %v6987_v23 = vld [vmem:[%s10015_s3 + $0x74] sm:$0xf]  ;;  %v1801_v20 = vadd.f32 %v1800_v21, %v1722_v63 }
 0x266   : > { %v8467_v3 = vor.u32 %v6987_v23, %v5864_v33  ;;  %v1793_v33 = vadd.f32 %v8393_v13, %v1714_v45  ;;  %v6992_v13 = vld [vmem:[%s10015_s3 + $0x94] sm:$0xf0]  ;;  %v6991_v63 = vld [vmem:[%s10015_s3 + $0x94] sm:$0xf] }
 0x267   : > { %v1879_v26 = vpop.f32.mrf.mxu2  ;;  %v1723_v8 = vpop.f32.mrf.mxu0 }
 0x268   : > { %v1644_v55 = vpop.f32.mrf.mxu3  ;;  %v1802_v25 = vpop.f32.mrf.mxu1  ;;  %v1880_v21 = vadd.f32 %v1879_v26, %v1801_v20  ;;  %v1872_v26 = vadd.f32 %v8404_v5, %v1793_v33  ;;  %v1930_v5 = vmax.f32 %v8389_v40, 0.0 }
 0x269   : > { %v1645_v1 = vadd.f32 %v1644_v55, %v8180_v59 }
 0x26b   : > { %v1724_v49 = vadd.f32 %v1723_v8, %v1645_v1 }
 0x26d   : > { %2354 = vmatmul.bf16.vlgmr.msrb.gmra.mxu3 %v8457_v34  ;;  %v1803_v19 = vadd.f32 %v1802_v25, %v1724_v49  ;;  %v5880_v49 = vld [vmem:[%s10015_s3 + $0x98] sm:$0xf0] }
 0x26f   : > { %v1881_v28 = vpop.f32.mrf.mxu2  ;;  %v1726_v27 = vpop.f32.mrf.mxu0 }
 0x270   : > { %v1647_v50 = vpop.f32.mrf.mxu3  ;;  %v1805_v32 = vpop.f32.mrf.mxu1  ;;  %v1882_v8 = vadd.f32 %v1881_v28, %v1803_v19 }
 0x271   : > { %v1648_v43 = vadd.f32 %v1647_v50, %v8180_v59  ;;  %v1796_v50 = vadd.f32 %v8408_v2, %v1717_v35 }
 0x272   : > { %5916 = vmatmul.msk.bf16.vlgmr.msrb.gmra.mxu0 %vm1214_vm0, %v8467_v3 }
 0x273   : > { %v1727_v61 = vadd.f32 %v1726_v27, %v1648_v43  ;;  %v1798_v27 = vadd.f32 %v8425_v24, %v1719_v18  ;;  %v1940_v24 = vmax.f32 %v1882_v8, 0.0  ;;  %v1875_v43 = vadd.f32 %v8422_v11, %v1796_v50  ;;  %v6993_v18 = vld [vmem:[%s10015_s3 + $0xa4] sm:$0xf]  ;;  %v6995_v8 = vld [vmem:[%s10015_s3 + $0xb4] sm:$0xf] }
 0x274   : > { %v1932_v11 = vmax.f32 %v1872_v26, 0.0  ;;  %v5902_v50 = vld [vmem:[%s10015_s3 + $0xc0] sm:$0xf]  ;;  %v5912_v26 = vld [vmem:[%s10015_s3 + $0xd8] sm:$0xf0] }
 0x275   : > { %2182 = vmatmul.bf16.gmra.mxu1 %v8340_v15  ;;  %v1806_v6 = vadd.f32 %v1805_v32, %v1727_v61  ;;  %v5870_v15 = vld [vmem:[%s10015_s3 + $0x80] sm:$0xf]  ;;  %v1877_v2 = vadd.f32 %v8437_v14, %v1798_v27  ;;  %v1938_v32 = vmax.f32 %v1880_v21, 0.0  ;;  %v6998_v27 = vld [vmem:[%s10015_s3 + $0xc4] sm:$0xf0] }
 0x276   : > { %v8483_v9 = vor.u32 %v6990_v36, %v5870_v15  ;;  %v5886_v15 = vld [vmem:[%s10015_s3 + $0xa0] sm:$0xf]  ;;  %v6994_v36 = vld [vmem:[%s10015_s3 + $0xa4] sm:$0xf0]  ;;  %v8614_v31 = vor.u32 %v6998_v27, %v5902_v50  ;;  %v6997_v21 = vld [vmem:[%s10015_s3 + $0xc4] sm:$0xf] }
 0x277   : > { %v1884_v62 = vpop.f32.mrf.mxu2  ;;  %v1728_v53 = vpop.f32.mrf.mxu0  ;;  %v1936_v30 = vmax.f32 %v1877_v2, 0.0  ;;  %v1970_v1 = vpack.c.bf16 %v1940_v24, %v1938_v32  ;;  %v8552_v56 = vor.u32 %v6994_v36, %v5886_v15  ;;  %v5910_v24 = vld [vmem:[%s10015_s3 + $0xd0] sm:$0xf]  ;;  %v6999_v32 = vld [vmem:[%s10015_s3 + $0xd4] sm:$0xf]  ;;  %v7005_v15 = vld [vmem:[%s10016_s4 + $0x20] sm:$0xff] }
 0x278   : > { %v1649_v39 = vpop.f32.mrf.mxu3  ;;  %v1807_v58 = vpop.f32.mrf.mxu1  ;;  %v1885_v46 = vadd.f32 %v1884_v62, %v1806_v6  ;;  %v8535_v6 = vor.u32 %v6991_v63, %v5880_v49  ;;  %v7016_v36 = vld [vmem:[%s10016_s4 + $0x7c] sm:$0xff] }
 0x279   : > { %v1650_v52 = vadd.f32 %v1649_v39, %v8180_v59  ;;  %v1934_v39 = vmax.f32 %v1875_v43, 0.0 }
 0x27a   : > { %v1942_v25 = vmax.f32 %v1885_v46, 0.0  ;;  %v5894_v46 = vld [vmem:[%s10015_s3 + $0xb0] sm:$0xf] }
 0x27b   : > { %v1729_v42 = vadd.f32 %v1728_v53, %v1650_v52  ;;  %v1968_v62 = vpack.c.bf16 %v1936_v30, %v1934_v39  ;;  %v1966_v53 = vpack.c.bf16 %v1932_v11, %v1930_v5  ;;  %v8659_v30 = vor.u32 %v6999_v32, %v5912_v26  ;;  %v7006_v5 = vld [vmem:[%s10016_s4 + $0x28] sm:$0xff]  ;;  %v7001_v26 = vld [vmem:[%s10016_s4] sm:$0xff] }
 0x27d   : > { %v1808_v22 = vadd.f32 %v1807_v58, %v1729_v42  ;;  %2359 = vmatmul.bf16.gmra.mxu3 %v8483_v9  ;;  %v5888_v58 = vld [vmem:[%s10015_s3 + $0xa8] sm:$0xf0] }
 0x27e   : > { %v8567_v20 = vor.u32 %v6993_v18, %v5888_v58  ;;  %v7015_v58 = vld [vmem:[%s10016_s4 + $0x74] sm:$0xff] }
 0x27f   : > { %v1886_v55 = vpop.f32.mrf.mxu2  ;;  %v8494_v48 = vpop.f32.mrf.mxu0 }
 0x280   : > { %v1887_v44 = vadd.f32 %v1886_v55, %v1808_v22  ;;  %v8492_v59 = vpop.f32.mrf.mxu3  ;;  %v6996_v22 = vld [vmem:[%s10015_s3 + $0xb4] sm:$0xf0] }
 0x281   : > { %v8583_v55 = vor.u32 %v6996_v22, %v5894_v46  ;;  %v2125_v50 = vadd.f32 %v8494_v48, %v8492_v59 }
 0x282   : > { %v1944_v28 = vmax.f32 %v1887_v44, 0.0  ;;  %5917 = vmatmul.msk.bf16.gmra.mxu0 %vm1214_vm0, %v8502_v38  ;;  %v5896_v44 = vld [vmem:[%s10015_s3 + $0xb8] sm:$0xf0] }
 0x283   : > { %v8599_v45 = vor.u32 %v6995_v8, %v5896_v44  ;;  %v7014_v8 = vld [vmem:[%s10016_s4 + $0x6c] sm:$0xff] }
 0x284   : > { %v1972_v23 = vpack.c.bf16 %v1944_v28, %v1942_v25  ;;  %v5904_v25 = vld [vmem:[%s10015_s3 + $0xc8] sm:$0xf0] }
 0x285   : > { %2187 = vmatmul.bf16.gmra.mxu1 %v8366_v51  ;;  %v5878_v51 = vld [vmem:[%s10015_s3 + $0x90] sm:$0xf]  ;;  %v8629_v28 = vor.u32 %v6997_v21, %v5904_v25  ;;  %v7002_v44 = vld [vmem:[%s10016_s4 + $0x8] sm:$0xff] }
 0x286   : > { %2205 = vmatpush.bf16.msra.mxu2 %v1972_v23  ;;  %v8521_v52 = vor.u32 %v6992_v13, %v5878_v51  ;;  %v7008_v51 = vld [vmem:[%s10016_s4 + $0x38] sm:$0xff] }
 0x287   : > { %v8513_v14 = vpop.f32.mrf.mxu0  ;;  %2674 = vmatpush.bf16.msra.mxu3 %v7008_v51  ;;  %v7011_v51 = vld [vmem:[%s10016_s4 + $0x54] sm:$0xff] }
 0x288   : > { %v8511_v61 = vpop.f32.mrf.mxu3 }
 0x289   : > { %v2127_v27 = vadd.f32 %v8513_v14, %v8511_v61  ;;  %v7012_v61 = vld [vmem:[%s10016_s4 + $0x5c] sm:$0xff] }
 0x28a   : > { %2206 = vmatpush.bf16.msra.mxu2 %v1970_v1 }
 0x28d   : > { %2364 = vmatmul.bf16.gmra.mxu3 %v8521_v52 }
 0x28e   : > { %2207 = vmatpush.bf16.msra.mxu2 %v1968_v62 }
 0x28f   : > { %v8527_v7 = vpop.f32.mrf.mxu0 }
 0x290   : > { %v8525_v54 = vpop.f32.mrf.mxu3 }
 0x292   : > { %2208 = vmatpush.bf16.msra.mxu2 %v1966_v53  ;;  %5918 = vmatmul.msk.bf16.gmra.mxu0 %vm1214_vm0, %v8535_v6 }
 0x295   : > { %2192 = vmatmul.bf16.gmra.mxu1 %v8401_v17 }
 0x296   : > { %2209 = vmatpush.bf16.msra.mxu2 %v8381_v47 }
 0x297   : > { %v8543_v42 = vpop.f32.mrf.mxu0 }
 0x298   : > { %v8541_v40 = vpop.f32.mrf.mxu3 }
 0x29a   : > { %2210 = vmatpush.bf16.msra.mxu2 %v8353_v16 }
 0x29d   : > { %5839 = vmatmul.msk.bf16.vlgmr.msra.gmra.mxu2 %vm1214_vm0, %v8269_v10  ;;  %2369 = vmatmul.bf16.gmra.mxu3 %v8552_v56 }
 0x29e   : > { %2480 = vmatpush.bf16.msrb.mxu2 %v1972_v23  ;;  %v7000_v23 = vld [vmem:[%s10015_s3 + $0xd4] sm:$0xf0] }
 0x29f   : > { %v8559_v35 = vpop.f32.mrf.mxu0  ;;  %v8644_v33 = vor.u32 %v7000_v23, %v5910_v24 }
 0x2a0   : > { %v8557_v17 = vpop.f32.mrf.mxu3 }
 0x2a2   : > { %2481 = vmatpush.bf16.msrb.mxu2 %v1970_v1  ;;  %5919 = vmatmul.msk.bf16.gmra.mxu0 %vm1214_vm0, %v8567_v20 }
 0x2a5   : > { %2197 = vmatmul.bf16.gmra.mxu1 %v8434_v60 }
 0x2a6   : > { %2482 = vmatpush.bf16.msrb.mxu2 %v1968_v62  ;;  %v7007_v62 = vld [vmem:[%s10016_s4 + $0x30] sm:$0xff] }
 0x2a7   : > { %v8574_v19 = vpop.f32.mrf.mxu0  ;;  %2675 = vmatpush.bf16.msra.mxu3 %v7007_v62 }
 0x2a8   : > { %v8572_v10 = vpop.f32.mrf.mxu3 }
 0x2aa   : > { %2483 = vmatpush.bf16.msrb.mxu2 %v1966_v53  ;;  %v7017_v53 = vld [vmem:[%s10016_s4 + $0x84] sm:$0xff] }
 0x2ab   : > { %2676 = vmatpush.bf16.msra.mxu3 %v7006_v5 }
 0x2ad   : > { %5840 = vmatmul.msk.bf16.gmra.mxu2 %vm1214_vm0, %v8289_v12  ;;  %2374 = vmatmul.bf16.gmra.mxu3 %v8583_v55 }
 0x2ae   : > { %2484 = vmatpush.bf16.msrb.mxu2 %v8381_v47 }
 0x2af   : > { %v8591_v47 = vpop.f32.mrf.mxu0  ;;  %2677 = vmatpush.bf16.msra.mxu3 %v7005_v15 }
 0x2b0   : > { %v8589_v60 = vpop.f32.mrf.mxu3 }
 0x2b2   : > { %2485 = vmatpush.bf16.msrb.mxu2 %v8353_v16  ;;  %5920 = vmatmul.msk.bf16.gmra.mxu0 %vm1214_vm0, %v8599_v45 }
 0x2b5   : > { %2442 = vmatmul.bf16.vlgmr.msrb.gmra.mxu1 %v8457_v34 }
 0x2b7   : > { %v8606_v16 = vpop.f32.mrf.mxu0 }
 0x2b8   : > { %v8604_v12 = vpop.f32.mrf.mxu3 }
 0x2bd   : > { %5841 = vmatmul.msk.bf16.gmra.mxu2 %vm1214_vm0, %v8319_v37  ;;  %2379 = vmatmul.bf16.gmra.mxu3 %v8614_v31 }
 0x2bf   : > { %v8621_v29 = vpop.f32.mrf.mxu0 }
 0x2c0   : > { %v8619_v34 = vpop.f32.mrf.mxu3 }
 0x2c2   : > { %5921 = vmatmul.msk.bf16.gmra.mxu0 %vm1214_vm0, %v8629_v28  ;;  %v8668_v39 = vpop.f32.mrf.mxu1 }
 0x2c5   : > { %2447 = vmatmul.bf16.gmra.mxu1 %v8483_v9 }
 0x2c7   : > { %v8636_v2 = vpop.f32.mrf.mxu0 }
 0x2c8   : > { %v8634_v37 = vpop.f32.mrf.mxu3 }
 0x2cd   : > { %5842 = vmatmul.msk.bf16.gmra.mxu2 %vm1214_vm0, %v8351_v57  ;;  %2384 = vmatmul.bf16.gmra.mxu3 %v8644_v33 }
 0x2cf   : > { %v8651_v43 = vpop.f32.mrf.mxu0 }
 0x2d0   : > { %v8649_v9 = vpop.f32.mrf.mxu3 }
 0x2d2   : > { %5922 = vmatmul.msk.bf16.gmra.mxu0 %vm1214_vm0, %v8659_v30 }
 0x2d5   : > { %2452 = vmatmul.bf16.gmra.mxu1 %v8521_v52  ;;  %v7018_v52 = vld [vmem:[%s10016_s4 + $0x8c] sm:$0xff] }
 0x2d6   : > { %2850 = vmatpush.bf16.msra.mxu1 %v7018_v52 }
 0x2d7   : > { %v8666_v1 = vpop.f32.mrf.mxu0 }
 0x2d8   : > { %v8664_v57 = vpop.f32.mrf.mxu3 }
 0x2da   : > { %2851 = vmatpush.bf16.msra.mxu1 %v7017_v53  ;;  %v2132_v53 = vadd.f32 %v8543_v42, %v8541_v40  ;;  %v2137_v40 = vadd.f32 %v8574_v19, %v8572_v10  ;;  %v2140_v10 = vadd.f32 %v8591_v47, %v8589_v60  ;;  %v2142_v19 = vadd.f32 %v8606_v16, %v8604_v12 }
 0x2db   : > { %v2145_v16 = vadd.f32 %v8621_v29, %v8619_v34 }
 0x2dd   : > { %5843 = vmatmul.msk.bf16.gmra.mxu2 %vm1214_vm0, %v8378_v41  ;;  %v8686_v41 = vpop.f32.mrf.mxu1 }
 0x2de   : > { %2852 = vmatpush.bf16.msra.mxu1 %v7016_v36 }
 0x2df   : > { %v8677_v11 = vpop.f32.mrf.mxu0 }
 0x2e0   : > { %v8675_v13 = vpop.f32.mrf.mxu3 }
 0x2e2   : > { %2853 = vmatpush.bf16.msra.mxu1 %v7015_v58 }
 0x2e5   : > { %2457 = vmatmul.bf16.gmra.mxu1 %v8552_v56  ;;  %v7004_v56 = vld [vmem:[%s10016_s4 + $0x18] sm:$0xff]  ;;  %v8709_v18 = vpop.f32.mrf.mxu1 }
 0x2e6   : > { %2678 = vmatpush.bf16.msra.mxu3 %v7004_v56  ;;  %2854 = vmatpush.bf16.msra.mxu1 %v7014_v8 }
 0x2e7   : > { %v8696_v49 = vpop.f32.mrf.mxu0 }
 0x2e8   : > { %v8694_v63 = vpop.f32.mrf.mxu3 }
 0x2ed   : > { %5844 = vmatmul.msk.bf16.gmra.mxu2 %vm1214_vm0, %v8416_v0  ;;  %v7003_v0 = vld [vmem:[%s10016_s4 + $0x10] sm:$0xff]  ;;  %v8731_v24 = vpop.f32.mrf.mxu1 }
 0x2ee   : > { %2679 = vmatpush.bf16.msra.mxu3 %v7003_v0 }
 0x2ef   : > { %v2399_v22 = vpop.f32.mrf.mxu0 }
 0x2f0   : > { %v2355_v46 = vpop.f32.mrf.mxu3 }
 0x2f1   : > { %v2400_v23 = vadd.f32 %v2399_v22, %v2355_v46 }
 0x2f2   : > { %2680 = vmatpush.bf16.msra.mxu3 %v7002_v44 }
 0x2f3   : > { %v2522_v59 = vmax.f32 %v2125_v50, %v2400_v23 }
 0x2f5   : > { %2462 = vmatmul.bf16.gmra.mxu1 %v8583_v55  ;;  %v7013_v55 = vld [vmem:[%s10016_s4 + $0x64] sm:$0xff]  ;;  %v8744_v5 = vpop.f32.mrf.mxu1 }
 0x2f6   : > { %2855 = vmatpush.bf16.msra.mxu1 %v7013_v55  ;;  %2681 = vmatpush.bf16.msra.mxu3 %v7001_v26 }
 0x2f7   : > { %v2401_v25 = vpop.f32.mrf.mxu0 }
 0x2f8   : > { %v2357_v21 = vpop.f32.mrf.mxu3 }
 0x2f9   : > { %v2402_v32 = vadd.f32 %v2401_v25, %v2357_v21 }
 0x2fa   : > { %2856 = vmatpush.bf16.msra.mxu1 %v7012_v61 }
 0x2fb   : > { %v2524_v48 = vmax.f32 %v2127_v27, %v2402_v32 }
 0x2fd   : > { %5845 = vmatmul.msk.bf16.gmra.mxu2 %vm1214_vm0, %v8446_v4  ;;  %v2550_v14 = vpack.c.bf16 %v2524_v48, %v2522_v59  ;;  %v2130_v4 = vadd.f32 %v8527_v7, %v8525_v54  ;;  %v8753_v0 = vpop.f32.mrf.mxu1  ;;  %v2135_v54 = vadd.f32 %v8559_v35, %v8557_v17 }
 0x2fe   : > { %2857 = vmatpush.bf16.msra.mxu1 %v7011_v51 }
 0x2ff   : > { %2682 = vmatmul.bf16.vlgmr.msra.gmra.mxu3 %v2550_v14  ;;  %v2404_v52 = vpop.f32.mrf.mxu0 }
 0x300   : > { %v2360_v62 = vpop.f32.mrf.mxu3 }
 0x301   : > { %v2405_v56 = vadd.f32 %v2404_v52, %v2360_v62 }
 0x303   : > { %v2526_v46 = vmax.f32 %v2130_v4, %v2405_v56 }
 0x305   : > { %2467 = vmatmul.bf16.gmra.mxu1 %v8614_v31  ;;  %v8758_v7 = vpop.f32.mrf.mxu1 }
 0x307   : > { %v2406_v36 = vpop.f32.mrf.mxu0 }
 0x308   : > { %v2362_v15 = vpop.f32.mrf.mxu3 }
 0x309   : > { %v2407_v58 = vadd.f32 %v2406_v36, %v2362_v15 }
 0x30b   : > { %v2528_v22 = vmax.f32 %v2132_v53, %v2407_v58  ;;  %v2147_v53 = vadd.f32 %v8636_v2, %v8634_v37  ;;  %v2150_v37 = vadd.f32 %v8651_v43, %v8649_v9  ;;  %v2152_v2 = vadd.f32 %v8666_v1, %v8664_v57 }
 0x30c   : > { %v2155_v1 = vadd.f32 %v8677_v11, %v8675_v13 }
 0x30d   : > { %5923 = vmatmul.msk.bf16.vlgmr.msrb.gmra.mxu2 %vm1214_vm0, %v8467_v3  ;;  %v2552_v8 = vpack.c.bf16 %v2528_v22, %v2526_v46  ;;  %v8766_v35 = vpop.f32.mrf.mxu1 }
 0x30f   : > { %2687 = vmatmul.bf16.gmra.mxu3 %v2552_v8  ;;  %v2409_v44 = vpop.f32.mrf.mxu0 }
 0x310   : > { %v2365_v31 = vpop.f32.mrf.mxu3 }
 0x311   : > { %v2410_v27 = vadd.f32 %v2409_v44, %v2365_v31 }
 0x313   : > { %v2530_v55 = vmax.f32 %v2135_v54, %v2410_v27 }
 0x315   : > { %2472 = vmatmul.bf16.gmra.mxu1 %v8644_v33  ;;  %v8774_v61 = vpop.f32.mrf.mxu1 }
 0x317   : > { %v2411_v50 = vpop.f32.mrf.mxu0 }
 0x318   : > { %v2367_v42 = vpop.f32.mrf.mxu3 }
 0x319   : > { %v2412_v3 = vadd.f32 %v2411_v50, %v2367_v42 }
 0x31b   : > { %v2532_v21 = vmax.f32 %v2137_v40, %v2412_v3 }
 0x31d   : > { %5924 = vmatmul.msk.bf16.gmra.mxu2 %vm1214_vm0, %v8502_v38  ;;  %v2554_v25 = vpack.c.bf16 %v2532_v21, %v2530_v55  ;;  %v8780_v47 = vpop.f32.mrf.mxu1 }
 0x31f   : > { %2692 = vmatmul.bf16.gmra.mxu3 %v2554_v25  ;;  %v2414_v17 = vpop.f32.mrf.mxu0 }
 0x320   : > { %v8764_v23 = vpop.f32.mrf.mxu2  ;;  %v2370_v33 = vpop.f32.mrf.mxu3 }
 0x321   : > { %v2415_v38 = vadd.f32 %v2414_v17, %v2370_v33  ;;  %v2157_v33 = vadd.f32 %v8696_v49, %v8694_v63  ;;  %v2584_v63 = vld [vmem:[%s10016_s4 + $0x50] sm:$0xf] }
 0x323   : > { %v2534_v51 = vmax.f32 %v2140_v10, %v2415_v38 }
 0x325   : > { %2858 = vmatmul.bf16.vlgmr.msra.gmra.mxu1 %v2550_v14  ;;  %v8792_v31 = vpop.f32.mrf.mxu1 }
 0x327   : > { %v2416_v59 = vpop.f32.mrf.mxu0 }
 0x328   : > { %v8768_v32 = vpop.f32.mrf.mxu2  ;;  %v2372_v26 = vpop.f32.mrf.mxu3 }
 0x329   : > { %v2417_v48 = vadd.f32 %v2416_v59, %v2372_v26 }
 0x32b   : > { %v2536_v62 = vmax.f32 %v2142_v19, %v2417_v48 }
 0x32d   : > { %5925 = vmatmul.msk.bf16.gmra.mxu2 %vm1214_vm0, %v8535_v6  ;;  %v2556_v14 = vpack.c.bf16 %v2536_v62, %v2534_v51  ;;  %v2626_v62 = vunpack.c.l.b16 %v2584_v63 }
 0x32f   : > { %2697 = vmatmul.bf16.gmra.mxu3 %v2556_v14  ;;  %v2419_v60 = vpop.f32.mrf.mxu0 }
 0x330   : > { %v8778_v52 = vpop.f32.mrf.mxu2  ;;  %v2375_v4 = vpop.f32.mrf.mxu3 }
 0x331   : > { %v2420_v6 = vadd.f32 %v2419_v60, %v2375_v4  ;;  %v2637_v4 = vpack.c.b16 %v2626_v62, %v2626_v62 }
 0x333   : > { %v2538_v58 = vmax.f32 %v2145_v16, %v2420_v6 }
 0x335   : > { %2863 = vmatmul.bf16.gmra.mxu1 %v2552_v8 }
 0x337   : > { %v2421_v36 = vpop.f32.mrf.mxu0 }
 0x338   : > { %v8782_v12 = vpop.f32.mrf.mxu2  ;;  %v2377_v15 = vpop.f32.mrf.mxu3 }
 0x339   : > { %v2422_v56 = vadd.f32 %v2421_v36, %v2377_v15  ;;  %v7020_v36 = vld [vmem:[%s10016_s4 + $0x9c] sm:$0xff] }
 0x33b   : > { %v2540_v46 = vmax.f32 %v2147_v53, %v2422_v56  ;;  %v2672_v53 = vsel %vm2670_vm1, %v2637_v4, 0  ;;  %v7009_v56 = vld [vmem:[%s10016_s4 + $0x40] sm:$0xff] }
 0x33c   : > { %2723 = vmatpush.bf16.msra.mxu0 %v2672_v53 }
 0x33d   : > { %5926 = vmatmul.msk.bf16.gmra.mxu2 %vm1214_vm0, %v8567_v20  ;;  %v2558_v22 = vpack.c.bf16 %v2540_v46, %v2538_v58  ;;  %v8800_v20 = vpop.f32.mrf.mxu1  ;;  %v7019_v58 = vld [vmem:[%s10016_s4 + $0x94] sm:$0xff] }
 0x33f   : > { %2702 = vmatmul.bf16.gmra.mxu3 %v2558_v22  ;;  %v2424_v34 = vpop.f32.mrf.mxu0 }
 0x340   : > { %v8790_v8 = vpop.f32.mrf.mxu2  ;;  %v2380_v44 = vpop.f32.mrf.mxu3 }
 0x341   : > { %v2425_v42 = vadd.f32 %v2424_v34, %v2380_v44 }
 0x343   : > { %v2542_v27 = vmax.f32 %v2150_v37, %v2425_v42  ;;  %v2215_v42 = vadd.f32 %v8768_v32, %v8686_v41  ;;  %v2220_v41 = vadd.f32 %v8782_v12, %v8731_v24 }
 0x345   : > { %2868 = vmatmul.bf16.gmra.mxu1 %v2554_v25  ;;  %v8806_v43 = vpop.f32.mrf.mxu1 }
 0x347   : > { %v2426_v40 = vpop.f32.mrf.mxu0 }
 0x348   : > { %v8794_v29 = vpop.f32.mrf.mxu2  ;;  %v2382_v54 = vpop.f32.mrf.mxu3 }
 0x349   : > { %v2427_v50 = vadd.f32 %v2426_v40, %v2382_v54  ;;  %v2213_v40 = vadd.f32 %v8764_v23, %v8668_v39  ;;  %v2218_v39 = vadd.f32 %v8778_v52, %v8709_v18  ;;  %v2225_v18 = vadd.f32 %v8794_v29, %v8753_v0 }
 0x34b   : > { %v2544_v3 = vmax.f32 %v2152_v2, %v2427_v50 }
 0x34d   : > { %5927 = vmatmul.msk.bf16.gmra.mxu2 %vm1214_vm0, %v8599_v45  ;;  %v2560_v55 = vpack.c.bf16 %v2544_v3, %v2542_v27  ;;  %v8816_v38 = vpop.f32.mrf.mxu1 }
 0x34f   : > { %2707 = vmatmul.bf16.gmra.mxu3 %v2560_v55  ;;  %v2429_v9 = vpop.f32.mrf.mxu0 }
 0x350   : > { %v8804_v21 = vpop.f32.mrf.mxu2  ;;  %v2385_v25 = vpop.f32.mrf.mxu3 }
 0x351   : > { %v2430_v45 = vadd.f32 %v2429_v9, %v2385_v25 }
 0x353   : > { %v2546_v26 = vmax.f32 %v2155_v1, %v2430_v45 }
 0x355   : > { %2873 = vmatmul.bf16.gmra.mxu1 %v2556_v14  ;;  %v2443_v11 = vpop.f32.mrf.mxu1 }
 0x357   : > { %v2431_v10 = vpop.f32.mrf.mxu0 }
 0x358   : > { %v8808_v57 = vpop.f32.mrf.mxu2  ;;  %v2387_v17 = vpop.f32.mrf.mxu3 }
 0x359   : > { %v2432_v19 = vadd.f32 %v2431_v10, %v2387_v17 }
 0x35b   : > { %v2548_v59 = vmax.f32 %v2157_v33, %v2432_v19 }
 0x35d   : > { %5928 = vmatmul.msk.bf16.gmra.mxu2 %vm1214_vm0, %v8629_v28  ;;  %v2562_v48 = vpack.c.bf16 %v2548_v59, %v2546_v26  ;;  %v5997_v28 = vld [vmem:[%s10016_s4 + $0xa4] sm:$0xf]  ;;  %v2445_v16 = vpop.f32.mrf.mxu1 }
 0x35e   : > { %v2825_v14 = vunpack.c.l.b16 %v5997_v28 }
 0x35f   : > { %2712 = vmatmul.bf16.gmra.mxu3 %v2562_v48 }
 0x360   : > { %v8818_v51 = vpop.f32.mrf.mxu2  ;;  %v2836_v60 = vpack.c.b16 %v2825_v14, %v2825_v14 }
 0x362   : > { %v2848_v15 = vsel %vm2670_vm1, %v2836_v60, 0 }
 0x363   : > { %2899 = vmatpush.bf16.msra.mxu2 %v2848_v15 }
 0x365   : > { %2878 = vmatmul.bf16.gmra.mxu1 %v2558_v22  ;;  %v2448_v46 = vpop.f32.mrf.mxu1 }
 0x367   : > { %2900 = vmatpush.bf16.msra.mxu2 %v7020_v36 }
 0x368   : > { %v8820_v13 = vpop.f32.mrf.mxu2 }
 0x36b   : > { %2901 = vmatpush.bf16.msra.mxu2 %v7019_v58  ;;  %v2233_v58 = vadd.f32 %v8818_v51, %v8774_v61 }
 0x36d   : > { %5929 = vmatmul.msk.bf16.gmra.mxu2 %vm1214_vm0, %v8659_v30  ;;  %v7010_v30 = vld [vmem:[%s10016_s4 + $0x48] sm:$0xff]  ;;  %v2450_v44 = vpop.f32.mrf.mxu1 }
 0x36e   : > { %2724 = vmatpush.bf16.msra.mxu0 %v7010_v30 }
 0x370   : > { %v8830_v49 = vpop.f32.mrf.mxu2 }
 0x372   : > { %2725 = vmatpush.bf16.msra.mxu0 %v7009_v56 }
 0x375   : > { %2883 = vmatmul.bf16.gmra.mxu1 %v2560_v55  ;;  %v2453_v25 = vpop.f32.mrf.mxu1 }
 0x378   : > { %v8838_v6 = vpop.f32.mrf.mxu2 }
 0x379   : > { %v2240_v61 = vadd.f32 %v8838_v6, %v8800_v20 }
 0x37d   : > { %v2455_v17 = vpop.f32.mrf.mxu1 }
 0x380   : > { %v8846_v22 = vpop.f32.mrf.mxu2 }
 0x385   : > { %2888 = vmatmul.bf16.gmra.mxu1 %v2562_v48  ;;  %v2458_v26 = vpop.f32.mrf.mxu1 }
 0x388   : > { %v8848_v34 = vpop.f32.mrf.mxu2 }
 0x38d   : > { %v2460_v63 = vpop.f32.mrf.mxu1 }
 0x390   : > { %v2487_v37 = vpop.f32.mrf.mxu2 }
 0x391   : > { %v2488_v2 = vadd.f32 %v2487_v37, %v2443_v11  ;;  %v2223_v11 = vadd.f32 %v8790_v8, %v8744_v5  ;;  %v2230_v5 = vadd.f32 %v8808_v57, %v8766_v35 }
 0x393   : > { %v2523_v27 = vmax.f32 %v2213_v40, %v2488_v2 }
 0x395   : > { %v2463_v14 = vpop.f32.mrf.mxu1 }
 0x398   : > { %v2489_v54 = vpop.f32.mrf.mxu2 }
 0x399   : > { %v2490_v50 = vadd.f32 %v2489_v54, %v2445_v16  ;;  %v2228_v16 = vadd.f32 %v8804_v21, %v8758_v7  ;;  %v2235_v7 = vadd.f32 %v8820_v13, %v8780_v47 }
 0x39b   : > { %v2525_v3 = vmax.f32 %v2215_v42, %v2490_v50  ;;  %v2238_v42 = vadd.f32 %v8830_v49, %v8792_v31  ;;  %v2245_v31 = vadd.f32 %v8848_v34, %v8816_v38 }
 0x39d   : > { %v2551_v55 = vpack.c.bf16 %v2525_v3, %v2523_v27  ;;  %v2465_v30 = vpop.f32.mrf.mxu1 }
 0x39f   : > { %5970 = vmatmul.msk.bf16.vlgmr.msra.gmra.mxu0 %vm2648_vm2, %v2551_v55  ;;  %6038 = vmatmul.msk.bf16.vlgmr.msra.gmra.mxu2 %vm2648_vm2, %v2551_v55 }
 0x3a0   : > { %v2492_v9 = vpop.f32.mrf.mxu2 }
 0x3a1   : > { %v2493_v1 = vadd.f32 %v2492_v9, %v2448_v46 }
 0x3a3   : > { %v2527_v32 = vmax.f32 %v2218_v39, %v2493_v1  ;;  %v2243_v1 = vadd.f32 %v8846_v22, %v8806_v43 }
 0x3a5   : > { %v2468_v35 = vpop.f32.mrf.mxu1 }
 0x3a8   : > { %v2494_v33 = vpop.f32.mrf.mxu2 }
 0x3a9   : > { %v2495_v23 = vadd.f32 %v2494_v33, %v2450_v44 }
 0x3ab   : > { %v2529_v10 = vmax.f32 %v2220_v41, %v2495_v23 }
 0x3ad   : > { %v2553_v45 = vpack.c.bf16 %v2529_v10, %v2527_v32  ;;  %v2470_v2 = vpop.f32.mrf.mxu1 }
 0x3af   : > { %5971 = vmatmul.msk.bf16.gmra.mxu0 %vm2648_vm2, %v2553_v45  ;;  %6039 = vmatmul.msk.bf16.gmra.mxu2 %vm2648_vm2, %v2553_v45 }
 0x3b0   : > { %v2497_v19 = vpop.f32.mrf.mxu2 }
 0x3b1   : > { %v2498_v59 = vadd.f32 %v2497_v19, %v2453_v25 }
 0x3b3   : > { %v2531_v24 = vmax.f32 %v2223_v11, %v2498_v59 }
 0x3b5   : > { %v2473_v27 = vpop.f32.mrf.mxu1 }
 0x3b8   : > { %v2499_v48 = vpop.f32.mrf.mxu2 }
 0x3b9   : > { %v2500_v52 = vadd.f32 %v2499_v48, %v2455_v17  ;;  %v2683_v17 = vpop.f32.mrf.mxu3 }
 0x3bb   : > { %v2533_v12 = vmax.f32 %v2225_v18, %v2500_v52 }
 0x3bd   : > { %v2555_v28 = vpack.c.bf16 %v2533_v12, %v2531_v24  ;;  %v2475_v25 = vpop.f32.mrf.mxu1 }
 0x3bf   : > { %5972 = vmatmul.msk.bf16.gmra.mxu0 %vm2648_vm2, %v2555_v28  ;;  %6040 = vmatmul.msk.bf16.gmra.mxu2 %vm2648_vm2, %v2555_v28 }
 0x3c0   : > { %v2502_v62 = vpop.f32.mrf.mxu2 }
 0x3c1   : > { %v2503_v4 = vadd.f32 %v2502_v62, %v2458_v26  ;;  %v8892_v41 = vpop.f32.mrf.mxu3 }
 0x3c3   : > { %v2535_v8 = vmax.f32 %v2228_v16, %v2503_v4 }
 0x3c5   : > { %v2859_v39 = vpop.f32.mrf.mxu1 }
 0x3c8   : > { %v2504_v60 = vpop.f32.mrf.mxu2 }
 0x3c9   : > { %v2505_v0 = vadd.f32 %v2504_v60, %v2460_v63  ;;  %v2688_v32 = vpop.f32.mrf.mxu3 }
 0x3cb   : > { %v2537_v29 = vmax.f32 %v2230_v5, %v2505_v0 }
 0x3cd   : > { %v2557_v53 = vpack.c.bf16 %v2537_v29, %v2535_v8  ;;  %v8894_v23 = vpop.f32.mrf.mxu1 }
 0x3cf   : > { %5973 = vmatmul.msk.bf16.gmra.mxu0 %vm2648_vm2, %v2557_v53  ;;  %6041 = vmatmul.msk.bf16.gmra.mxu2 %vm2648_vm2, %v2557_v53 }
 0x3d0   : > { %v2507_v15 = vpop.f32.mrf.mxu2 }
 0x3d1   : > { %v2508_v36 = vadd.f32 %v2507_v15, %v2463_v14  ;;  %v8904_v26 = vpop.f32.mrf.mxu3 }
 0x3d3   : > { %v2539_v57 = vmax.f32 %v2233_v58, %v2508_v36 }
 0x3d5   : > { %v2864_v43 = vpop.f32.mrf.mxu1 }
 0x3d8   : > { %v2509_v56 = vpop.f32.mrf.mxu2 }
 0x3d9   : > { %v2510_v21 = vadd.f32 %v2509_v56, %v2465_v30  ;;  %v2693_v18 = vpop.f32.mrf.mxu3 }
 0x3db   : > { %v2541_v46 = vmax.f32 %v2235_v7, %v2510_v21 }
 0x3dd   : > { %v2559_v44 = vpack.c.bf16 %v2541_v46, %v2539_v57  ;;  %v8906_v59 = vpop.f32.mrf.mxu1 }
 0x3df   : > { %5974 = vmatmul.msk.bf16.gmra.mxu0 %vm2648_vm2, %v2559_v44  ;;  %6042 = vmatmul.msk.bf16.gmra.mxu2 %vm2648_vm2, %v2559_v44 }
 0x3e0   : > { %v2512_v37 = vpop.f32.mrf.mxu2 }
 0x3e1   : > { %v2513_v54 = vadd.f32 %v2512_v37, %v2468_v35  ;;  %v8918_v14 = vpop.f32.mrf.mxu3 }
 0x3e3   : > { %v2543_v51 = vmax.f32 %v2238_v42, %v2513_v54 }
 0x3e5   : > { %v2869_v52 = vpop.f32.mrf.mxu1 }
 0x3e8   : > { %v2514_v40 = vpop.f32.mrf.mxu2 }
 0x3e9   : > { %v2515_v47 = vadd.f32 %v2514_v40, %v2470_v2  ;;  %v2698_v29 = vpop.f32.mrf.mxu3  ;;  %v8951_v2 = vld [vmem:[%s10017_s5 + $0xa8] sm:$0x33] }
 0x3ea   : > { %10136 = vst [vmem:[#allocation12_spill] sm:$0xff] %v8951_v2  ;;  %v3193_v40 = vunpack.c.l.b16 %v8951_v2 }
 0x3eb   : > { %v2545_v13 = vmax.f32 %v2240_v61, %v2515_v47 }
 0x3ec   : > { %v3205_v61 = vpack.c.b16 %v3193_v40, %v3193_v40 }
 0x3ed   : > { %v2561_v50 = vpack.c.bf16 %v2545_v13, %v2543_v51  ;;  %v8920_v4 = vpop.f32.mrf.mxu1  ;;  %v6150_v13 = vld [vmem:[%s10017_s5 + $0x98] sm:$0xf] }
 0x3ee   : > { %v3235_v51 = vsel %vm3233_vm3, %v3205_v61, 0 }
 0x3ef   : > { %5975 = vmatmul.msk.bf16.gmra.mxu0 %vm2648_vm2, %v2561_v50  ;;  %6043 = vmatmul.msk.bf16.gmra.mxu2 %vm2648_vm2, %v2561_v50  ;;  %v7050_v50 = vld [vmem:[%s10017_s5 + $0x9c] sm:$0xf0] }
 0x3f0   : > { %v2517_v3 = vpop.f32.mrf.mxu2  ;;  %3242 = vmatpush.bf16.msrb.mxu1 %v3235_v51 }
 0x3f1   : > { %v2518_v55 = vadd.f32 %v2517_v3, %v2473_v27  ;;  %v8936_v7 = vpop.f32.mrf.mxu3  ;;  %v6151_v27 = vor.u32 %v7050_v50, %v6150_v13 }
 0x3f3   : > { %v2547_v49 = vmax.f32 %v2243_v1, %v2518_v55  ;;  %v7048_v1 = vld [vmem:[%s10017_s5 + $0x8c] sm:$0xf0] }
 0x3f4   : > { %3243 = vmatpush.bf16.msrb.mxu1 %v6151_v27 }
 0x3f5   : > { %v2874_v53 = vpop.f32.mrf.mxu1 }
 0x3f8   : > { %v2519_v9 = vpop.f32.mrf.mxu2 }
 0x3f9   : > { %v2520_v20 = vadd.f32 %v2519_v9, %v2475_v25  ;;  %v8946_v37 = vpop.f32.mrf.mxu3  ;;  %v6142_v9 = vld [vmem:[%s10017_s5 + $0x88] sm:$0xf] }
 0x3fb   : > { %v2549_v6 = vmax.f32 %v2245_v31, %v2520_v20  ;;  %v6143_v31 = vor.u32 %v7048_v1, %v6142_v9 }
 0x3fd   : > { %v2563_v33 = vpack.c.bf16 %v2549_v6, %v2547_v49  ;;  %v8938_v21 = vpop.f32.mrf.mxu1  ;;  %3244 = vmatpush.bf16.msrb.mxu1 %v6143_v31  ;;  %v6134_v49 = vld [vmem:[%s10017_s5 + $0x78] sm:$0xf]  ;;  %v7046_v6 = vld [vmem:[%s10017_s5 + $0x7c] sm:$0xf0] }
 0x3ff   : > { %5976 = vmatmul.msk.bf16.gmra.mxu0 %vm2648_vm2, %v2563_v33  ;;  %6044 = vmatmul.msk.bf16.gmra.mxu2 %vm2648_vm2, %v2563_v33  ;;  %v6135_v33 = vor.u32 %v7046_v6, %v6134_v49 }
 0x401   : > { %v2705_v3 = vpop.f32.mrf.mxu3  ;;  %3245 = vmatpush.bf16.msrb.mxu1 %v6135_v33 }
 0x405   : > { %v2879_v54 = vpop.f32.mrf.mxu1 }
 0x40d   : > { %v2881_v55 = vpop.f32.mrf.mxu1 }
 0x41c   : > { %v2727_v10 = vpop.f32.mrf.mxu0 }
 0x41d   : > { %v8896_v45 = vadd.f32 %v2727_v10, %v2683_v17  ;;  %v2708_v10 = vpop.f32.mrf.mxu3 }
 0x422   : > { %v2903_v22 = vpop.f32.mrf.mxu2 }
 0x423   : > { %v8898_v38 = vadd.f32 %v2903_v22, %v2859_v39  ;;  %v6126_v39 = vld [vmem:[%s10017_s5 + $0x68] sm:$0xf]  ;;  %v2884_v22 = vpop.f32.mrf.mxu1 }
 0x424   : > { %v8900_v34 = vpop.f32.mrf.mxu0 }
 0x42a   : > { %v8908_v48 = vpop.f32.mrf.mxu2 }
 0x42c   : > { %v2732_v11 = vpop.f32.mrf.mxu0 }
 0x42d   : > { %v8910_v12 = vadd.f32 %v2732_v11, %v2688_v32  ;;  %v7044_v32 = vld [vmem:[%s10017_s5 + $0x6c] sm:$0xf0] }
 0x432   : > { %v2908_v24 = vpop.f32.mrf.mxu2 }
 0x433   : > { %v8912_v63 = vadd.f32 %v2908_v24, %v2864_v43  ;;  %v6127_v43 = vor.u32 %v7044_v32, %v6126_v39 }
 0x434   : > { %v8914_v28 = vpop.f32.mrf.mxu0 }
 0x435   : > { %3246 = vmatpush.bf16.msrb.mxu1 %v6127_v43 }
 0x43a   : > { %v8922_v60 = vpop.f32.mrf.mxu2 }
 0x43c   : > { %v2737_v16 = vpop.f32.mrf.mxu0 }
 0x43d   : > { %v8924_v0 = vadd.f32 %v2737_v16, %v2693_v18  ;;  %v6118_v18 = vld [vmem:[%s10017_s5 + $0x58] sm:$0xf] }
 0x442   : > { %v2913_v5 = vpop.f32.mrf.mxu2 }
 0x443   : > { %v8926_v8 = vadd.f32 %v2913_v5, %v2869_v52  ;;  %v7042_v52 = vld [vmem:[%s10017_s5 + $0x5c] sm:$0xf0] }
 0x444   : > { %v8928_v15 = vpop.f32.mrf.mxu0  ;;  %v6119_v24 = vor.u32 %v7042_v52, %v6118_v18 }
 0x446   : > { %3247 = vmatpush.bf16.msrb.mxu1 %v6119_v24 }
 0x44a   : > { %v8932_v36 = vpop.f32.mrf.mxu2 }
 0x44c   : > { %v2742_v56 = vpop.f32.mrf.mxu0 }
 0x44d   : > { %v8934_v58 = vadd.f32 %v2742_v56, %v2698_v29  ;;  %v2710_v29 = vpop.f32.mrf.mxu3 }
 0x452   : > { %v2918_v35 = vpop.f32.mrf.mxu2 }
 0x453   : > { %v8940_v57 = vadd.f32 %v2918_v35, %v2874_v53  ;;  %v2886_v53 = vpop.f32.mrf.mxu1 }
 0x454   : > { %v8942_v46 = vpop.f32.mrf.mxu0 }
 0x455   : > { %v2713_v40 = vpop.f32.mrf.mxu3 }
 0x45a   : > { %v8954_v42 = vpop.f32.mrf.mxu2 }
 0x45b   : > { %v2889_v61 = vpop.f32.mrf.mxu1 }
 0x45c   : > { %v8956_v47 = vpop.f32.mrf.mxu0 }
 0x45d   : > { %v2715_v50 = vpop.f32.mrf.mxu3 }
 0x462   : > { %v2923_v25 = vpop.f32.mrf.mxu2 }
 0x463   : > { %v2891_v9 = vpop.f32.mrf.mxu1  ;;  %v2924_v30 = vadd.f32 %v2923_v25, %v2879_v54  ;;  %v2745_v54 = vadd.f32 %v8942_v46, %v8936_v7  ;;  %v2916_v25 = vadd.f32 %v8932_v36, %v8920_v4  ;;  %v10137_v46 = vmax.f32 %v8934_v58, %v8940_v57  ;;  %v9024_v36 = vld [vmem:[%s10017_s5 + $0x50] sm:$0x33] }
 0x464   : > { %v2749_v20 = vpop.f32.mrf.mxu0  ;;  %v3340_v57 = vunpack.c.h.b16 %v9024_v36 }
 0x465   : > { %v2750_v44 = vadd.f32 %v2749_v20, %v2705_v3  ;;  %v7030_v20 = vld [vmem:[%s10017_s5 + $0x24] sm:$0xf] }
 0x46a   : > { %v2925_v17 = vpop.f32.mrf.mxu2 }
 0x46b   : > { %v2926_v52 = vadd.f32 %v2925_v17, %v2881_v55 }
 0x46c   : > { %v2752_v11 = vpop.f32.mrf.mxu0 }
 0x46d   : > { %v2753_v24 = vadd.f32 %v2752_v11, %v2708_v10  ;;  %v2947_v55 = vmax.f32 %v2750_v44, %v2926_v52  ;;  %v7021_v44 = vld [vmem:[%s10019_s7] sm:$0xff]  ;;  %v6186_v10 = vld [vmem:[%s10017_s5 + $0x28] sm:$0xf0] }
 0x46e   : > { %v6189_v11 = vor.u32 %v7030_v20, %v6186_v10  ;;  %v7039_v52 = vld [vmem:[%s10019_s7 + $0x40] sm:$0xff]  ;;  %v7043_v10 = vld [vmem:[%s10017_s5 + $0x6c] sm:$0xf] }
 0x472   : > { %v2928_v16 = vpop.f32.mrf.mxu2 }
 0x473   : > { %v2929_v39 = vadd.f32 %v2928_v16, %v2884_v22  ;;  %v2921_v22 = vadd.f32 %v8954_v42, %v8938_v21  ;;  %v2748_v16 = vadd.f32 %v8956_v47, %v8946_v37  ;;  %v7032_v37 = vld [vmem:[%s10017_s5 + $0x34] sm:$0xf] }
 0x474   : > { %v2754_v5 = vpop.f32.mrf.mxu0 }
 0x475   : > { %v2755_v32 = vadd.f32 %v2754_v5, %v2710_v29  ;;  %v2948_v2 = vmax.f32 %v2753_v24, %v2929_v39  ;;  %v2946_v3 = vmax.f32 %v2748_v16, %v2924_v30  ;;  %v2945_v21 = vmax.f32 %v2745_v54, %v2921_v22  ;;  %v7028_v5 = vld [vmem:[%s10017_s5 + $0x14] sm:$0xf]  ;;  %v6178_v29 = vld [vmem:[%s10017_s5 + $0x18] sm:$0xf0]  ;;  %v7033_v39 = vld [vmem:[%s10017_s5 + $0x34] sm:$0xf0] }
 0x476   : > { %v2911_v30 = vadd.f32 %v8922_v60, %v8906_v59  ;;  %v2906_v59 = vadd.f32 %v8908_v48, %v8894_v23  ;;  %v10139_v23 = vmax.f32 %v8910_v12, %v8912_v63  ;;  %v7034_v12 = vld [vmem:[%s10017_s5 + $0x44] sm:$0xf]  ;;  %v6202_v63 = vld [vmem:[%s10017_s5 + $0x48] sm:$0xf0]  ;;  %v7024_v24 = vld [vmem:[%s10019_s7 + $0x18] sm:$0xff] }
 0x477   : > { %v9007_v42 = vpack.c.bf16 %v2947_v55, %v2946_v3  ;;  %v9019_v4 = vpack.c.bf16 %v2945_v21, %v10137_v46  ;;  %v9151_v22 = vld [vmem:[%s10017_s5 + $0x100] sm:$0x33]  ;;  %v6176_v55 = vld [vmem:[%s10017_s5 + $0x10] sm:$0xf]  ;;  %v7029_v54 = vld [vmem:[%s10017_s5 + $0x14] sm:$0xf0] }
 0x478   : > { %v3586_v3 = vunpack.c.h.b16 %v9151_v22  ;;  %v6168_v21 = vld [vmem:[%s10017_s5] sm:$0xf] }
 0x47a   : > { %v2930_v56 = vpop.f32.mrf.mxu2 }
 0x47b   : > { %v2931_v31 = vadd.f32 %v2930_v56, %v2886_v53  ;;  %v6181_v53 = vor.u32 %v7028_v5, %v6178_v29  ;;  %v7026_v56 = vld [vmem:[%s10017_s5 + $0x4] sm:$0xf]  ;;  %v7060_v29 = vld [vmem:[%s10017_s5 + $0xd4] sm:$0xf] }
 0x47c   : > { %v2757_v35 = vpop.f32.mrf.mxu0 }
 0x47d   : > { %v2758_v49 = vadd.f32 %v2757_v35, %v2713_v40  ;;  %v2949_v19 = vmax.f32 %v2755_v32, %v2931_v31  ;;  %v6170_v35 = vld [vmem:[%s10017_s5 + $0x8] sm:$0xf0]  ;;  %v7037_v40 = vld [vmem:[%s10019_s7 + $0x30] sm:$0xff]  ;;  %v7035_v31 = vld [vmem:[%s10017_s5 + $0x44] sm:$0xf0] }
 0x47f   : > { %v8998_v17 = vpack.c.bf16 %v2949_v19, %v2948_v2  ;;  %v2740_v19 = vadd.f32 %v8928_v15, %v8918_v14  ;;  %v2735_v14 = vadd.f32 %v8914_v28, %v8904_v26  ;;  %v10138_v15 = vmax.f32 %v8924_v0, %v8926_v8  ;;  %v6194_v2 = vld [vmem:[%s10017_s5 + $0x38] sm:$0xf0] }
 0x480   : > { %v2730_v26 = vadd.f32 %v8900_v34, %v8892_v41  ;;  %v3352_v0 = vpack.c.b16 %v3340_v57, %v3340_v57  ;;  %v10140_v41 = vmax.f32 %v8896_v45, %v8898_v38  ;;  %v7036_v45 = vld [vmem:[%s10019_s7 + $0x28] sm:$0xff]  ;;  %v6205_v38 = vor.u32 %v7034_v12, %v6202_v63  ;;  %v7064_v12 = vld [vmem:[%s10017_s5 + $0xf4] sm:$0xf]  ;;  %v6298_v63 = vld [vmem:[%s10017_s5 + $0xf8] sm:$0xf0] }
 0x481   : > { %v2943_v7 = vmax.f32 %v2740_v19, %v2916_v25  ;;  %v2941_v60 = vmax.f32 %v2735_v14, %v2911_v30  ;;  %v6197_v47 = vor.u32 %v7032_v37, %v6194_v2  ;;  %v6177_v25 = vor.u32 %v7029_v54, %v6176_v55  ;;  %v7027_v19 = vld [vmem:[%s10017_s5 + $0x4] sm:$0xf0]  ;;  %v7025_v14 = vld [vmem:[%s10019_s7 + $0x20] sm:$0xff]  ;;  %v6290_v2 = vld [vmem:[%s10017_s5 + $0xe8] sm:$0xf0] }
 0x482   : > { %v2933_v51 = vpop.f32.mrf.mxu2  ;;  %v2939_v28 = vmax.f32 %v2730_v26, %v2906_v59  ;;  %v3382_v8 = vsel %vm3233_vm3, %v3352_v0, 0  ;;  %v3598_v30 = vpack.c.b16 %v3586_v3, %v3586_v3  ;;  %v10141_v59 = vld [vmem:[#allocation12_spill] sm:$0xff]  ;;  %v7047_v0 = vld [vmem:[%s10017_s5 + $0x8c] sm:$0xf]  ;;  %v7062_v37 = vld [vmem:[%s10017_s5 + $0xe4] sm:$0xf] }
 0x483   : > { %v2934_v27 = vadd.f32 %v2933_v51, %v2889_v61  ;;  %v9036_v58 = vpack.c.bf16 %v2943_v7, %v10138_v15  ;;  %v9047_v48 = vpack.c.bf16 %v2941_v60, %v10139_v23  ;;  %v7022_v61 = vld [vmem:[%s10019_s7 + $0x8] sm:$0xff]  ;;  %v6173_v51 = vor.u32 %v7026_v56, %v6170_v35  ;;  %v7049_v26 = vld [vmem:[%s10017_s5 + $0x9c] sm:$0xf] }
 0x484   : > { %v2759_v13 = vpop.f32.mrf.mxu0  ;;  %v9055_v34 = vpack.c.bf16 %v2939_v28, %v10140_v41  ;;  %v6169_v7 = vor.u32 %v7027_v19, %v6168_v21  ;;  %v3628_v46 = vsel %vm3233_vm3, %v3598_v30, 0  ;;  %v3194_v60 = vunpack.c.h.b16 %v10141_v59  ;;  %v6152_v28 = vld [vmem:[%s10017_s5 + $0xa0] sm:$0xf0]  ;;  %v6144_v41 = vld [vmem:[%s10017_s5 + $0x90] sm:$0xf0] }
 0x485   : > { %v2760_v6 = vadd.f32 %v2759_v13, %v2715_v50  ;;  %v2950_v43 = vmax.f32 %v2758_v49, %v2934_v27  ;;  %v7038_v13 = vld [vmem:[%s10019_s7 + $0x38] sm:$0xff]  ;;  %v7023_v50 = vld [vmem:[%s10019_s7 + $0x10] sm:$0xff]  ;;  %v3339_v27 = vunpack.c.l.b16 %v9024_v36  ;;  %v7040_v36 = vld [vmem:[%s10019_s7 + $0x48] sm:$0xff]  ;;  %v6155_v23 = vor.u32 %v7049_v26, %v6152_v28 }
 0x486   : > { %v3206_v15 = vpack.c.b16 %v3194_v60, %v3194_v60  ;;  %v6293_v20 = vor.u32 %v7062_v37, %v6290_v2  ;;  %v7041_v56 = vld [vmem:[%s10017_s5 + $0x5c] sm:$0xf]  ;;  %v7051_v60 = vld [vmem:[%s10019_s7 + $0x50] sm:$0xff]  ;;  %v7067_v26 = vld [vmem:[%s10019_s7 + $0x80] sm:$0xff] }
 0x487   : > { %v7053_v28 = vld [vmem:[%s10019_s7 + $0x60] sm:$0xff] }
 0x488   : > { %v3238_v57 = vsel %vm3233_vm3, %v3206_v15, 0  ;;  %v7066_v15 = vld [vmem:[%s10019_s7 + $0x78] sm:$0xff] }
 0x489   : > { %3276 = vmatpush.bf16.msrb.mxu2 %v3238_v57  ;;  %v7052_v57 = vld [vmem:[%s10019_s7 + $0x58] sm:$0xff] }
 0x48a   : > { %v2935_v1 = vpop.f32.mrf.mxu2 }
 0x48b   : > { %v2936_v33 = vadd.f32 %v2935_v1, %v2891_v9  ;;  %v3351_v9 = vpack.c.b16 %v3339_v27, %v3339_v27  ;;  %v6200_v1 = vld [vmem:[%s10017_s5 + $0x40] sm:$0xf]  ;;  %v7056_v27 = vld [vmem:[%s10017_s5 + $0xb4] sm:$0xf] }
 0x48d   : > { %v2951_v18 = vmax.f32 %v2760_v6, %v2936_v33  ;;  %v3379_v49 = vsel %vm3233_vm3, %v3351_v9, 0  ;;  %v6201_v6 = vor.u32 %v7035_v31, %v6200_v1  ;;  %v6192_v33 = vld [vmem:[%s10017_s5 + $0x30] sm:$0xf]  ;;  %3277 = vmatpush.bf16.msrb.mxu2 %v6155_v23  ;;  %v6266_v9 = vld [vmem:[%s10017_s5 + $0xb8] sm:$0xf0]  ;;  %v7068_v23 = vld [vmem:[%s10019_s7 + $0x88] sm:$0xff] }
 0x48e   : > { %v6193_v32 = vor.u32 %v7033_v39, %v6192_v33  ;;  %v6269_v1 = vor.u32 %v7056_v27, %v6266_v9  ;;  %v3585_v27 = vunpack.c.l.b16 %v9151_v22  ;;  %v9341_v22 = vld [vmem:[%s10017_s5 + $0x158] sm:$0x33] }
 0x48f   : > { %v8989_v62 = vpack.c.bf16 %v2951_v18, %v2950_v43  ;;  %v6184_v43 = vld [vmem:[%s10017_s5 + $0x20] sm:$0xf]  ;;  %v7031_v18 = vld [vmem:[%s10017_s5 + $0x24] sm:$0xf0] }
 0x490   : > { %v6185_v16 = vor.u32 %v7031_v18, %v6184_v43  ;;  %v3597_v9 = vpack.c.b16 %v3585_v27, %v3585_v27  ;;  %v7072_v27 = vld [vmem:[%s10017_s5 + $0x10c] sm:$0xf0] }
 0x491   : > { %3011 = vmatpush.bf16.msrb.mxu3 %v8989_v62  ;;  %3112 = vmatpush.bf16.msrb.mxu0 %v8989_v62 }
 0x492   : > { %3504 = vmatpush.bf16.msra.mxu1 %v8989_v62 }
 0x495   : > { %3012 = vmatpush.bf16.msrb.mxu3 %v8998_v17  ;;  %3113 = vmatpush.bf16.msrb.mxu0 %v8998_v17 }
 0x496   : > { %3505 = vmatpush.bf16.msra.mxu1 %v8998_v17 }
 0x499   : > { %3013 = vmatpush.bf16.msrb.mxu3 %v9007_v42  ;;  %3114 = vmatpush.bf16.msrb.mxu0 %v9007_v42 }
 0x49a   : > { %3506 = vmatpush.bf16.msra.mxu1 %v9007_v42 }
 0x49d   : > { %3014 = vmatpush.bf16.msrb.mxu3 %v9019_v4  ;;  %3115 = vmatpush.bf16.msrb.mxu0 %v9019_v4 }
 0x49e   : > { %3507 = vmatpush.bf16.msra.mxu1 %v9019_v4 }
 0x4a1   : > { %3015 = vmatpush.bf16.msrb.mxu3 %v9036_v58  ;;  %3116 = vmatpush.bf16.msrb.mxu0 %v9036_v58 }
 0x4a2   : > { %3508 = vmatpush.bf16.msra.mxu1 %v9036_v58 }
 0x4a5   : > { %3016 = vmatpush.bf16.msrb.mxu3 %v9047_v48  ;;  %3117 = vmatpush.bf16.msrb.mxu0 %v9047_v48 }
 0x4a6   : > { %3509 = vmatpush.bf16.msra.mxu1 %v9047_v48 }
 0x4a9   : > { %3017 = vmatpush.bf16.msrb.mxu3 %v9055_v34  ;;  %3118 = vmatpush.bf16.msrb.mxu0 %v9055_v34 }
 0x4aa   : > { %3510 = vmatpush.bf16.msra.mxu1 %v9055_v34 }
 0x4ac   : > { %6065 = vmatmul.msk.bf16.vlgmr.msrb.gmra.mxu3 %vm2994_vm4, %v7021_v44  ;;  %6100 = vmatmul.msk.bf16.vlgmr.msrb.gmra.mxu0 %vm2994_vm4, %v7036_v45  ;;  %v7045_v44 = vld [vmem:[%s10017_s5 + $0x7c] sm:$0xf]  ;;  %v6301_v45 = vor.u32 %v7064_v12, %v6298_v63 }
 0x4ad   : > { %3420 = vmatpush.bf16.msra.mxu0 %v3382_v8  ;;  %3386 = vmatpush.bf16.msra.mxu3 %v3379_v49  ;;  %v6147_v8 = vor.u32 %v7047_v0, %v6144_v41  ;;  %v7054_v0 = vld [vmem:[%s10019_s7 + $0x68] sm:$0xff] }
 0x4af   : > { %3278 = vmatpush.bf16.msrb.mxu2 %v6147_v8  ;;  %v7069_v8 = vld [vmem:[%s10019_s7 + $0x90] sm:$0xff] }
 0x4b1   : > { %3421 = vmatpush.bf16.msra.mxu0 %v6205_v38  ;;  %3387 = vmatpush.bf16.msra.mxu3 %v6201_v6  ;;  %v6136_v38 = vld [vmem:[%s10017_s5 + $0x80] sm:$0xf0] }
 0x4b5   : > { %3422 = vmatpush.bf16.msra.mxu0 %v6197_v47  ;;  %3388 = vmatpush.bf16.msra.mxu3 %v6193_v32  ;;  %v6139_v47 = vor.u32 %v7045_v44, %v6136_v38 }
 0x4b7   : > { %3279 = vmatpush.bf16.msrb.mxu2 %v6139_v47 }
 0x4b9   : > { %3423 = vmatpush.bf16.msra.mxu0 %v6189_v11  ;;  %3389 = vmatpush.bf16.msra.mxu3 %v6185_v16  ;;  %v6128_v11 = vld [vmem:[%s10017_s5 + $0x70] sm:$0xf0] }
 0x4ba   : > { %v6131_v5 = vor.u32 %v7043_v10, %v6128_v11 }
 0x4bc   : > { %6101 = vmatmul.msk.bf16.gmra.mxu0 %vm2994_vm4, %v7037_v40  ;;  %6066 = vmatmul.msk.bf16.gmra.mxu3 %vm2994_vm4, %v7022_v61  ;;  %v6120_v40 = vld [vmem:[%s10017_s5 + $0x60] sm:$0xf0] }
 0x4bd   : > { %3424 = vmatpush.bf16.msra.mxu0 %v6181_v53  ;;  %3390 = vmatpush.bf16.msra.mxu3 %v6177_v25  ;;  %v6282_v53 = vld [vmem:[%s10017_s5 + $0xd8] sm:$0xf0]  ;;  %v6123_v61 = vor.u32 %v7041_v56, %v6120_v40 }
 0x4be   : > { %3280 = vmatpush.bf16.msrb.mxu2 %v6131_v5  ;;  %v6285_v35 = vor.u32 %v7060_v29, %v6282_v53  ;;  %v7070_v5 = vld [vmem:[%s10019_s7 + $0x98] sm:$0xff] }
 0x4c1   : > { %3425 = vmatpush.bf16.msra.mxu0 %v6173_v51  ;;  %3391 = vmatpush.bf16.msra.mxu3 %v6169_v7  ;;  %v7058_v51 = vld [vmem:[%s10017_s5 + $0xc4] sm:$0xf] }
 0x4c2   : > { %3281 = vmatpush.bf16.msrb.mxu2 %v6123_v61 }
 0x4c5   : > { %3770 = vmatpush.bf16.msrb.mxu0 %v8989_v62  ;;  %3666 = vmatpush.bf16.msrb.mxu3 %v3628_v46 }
 0x4c9   : > { %3771 = vmatpush.bf16.msrb.mxu0 %v8998_v17  ;;  %3667 = vmatpush.bf16.msrb.mxu3 %v6301_v45 }
 0x4cc   : > { %6102 = vmatmul.msk.bf16.gmra.mxu0 %vm2994_vm4, %v7038_v13  ;;  %6067 = vmatmul.msk.bf16.gmra.mxu3 %vm2994_vm4, %v7023_v50  ;;  %v6274_v13 = vld [vmem:[%s10017_s5 + $0xc8] sm:$0xf0] }
 0x4cd   : > { %3772 = vmatpush.bf16.msrb.mxu0 %v9007_v42  ;;  %3668 = vmatpush.bf16.msrb.mxu3 %v6293_v20  ;;  %v6277_v50 = vor.u32 %v7058_v51, %v6274_v13  ;;  %v7055_v20 = vld [vmem:[%s10019_s7 + $0x70] sm:$0xff] }
 0x4d1   : > { %3773 = vmatpush.bf16.msrb.mxu0 %v9019_v4  ;;  %3669 = vmatpush.bf16.msrb.mxu3 %v6285_v35 }
 0x4d5   : > { %3774 = vmatpush.bf16.msrb.mxu0 %v9036_v58  ;;  %3670 = vmatpush.bf16.msrb.mxu3 %v6277_v50 }
 0x4d9   : > { %3775 = vmatpush.bf16.msrb.mxu0 %v9047_v48  ;;  %3671 = vmatpush.bf16.msrb.mxu3 %v6269_v1  ;;  %v3625_v1 = vsel %vm3233_vm3, %v3597_v9, 0 }
 0x4da   : > { %3632 = vmatpush.bf16.msra.mxu2 %v3625_v1 }
 0x4dc   : > { %6103 = vmatmul.msk.bf16.gmra.mxu0 %vm2994_vm4, %v7039_v52  ;;  %6068 = vmatmul.msk.bf16.gmra.mxu3 %vm2994_vm4, %v7024_v24 }
 0x4dd   : > { %3776 = vmatpush.bf16.msrb.mxu0 %v9055_v34 }
 0x4ec   : > { %6104 = vmatmul.msk.bf16.gmra.mxu0 %vm2994_vm4, %v7040_v36  ;;  %6069 = vmatmul.msk.bf16.gmra.mxu3 %vm2994_vm4, %v7025_v14 }
 0x529   : > { %v3120_v31 = vpop.f32.mrf.mxu0 }
 0x52f   : > { %v3019_v49 = vpop.f32.mrf.mxu3 }
 0x531   : > { %v3122_v6 = vpop.f32.mrf.mxu0 }
 0x532   : > { %v3145_v33 = vpack.c.bf16 %v3122_v6, %v3120_v31  ;;  %v6296_v6 = vld [vmem:[%s10017_s5 + $0xf0] sm:$0xf] }
 0x534   : > { %6156 = vmatmul.msk.bf16.vlgmr.msrb.gmra.mxu1 %vm3217_vm5, %v3145_v33  ;;  %6161 = vmatmul.msk.bf16.vlgmr.msrb.gmra.mxu2 %vm3217_vm5, %v3145_v33  ;;  %v7065_v33 = vld [vmem:[%s10017_s5 + $0xf4] sm:$0xf0] }
 0x537   : > { %v3021_v39 = vpop.f32.mrf.mxu3 }
 0x538   : > { %v3044_v32 = vpack.c.bf16 %v3021_v39, %v3019_v49 }
 0x539   : > { %v3125_v43 = vpop.f32.mrf.mxu0 }
 0x53a   : > { %6206 = vmatmul.msk.bf16.vlgmr.msra.gmra.mxu3 %vm3217_vm5, %v3044_v32  ;;  %6211 = vmatmul.msk.bf16.vlgmr.msra.gmra.mxu0 %vm3217_vm5, %v3044_v32  ;;  %v6297_v32 = vor.u32 %v7065_v33, %v6296_v6 }
 0x53b   : > { %4036 = vmatpush.bf16.msra.mxu3 %v8989_v62 }
 0x53c   : > { %3633 = vmatpush.bf16.msra.mxu2 %v6297_v32 }
 0x53f   : > { %4037 = vmatpush.bf16.msra.mxu3 %v8998_v17  ;;  %v3024_v18 = vpop.f32.mrf.mxu3 }
 0x541   : > { %v3127_v52 = vpop.f32.mrf.mxu0 }
 0x542   : > { %v3146_v24 = vpack.c.bf16 %v3127_v52, %v3125_v43  ;;  %v6288_v52 = vld [vmem:[%s10017_s5 + $0xe0] sm:$0xf] }
 0x543   : > { %4038 = vmatpush.bf16.msra.mxu3 %v9007_v42 }
 0x544   : > { %6157 = vmatmul.msk.bf16.gmra.mxu1 %vm3217_vm5, %v3146_v24  ;;  %6162 = vmatmul.msk.bf16.gmra.mxu2 %vm3217_vm5, %v3146_v24  ;;  %v7063_v24 = vld [vmem:[%s10017_s5 + $0xe4] sm:$0xf0] }
 0x547   : > { %4039 = vmatpush.bf16.msra.mxu3 %v9019_v4  ;;  %v3026_v16 = vpop.f32.mrf.mxu3 }
 0x548   : > { %v3045_v55 = vpack.c.bf16 %v3026_v16, %v3024_v18  ;;  %v3851_v16 = vunpack.c.l.b16 %v9341_v22 }
 0x549   : > { %v3130_v54 = vpop.f32.mrf.mxu0 }
 0x54a   : > { %6212 = vmatmul.msk.bf16.gmra.mxu0 %vm3217_vm5, %v3045_v55  ;;  %6207 = vmatmul.msk.bf16.gmra.mxu3 %vm3217_vm5, %v3045_v55  ;;  %v6289_v55 = vor.u32 %v7063_v24, %v6288_v52 }
 0x54b   : > { %4040 = vmatpush.bf16.msra.mxu3 %v9036_v58 }
 0x54c   : > { %3634 = vmatpush.bf16.msra.mxu2 %v6289_v55 }
 0x54f   : > { %4041 = vmatpush.bf16.msra.mxu3 %v9047_v48  ;;  %v3029_v62 = vpop.f32.mrf.mxu3 }
 0x551   : > { %v3132_v17 = vpop.f32.mrf.mxu0 }
 0x552   : > { %v3147_v42 = vpack.c.bf16 %v3132_v17, %v3130_v54  ;;  %v3863_v54 = vpack.c.b16 %v3851_v16, %v3851_v16 }
 0x553   : > { %4042 = vmatpush.bf16.msra.mxu3 %v9055_v34 }
 0x554   : > { %6158 = vmatmul.msk.bf16.gmra.mxu1 %vm3217_vm5, %v3147_v42  ;;  %6163 = vmatmul.msk.bf16.gmra.mxu2 %vm3217_vm5, %v3147_v42 }
 0x557   : > { %v3031_v4 = vpop.f32.mrf.mxu3 }
 0x558   : > { %v3046_v3 = vpack.c.bf16 %v3031_v4, %v3029_v62  ;;  %v3891_v62 = vsel %vm3233_vm3, %v3863_v54, 0 }
 0x559   : > { %v3135_v25 = vpop.f32.mrf.mxu0  ;;  %3898 = vmatpush.bf16.msrb.mxu1 %v3891_v62 }
 0x55a   : > { %6213 = vmatmul.msk.bf16.gmra.mxu0 %vm3217_vm5, %v3046_v3  ;;  %6208 = vmatmul.msk.bf16.gmra.mxu3 %vm3217_vm5, %v3046_v3  ;;  %v6280_v3 = vld [vmem:[%s10017_s5 + $0xd0] sm:$0xf] }
 0x55f   : > { %v3034_v21 = vpop.f32.mrf.mxu3 }
 0x561   : > { %v3137_v58 = vpop.f32.mrf.mxu0 }
 0x562   : > { %v3148_v19 = vpack.c.bf16 %v3137_v58, %v3135_v25  ;;  %v7061_v25 = vld [vmem:[%s10017_s5 + $0xd4] sm:$0xf0] }
 0x564   : > { %6159 = vmatmul.msk.bf16.gmra.mxu1 %vm3217_vm5, %v3148_v19  ;;  %6164 = vmatmul.msk.bf16.gmra.mxu2 %vm3217_vm5, %v3148_v19  ;;  %v6281_v19 = vor.u32 %v7061_v25, %v6280_v3 }
 0x566   : > { %3635 = vmatpush.bf16.msra.mxu2 %v6281_v19 }
 0x567   : > { %v3036_v48 = vpop.f32.mrf.mxu3 }
 0x568   : > { %v3047_v34 = vpack.c.bf16 %v3036_v48, %v3034_v21  ;;  %v6392_v21 = vld [vmem:[%s10017_s5 + $0x148] sm:$0xf]  ;;  %v7080_v48 = vld [vmem:[%s10017_s5 + $0x14c] sm:$0xf0] }
 0x569   : > { %v3140_v30 = vpop.f32.mrf.mxu0 }
 0x56a   : > { %6214 = vmatmul.msk.bf16.gmra.mxu0 %vm3217_vm5, %v3047_v34  ;;  %6209 = vmatmul.msk.bf16.gmra.mxu3 %vm3217_vm5, %v3047_v34 }
 0x56f   : > { %v3039_v7 = vpop.f32.mrf.mxu3 }
 0x571   : > { %v3142_v46 = vpop.f32.mrf.mxu0 }
 0x572   : > { %v3149_v36 = vpack.c.bf16 %v3142_v46, %v3140_v30  ;;  %v6393_v30 = vor.u32 %v7080_v48, %v6392_v21  ;;  %v7059_v46 = vld [vmem:[%s10017_s5 + $0xc4] sm:$0xf0] }
 0x574   : > { %6160 = vmatmul.msk.bf16.gmra.mxu1 %vm3217_vm5, %v3149_v36  ;;  %6165 = vmatmul.msk.bf16.gmra.mxu2 %vm3217_vm5, %v3149_v36  ;;  %v6384_v36 = vld [vmem:[%s10017_s5 + $0x138] sm:$0xf] }
 0x575   : > { %3899 = vmatpush.bf16.msrb.mxu1 %v6393_v30 }
 0x577   : > { %v3041_v14 = vpop.f32.mrf.mxu3 }
 0x578   : > { %v3048_v59 = vpack.c.bf16 %v3041_v14, %v3039_v7  ;;  %v6272_v7 = vld [vmem:[%s10017_s5 + $0xc0] sm:$0xf] }
 0x579   : > { %v6273_v14 = vor.u32 %v7059_v46, %v6272_v7 }
 0x57a   : > { %6215 = vmatmul.msk.bf16.gmra.mxu0 %vm3217_vm5, %v3048_v59  ;;  %6210 = vmatmul.msk.bf16.gmra.mxu3 %vm3217_vm5, %v3048_v59  ;;  %v7078_v59 = vld [vmem:[%s10017_s5 + $0x13c] sm:$0xf0] }
 0x57b   : > { %3636 = vmatpush.bf16.msra.mxu2 %v6273_v14  ;;  %v3852_v14 = vunpack.c.h.b16 %v9341_v22  ;;  %v7077_v22 = vld [vmem:[%s10017_s5 + $0x13c] sm:$0xf] }
 0x584   : > { %6246 = vmatmul.msk.bf16.vlgmr.msra.gmra.mxu1 %vm2994_vm4, %v7051_v60  ;;  %v6385_v60 = vor.u32 %v7078_v59, %v6384_v36  ;;  %v3864_v59 = vpack.c.b16 %v3852_v14, %v3852_v14 }
 0x586   : > { %3900 = vmatpush.bf16.msrb.mxu1 %v6385_v60  ;;  %v3894_v60 = vsel %vm3233_vm3, %v3864_v59, 0  ;;  %v7081_v59 = vld [vmem:[%s10019_s7 + $0xa0] sm:$0xff] }
 0x58a   : > { %6342 = vmatmul.msk.bf16.vlgmr.msrb.gmra.mxu0 %vm2994_vm4, %v7066_v15 }
 0x594   : > { %6247 = vmatmul.msk.bf16.gmra.mxu1 %vm2994_vm4, %v7052_v57 }
 0x59a   : > { %6343 = vmatmul.msk.bf16.gmra.mxu0 %vm2994_vm4, %v7067_v26  ;;  %v6264_v26 = vld [vmem:[%s10017_s5 + $0xb0] sm:$0xf] }
 0x5a4   : > { %6248 = vmatmul.msk.bf16.gmra.mxu1 %vm2994_vm4, %v7053_v28  ;;  %v7057_v28 = vld [vmem:[%s10017_s5 + $0xb4] sm:$0xf0] }
 0x5aa   : > { %6344 = vmatmul.msk.bf16.gmra.mxu0 %vm2994_vm4, %v7068_v23  ;;  %v6376_v23 = vld [vmem:[%s10017_s5 + $0x128] sm:$0xf] }
 0x5b1   : > { %v3249_v41 = vpop.f32.mrf.mxu1 }
 0x5b4   : > { %6249 = vmatmul.msk.bf16.gmra.mxu1 %vm2994_vm4, %v7054_v0 }
 0x5b7   : > { %v3427_v12 = vpop.f32.mrf.mxu0  ;;  %v3283_v63 = vpop.f32.mrf.mxu2 }
 0x5b8   : > { %v9297_v44 = vadd.f32 %v3427_v12, %v3283_v63 }
 0x5b9   : > { %v9299_v45 = vpop.f32.mrf.mxu1 }
 0x5ba   : > { %6345 = vmatmul.msk.bf16.gmra.mxu0 %vm2994_vm4, %v7069_v8  ;;  %v7076_v8 = vld [vmem:[%s10017_s5 + $0x12c] sm:$0xf0] }
 0x5bd   : > { %v3393_v38 = vpop.f32.mrf.mxu3 }
 0x5be   : > { %v9302_v37 = vadd.f32 %v3393_v38, %v3249_v41  ;;  %v6265_v41 = vor.u32 %v7057_v28, %v6264_v26  ;;  %v6377_v38 = vor.u32 %v7076_v8, %v6376_v23  ;;  %v7079_v26 = vld [vmem:[%s10017_s5 + $0x14c] sm:$0xf]  ;;  %v6394_v28 = vld [vmem:[%s10017_s5 + $0x150] sm:$0xf0]  ;;  %v6386_v8 = vld [vmem:[%s10017_s5 + $0x140] sm:$0xf0] }
 0x5bf   : > { %v9304_v2 = vpop.f32.mrf.mxu0  ;;  %v9306_v47 = vpop.f32.mrf.mxu2  ;;  %v6397_v23 = vor.u32 %v7079_v26, %v6394_v28  ;;  %v7084_v28 = vld [vmem:[%s10019_s7 + $0xb8] sm:$0xff] }
 0x5c0   : > { %3637 = vmatpush.bf16.msra.mxu2 %v6265_v41  ;;  %3901 = vmatpush.bf16.msrb.mxu1 %v6377_v38  ;;  %v6389_v38 = vor.u32 %v7077_v22, %v6386_v8 }
 0x5c1   : > { %v3254_v10 = vpop.f32.mrf.mxu1 }
 0x5c4   : > { %6250 = vmatmul.msk.bf16.gmra.mxu1 %vm2994_vm4, %v7055_v20  ;;  %v6368_v20 = vld [vmem:[%s10017_s5 + $0x118] sm:$0xf]  ;;  %3932 = vmatpush.bf16.msrb.mxu2 %v3894_v60  ;;  %v7082_v60 = vld [vmem:[%s10019_s7 + $0xa8] sm:$0xff] }
 0x5c5   : > { %v9312_v11 = vpop.f32.mrf.mxu3 }
 0x5c7   : > { %v3432_v29 = vpop.f32.mrf.mxu0  ;;  %v3288_v53 = vpop.f32.mrf.mxu2 }
 0x5c8   : > { %v9317_v56 = vadd.f32 %v3432_v29, %v3288_v53  ;;  %3933 = vmatpush.bf16.msrb.mxu2 %v6397_v23 }
 0x5c9   : > { %v9319_v35 = vpop.f32.mrf.mxu1 }
 0x5ca   : > { %6346 = vmatmul.msk.bf16.gmra.mxu0 %vm2994_vm4, %v7070_v5 }
 0x5cc   : > { %3934 = vmatpush.bf16.msrb.mxu2 %v6389_v38 }
 0x5cd   : > { %v3398_v40 = vpop.f32.mrf.mxu3 }
 0x5ce   : > { %v9322_v61 = vadd.f32 %v3398_v40, %v3254_v10  ;;  %v7074_v10 = vld [vmem:[%s10017_s5 + $0x11c] sm:$0xf0] }
 0x5cf   : > { %v9324_v51 = vpop.f32.mrf.mxu0  ;;  %v9326_v13 = vpop.f32.mrf.mxu2  ;;  %v6369_v5 = vor.u32 %v7074_v10, %v6368_v20  ;;  %v7075_v10 = vld [vmem:[%s10017_s5 + $0x12c] sm:$0xf] }
 0x5d1   : > { %v3259_v50 = vpop.f32.mrf.mxu1  ;;  %3902 = vmatpush.bf16.msrb.mxu1 %v6369_v5  ;;  %v6378_v5 = vld [vmem:[%s10017_s5 + $0x130] sm:$0xf0] }
 0x5d5   : > { %v9330_v31 = vpop.f32.mrf.mxu3 }
 0x5d7   : > { %v3437_v49 = vpop.f32.mrf.mxu0  ;;  %v3293_v39 = vpop.f32.mrf.mxu2 }
 0x5d8   : > { %v9343_v43 = vadd.f32 %v3437_v49, %v3293_v39 }
 0x5d9   : > { %v9345_v18 = vpop.f32.mrf.mxu1 }
 0x5dd   : > { %v3403_v17 = vpop.f32.mrf.mxu3 }
 0x5de   : > { %v9355_v42 = vadd.f32 %v3403_v17, %v3259_v50  ;;  %v6360_v50 = vld [vmem:[%s10017_s5 + $0x108] sm:$0xf] }
 0x5df   : > { %v9357_v4 = vpop.f32.mrf.mxu0  ;;  %v9368_v58 = vpop.f32.mrf.mxu2  ;;  %v6361_v1 = vor.u32 %v7072_v27, %v6360_v50  ;;  %v6381_v50 = vor.u32 %v7075_v10, %v6378_v5  ;;  %v7085_v5 = vld [vmem:[%s10019_s7 + $0xc0] sm:$0xff] }
 0x5e1   : > { %v3264_v34 = vpop.f32.mrf.mxu1  ;;  %3903 = vmatpush.bf16.msrb.mxu1 %v6361_v1  ;;  %3935 = vmatpush.bf16.msrb.mxu2 %v6381_v50  ;;  %v7073_v1 = vld [vmem:[%s10017_s5 + $0x11c] sm:$0xf] }
 0x5e5   : > { %v9385_v15 = vpop.f32.mrf.mxu3 }
 0x5e7   : > { %v3442_v57 = vpop.f32.mrf.mxu0  ;;  %v3298_v0 = vpop.f32.mrf.mxu2 }
 0x5e8   : > { %v9399_v12 = vadd.f32 %v3442_v57, %v3298_v0 }
 0x5e9   : > { %v9401_v63 = vpop.f32.mrf.mxu1 }
 0x5ed   : > { %v3408_v29 = vpop.f32.mrf.mxu3 }
 0x5ee   : > { %v9409_v53 = vadd.f32 %v3408_v29, %v3264_v34 }
 0x5ef   : > { %v9411_v40 = vpop.f32.mrf.mxu0  ;;  %v9419_v9 = vpop.f32.mrf.mxu2 }
 0x5f1   : > { %v3269_v49 = vpop.f32.mrf.mxu1 }
 0x5f5   : > { %v9421_v6 = vpop.f32.mrf.mxu3 }
 0x5f7   : > { %v3447_v33 = vpop.f32.mrf.mxu0  ;;  %v3303_v39 = vpop.f32.mrf.mxu2 }
 0x5f8   : > { %v9423_v32 = vadd.f32 %v3447_v33, %v3303_v39  ;;  %v7071_v39 = vld [vmem:[%s10017_s5 + $0x10c] sm:$0xf] }
 0x5f9   : > { %v9425_v52 = vpop.f32.mrf.mxu1 }
 0x5fd   : > { %v3413_v24 = vpop.f32.mrf.mxu3 }
 0x5fe   : > { %v9427_v16 = vadd.f32 %v3413_v24, %v3269_v49  ;;  %v6370_v49 = vld [vmem:[%s10017_s5 + $0x120] sm:$0xf0]  ;;  %v6362_v24 = vld [vmem:[%s10017_s5 + $0x110] sm:$0xf0] }
 0x5ff   : > { %v9429_v55 = vpop.f32.mrf.mxu0  ;;  %v6373_v33 = vor.u32 %v7073_v1, %v6370_v49 }
 0x601   : > { %v3512_v54 = vpop.f32.mrf.mxu1  ;;  %3936 = vmatpush.bf16.msrb.mxu2 %v6373_v33 }
 0x605   : > { %v9497_v26 = vpop.f32.mrf.mxu3 }
 0x607   : > { %v3778_v62 = vpop.f32.mrf.mxu0 }
 0x609   : > { %v3514_v17 = vpop.f32.mrf.mxu1 }
 0x60a   : > { %v3537_v3 = vpack.c.bf16 %v3514_v17, %v3512_v54  ;;  %v6365_v54 = vor.u32 %v7071_v39, %v6362_v24  ;;  %v6453_v24 = vld [vmem:[%s10017_s5 + $0x1b0] sm:$0x33] }
 0x60c   : > { %6302 = vmatmul.msk.bf16.vlgmr.msra.gmra.mxu2 %vm3217_vm5, %v3537_v3  ;;  %6307 = vmatmul.msk.bf16.vlgmr.msrb.gmra.mxu3 %vm3217_vm5, %v3537_v3 }
 0x60d   : > { %3937 = vmatpush.bf16.msrb.mxu2 %v6365_v54 }
 0x60f   : > { %v3780_v25 = vpop.f32.mrf.mxu0 }
 0x610   : > { %v9433_v21 = vpack.c.bf16 %v3780_v25, %v3778_v62 }
 0x611   : > { %v3517_v19 = vpop.f32.mrf.mxu1 }
 0x612   : > { %6398 = vmatmul.msk.bf16.vlgmr.msrb.gmra.mxu1 %vm3217_vm5, %v9433_v21 }
 0x617   : > { %v3783_v48 = vpop.f32.mrf.mxu0 }
 0x619   : > { %v3519_v34 = vpop.f32.mrf.mxu1 }
 0x61a   : > { %v3538_v30 = vpack.c.bf16 %v3519_v34, %v3517_v19 }
 0x61c   : > { %6303 = vmatmul.msk.bf16.gmra.mxu2 %vm3217_vm5, %v3538_v30  ;;  %6308 = vmatmul.msk.bf16.gmra.mxu3 %vm3217_vm5, %v3538_v30 }
 0x61f   : > { %v3785_v7 = vpop.f32.mrf.mxu0 }
 0x620   : > { %v3804_v46 = vpack.c.bf16 %v3785_v7, %v3783_v48 }
 0x621   : > { %v3522_v36 = vpop.f32.mrf.mxu1 }
 0x622   : > { %6399 = vmatmul.msk.bf16.gmra.mxu1 %vm3217_vm5, %v3804_v46 }
 0x627   : > { %v3788_v57 = vpop.f32.mrf.mxu0 }
 0x629   : > { %v3524_v0 = vpop.f32.mrf.mxu1 }
 0x62a   : > { %v3539_v41 = vpack.c.bf16 %v3524_v0, %v3522_v36 }
 0x62c   : > { %6304 = vmatmul.msk.bf16.gmra.mxu2 %vm3217_vm5, %v3539_v41  ;;  %6309 = vmatmul.msk.bf16.gmra.mxu3 %vm3217_vm5, %v3539_v41 }
 0x62f   : > { %v3790_v20 = vpop.f32.mrf.mxu0 }
 0x630   : > { %v3805_v29 = vpack.c.bf16 %v3790_v20, %v3788_v57  ;;  %v7083_v57 = vld [vmem:[%s10019_s7 + $0xb0] sm:$0xff] }
 0x631   : > { %v3527_v27 = vpop.f32.mrf.mxu1 }
 0x632   : > { %6400 = vmatmul.msk.bf16.gmra.mxu1 %vm3217_vm5, %v3805_v29 }
 0x637   : > { %v3793_v62 = vpop.f32.mrf.mxu0 }
 0x639   : > { %v3529_v17 = vpop.f32.mrf.mxu1 }
 0x63a   : > { %v3540_v3 = vpack.c.bf16 %v3529_v17, %v3527_v27  ;;  %v4117_v17 = vunpack.c.l.b16 %v6453_v24 }
 0x63c   : > { %6305 = vmatmul.msk.bf16.gmra.mxu2 %vm3217_vm5, %v3540_v3  ;;  %6310 = vmatmul.msk.bf16.gmra.mxu3 %vm3217_vm5, %v3540_v3 }
 0x63f   : > { %v3795_v25 = vpop.f32.mrf.mxu0 }
 0x640   : > { %v3806_v19 = vpack.c.bf16 %v3795_v25, %v3793_v62 }
 0x641   : > { %v3532_v48 = vpop.f32.mrf.mxu1 }
 0x642   : > { %6401 = vmatmul.msk.bf16.gmra.mxu1 %vm3217_vm5, %v3806_v19 }
 0x647   : > { %v3798_v34 = vpop.f32.mrf.mxu0 }
 0x649   : > { %v3534_v30 = vpop.f32.mrf.mxu1 }
 0x64a   : > { %v3541_v7 = vpack.c.bf16 %v3534_v30, %v3532_v48 }
 0x64c   : > { %6306 = vmatmul.msk.bf16.gmra.mxu2 %vm3217_vm5, %v3541_v7  ;;  %6311 = vmatmul.msk.bf16.gmra.mxu3 %vm3217_vm5, %v3541_v7 }
 0x64f   : > { %v3800_v36 = vpop.f32.mrf.mxu0 }
 0x650   : > { %v3807_v14 = vpack.c.bf16 %v3800_v36, %v3798_v34  ;;  %v6488_v36 = vld [vmem:[%s10017_s5 + $0x1a0] sm:$0xf] }
 0x652   : > { %6402 = vmatmul.msk.bf16.gmra.mxu1 %vm3217_vm5, %v3807_v14 }
 0x65c   : > { %6403 = vmatmul.msk.bf16.vlgmr.msrb.gmra.mxu2 %vm3217_vm5, %v9433_v21  ;;  %6438 = vmatmul.msk.bf16.vlgmr.msra.gmra.mxu3 %vm2994_vm4, %v7081_v59  ;;  %v9499_v21 = vpop.f32.mrf.mxu2  ;;  %v6490_v59 = vld [vmem:[%s10017_s5 + $0x1a8] sm:$0xf0] }
 0x66c   : > { %6404 = vmatmul.msk.bf16.gmra.mxu2 %vm3217_vm5, %v3804_v46  ;;  %6439 = vmatmul.msk.bf16.gmra.mxu3 %vm2994_vm4, %v7082_v60 }
 0x67c   : > { %6405 = vmatmul.msk.bf16.gmra.mxu2 %vm3217_vm5, %v3805_v29  ;;  %6440 = vmatmul.msk.bf16.gmra.mxu3 %vm2994_vm4, %v7083_v57 }
 0x68c   : > { %6406 = vmatmul.msk.bf16.gmra.mxu2 %vm3217_vm5, %v3806_v19  ;;  %6441 = vmatmul.msk.bf16.gmra.mxu3 %vm2994_vm4, %v7084_v28  ;;  %v4129_v19 = vpack.c.b16 %v4117_v17, %v4117_v17 }
 0x68e   : > { %v4157_v30 = vsel %vm3233_vm3, %v4129_v19, 0 }
 0x68f   : > { %v3639_v46 = vpop.f32.mrf.mxu2  ;;  %v3673_v23 = vpop.f32.mrf.mxu3  ;;  %4164 = vmatpush.bf16.msra.mxu0 %v4157_v30  ;;  %v6464_v30 = vld [vmem:[%s10017_s5 + $0x170] sm:$0xf] }
 0x690   : > { %v3698_v0 = vadd.f32 %v3639_v46, %v9302_v37  ;;  %v9508_v41 = vadd.f32 %v3673_v23, %v9297_v44  ;;  %v3905_v22 = vpop.f32.mrf.mxu1  ;;  %v6480_v23 = vld [vmem:[%s10017_s5 + $0x190] sm:$0xf] }
 0x692   : > { %v9510_v8 = vadd.f32 %v3905_v22, %v3698_v0  ;;  %v7093_v0 = vld [vmem:[%s10017_s5 + $0x194] sm:$0xf0]  ;;  %v7092_v22 = vld [vmem:[%s10017_s5 + $0x194] sm:$0xf] }
 0x697   : > { %v9512_v38 = vpop.f32.mrf.mxu2  ;;  %v9514_v20 = vpop.f32.mrf.mxu3 }
 0x698   : > { %v9516_v10 = vpop.f32.mrf.mxu1 }
 0x69c   : > { %6407 = vmatmul.msk.bf16.gmra.mxu2 %vm3217_vm5, %v3807_v14  ;;  %6442 = vmatmul.msk.bf16.gmra.mxu3 %vm2994_vm4, %v7085_v5  ;;  %v6481_v5 = vor.u32 %v7093_v0, %v6480_v23  ;;  %v6458_v0 = vld [vmem:[%s10017_s5 + $0x168] sm:$0xf0] }
 0x69f   : > { %v3644_v37 = vpop.f32.mrf.mxu2  ;;  %v3678_v44 = vpop.f32.mrf.mxu3 }
 0x6a0   : > { %v3702_v29 = vadd.f32 %v3644_v37, %v9322_v61  ;;  %v9525_v50 = vadd.f32 %v3678_v44, %v9317_v56  ;;  %v3910_v27 = vpop.f32.mrf.mxu1  ;;  %v4118_v61 = vunpack.c.h.b16 %v6453_v24  ;;  %v6482_v37 = vld [vmem:[%s10017_s5 + $0x198] sm:$0xf0]  ;;  %v7090_v24 = vld [vmem:[%s10017_s5 + $0x184] sm:$0xf] }
 0x6a1   : > { %v6485_v44 = vor.u32 %v7092_v22, %v6482_v37 }
 0x6a2   : > { %v9527_v1 = vadd.f32 %v3910_v27, %v3702_v29  ;;  %v4130_v48 = vpack.c.b16 %v4118_v61, %v4118_v61  ;;  %v6472_v29 = vld [vmem:[%s10017_s5 + $0x180] sm:$0xf]  ;;  %v7091_v27 = vld [vmem:[%s10017_s5 + $0x184] sm:$0xf0] }
 0x6a4   : > { %v4160_v7 = vsel %vm3233_vm3, %v4130_v48, 0 }
 0x6a5   : > { %4198 = vmatpush.bf16.msra.mxu1 %v4160_v7  ;;  %v7089_v7 = vld [vmem:[%s10017_s5 + $0x174] sm:$0xf0] }
 0x6a7   : > { %v9529_v49 = vpop.f32.mrf.mxu2  ;;  %v9531_v33 = vpop.f32.mrf.mxu3 }
 0x6a8   : > { %v9533_v39 = vpop.f32.mrf.mxu1 }
 0x6af   : > { %v3649_v54 = vpop.f32.mrf.mxu2  ;;  %v3683_v62 = vpop.f32.mrf.mxu3 }
 0x6b0   : > { %v3706_v56 = vadd.f32 %v3649_v54, %v9355_v42  ;;  %v9540_v3 = vadd.f32 %v3683_v62, %v9343_v43  ;;  %v3915_v25 = vpop.f32.mrf.mxu1  ;;  %v7095_v43 = vld [vmem:[%s10017_s5 + $0x1a4] sm:$0xf0]  ;;  %v7094_v42 = vld [vmem:[%s10017_s5 + $0x1a4] sm:$0xf]  ;;  %v6473_v54 = vor.u32 %v7091_v27, %v6472_v29  ;;  %v6474_v62 = vld [vmem:[%s10017_s5 + $0x188] sm:$0xf0] }
 0x6b1   : > { %v6489_v14 = vor.u32 %v7095_v43, %v6488_v36  ;;  %v6493_v28 = vor.u32 %v7094_v42, %v6490_v59  ;;  %v7088_v36 = vld [vmem:[%s10017_s5 + $0x174] sm:$0xf]  ;;  %v6465_v43 = vor.u32 %v7089_v7, %v6464_v30  ;;  %v7087_v59 = vld [vmem:[%s10017_s5 + $0x164] sm:$0xf0] }
 0x6b2   : > { %v9542_v34 = vadd.f32 %v3915_v25, %v3706_v56  ;;  %v6477_v56 = vor.u32 %v7090_v24, %v6474_v62 }
 0x6b3   : > { %4165 = vmatpush.bf16.msra.mxu0 %v6489_v14  ;;  %4199 = vmatpush.bf16.msra.mxu1 %v6493_v28  ;;  %v6456_v14 = vld [vmem:[%s10017_s5 + $0x160] sm:$0xf]  ;;  %v7086_v28 = vld [vmem:[%s10017_s5 + $0x164] sm:$0xf] }
 0x6b4   : > { %v6457_v23 = vor.u32 %v7087_v59, %v6456_v14  ;;  %v6461_v37 = vor.u32 %v7086_v28, %v6458_v0 }
 0x6b7   : > { %v9558_v60 = vpop.f32.mrf.mxu2  ;;  %v9560_v57 = vpop.f32.mrf.mxu3  ;;  %4166 = vmatpush.bf16.msra.mxu0 %v6481_v5  ;;  %4200 = vmatpush.bf16.msra.mxu1 %v6485_v44 }
 0x6b8   : > { %v9562_v46 = vpop.f32.mrf.mxu1 }
 0x6bb   : > { %4167 = vmatpush.bf16.msra.mxu0 %v6473_v54  ;;  %4201 = vmatpush.bf16.msra.mxu1 %v6477_v56 }
 0x6bf   : > { %v3654_v17 = vpop.f32.mrf.mxu2  ;;  %v3688_v61 = vpop.f32.mrf.mxu3  ;;  %4168 = vmatpush.bf16.msra.mxu0 %v6465_v43 }
 0x6c0   : > { %v3710_v25 = vadd.f32 %v3654_v17, %v9409_v53  ;;  %v9590_v19 = vadd.f32 %v3688_v61, %v9399_v12  ;;  %v3920_v48 = vpop.f32.mrf.mxu1  ;;  %v6466_v12 = vld [vmem:[%s10017_s5 + $0x178] sm:$0xf0] }
 0x6c1   : > { %v6469_v42 = vor.u32 %v7088_v36, %v6466_v12 }
 0x6c2   : > { %v9604_v53 = vadd.f32 %v3920_v48, %v3710_v25 }
 0x6c3   : > { %4202 = vmatpush.bf16.msra.mxu1 %v6469_v42  ;;  %4169 = vmatpush.bf16.msra.mxu0 %v6457_v23 }
 0x6c7   : > { %v9618_v22 = vpop.f32.mrf.mxu2  ;;  %v9620_v5 = vpop.f32.mrf.mxu3  ;;  %4203 = vmatpush.bf16.msra.mxu1 %v6461_v37 }
 0x6c8   : > { %v9622_v44 = vpop.f32.mrf.mxu1 }
 0x6cf   : > { %v3659_v29 = vpop.f32.mrf.mxu2  ;;  %v3693_v27 = vpop.f32.mrf.mxu3 }
 0x6d0   : > { %v3714_v24 = vadd.f32 %v3659_v29, %v9427_v16  ;;  %v9626_v54 = vadd.f32 %v3693_v27, %v9423_v32  ;;  %v3925_v62 = vpop.f32.mrf.mxu1 }
 0x6d2   : > { %v9628_v17 = vadd.f32 %v3925_v62, %v3714_v24 }
 0x6d7   : > { %v9630_v61 = vpop.f32.mrf.mxu2  ;;  %v9632_v56 = vpop.f32.mrf.mxu3 }
 0x6d8   : > { %v9646_v24 = vpop.f32.mrf.mxu1 }
 0x6df   : > { %v3939_v25 = vpop.f32.mrf.mxu2  ;;  %v4044_v48 = vpop.f32.mrf.mxu3 }
 0x6e0   : > { %v3965_v30 = vadd.f32 %v3939_v25, %v9508_v41 }
 0x6e7   : > { %v3941_v7 = vpop.f32.mrf.mxu2  ;;  %v4046_v36 = vpop.f32.mrf.mxu3 }
 0x6e8   : > { %v4069_v43 = vpack.c.bf16 %v4046_v36, %v4044_v48  ;;  %v3396_v48 = vadd.f32 %v9312_v11, %v9299_v45 }
 0x6ea   : > { %6494 = vmatmul.msk.bf16.vlgmr.msra.gmra.mxu0 %vm3217_vm5, %v4069_v43  ;;  %6499 = vmatmul.msk.bf16.vlgmr.msra.gmra.mxu1 %vm3217_vm5, %v4069_v43 }
 0x6ef   : > { %v3944_v32 = vpop.f32.mrf.mxu2  ;;  %v4049_v16 = vpop.f32.mrf.mxu3 }
 0x6f0   : > { %v3969_v12 = vadd.f32 %v3944_v32, %v9525_v50  ;;  %v4250_v32 = vld [vmem:[%s10018_s6] sm:$0x3] }
 0x6f7   : > { %v4051_v42 = vpop.f32.mrf.mxu3 }
 0x6f8   : > { %v4070_v14 = vpack.c.bf16 %v4051_v42, %v4049_v16  ;;  %v3430_v16 = vadd.f32 %v9304_v2, %v9306_v47  ;;  %v3700_v42 = vadd.f32 %v9512_v38, %v3396_v48 }
 0x6fa   : > { %6495 = vmatmul.msk.bf16.gmra.mxu0 %vm3217_vm5, %v4070_v14  ;;  %6500 = vmatmul.msk.bf16.gmra.mxu1 %vm3217_vm5, %v4070_v14  ;;  %v3701_v14 = vadd.f32 %v9514_v20, %v3430_v16  ;;  %v3966_v45 = vadd.f32 %v9516_v10, %v3700_v42 }
 0x6fc   : > { %v3967_v11 = vadd.f32 %v3941_v7, %v3701_v14 }
 0x6ff   : > { %v4054_v59 = vpop.f32.mrf.mxu3 }
 0x707   : > { %v4056_v28 = vpop.f32.mrf.mxu3 }
 0x708   : > { %v4071_v41 = vpack.c.bf16 %v4056_v28, %v4054_v59  ;;  %v9658_v59 = vperm.slane %v4250_v32, 0  ;;  %v9660_v28 = vperm.slane %v4250_v32, 1 }
 0x70a   : > { %6496 = vmatmul.msk.bf16.gmra.mxu0 %vm3217_vm5, %v4071_v41  ;;  %6501 = vmatmul.msk.bf16.gmra.mxu1 %vm3217_vm5, %v4071_v41 }
 0x70f   : > { %v4059_v23 = vpop.f32.mrf.mxu3 }
 0x717   : > { %v4061_v0 = vpop.f32.mrf.mxu3 }
 0x718   : > { %v4072_v37 = vpack.c.bf16 %v4061_v0, %v4059_v23 }
 0x71a   : > { %6497 = vmatmul.msk.bf16.gmra.mxu0 %vm3217_vm5, %v4072_v37  ;;  %6502 = vmatmul.msk.bf16.gmra.mxu1 %vm3217_vm5, %v4072_v37 }
 0x71f   : > { %v4064_v50 = vpop.f32.mrf.mxu3 }
 0x727   : > { %v4066_v29 = vpop.f32.mrf.mxu3 }
 0x728   : > { %v4073_v27 = vpack.c.bf16 %v4066_v29, %v4064_v50 }
 0x72a   : > { %6498 = vmatmul.msk.bf16.gmra.mxu0 %vm3217_vm5, %v4073_v27  ;;  %6503 = vmatmul.msk.bf16.gmra.mxu1 %vm3217_vm5, %v4073_v27 }
 0x767   : > { %v4171_v62 = vpop.f32.mrf.mxu0  ;;  %v4205_v25 = vpop.f32.mrf.mxu1 }
 0x768   : > { %v4230_v36 = vadd.f32 %v4171_v62, %v9510_v8  ;;  %v4231_v43 = vadd.f32 %v4205_v25, %v3965_v30  ;;  %v9663_v8 = vpop.f32.mrf.mxu2 }
 0x76a   : > { %v4256_v23 = vadd.f32 %v9658_v59, %v4230_v36  ;;  %v4257_v0 = vadd.f32 %v9660_v28, %v4231_v43 }
 0x76c   : > { %v4276_v37 = vmax.f32 %v4256_v23, 0.0  ;;  %v4277_v50 = vmax.f32 %v4257_v0, 0.0 }
 0x76f   : > { %v4173_v30 = vpop.f32.mrf.mxu0  ;;  %v4207_v41 = vpop.f32.mrf.mxu1 }
 0x770   : > { %v4232_v2 = vadd.f32 %v4173_v30, %v3966_v45  ;;  %v4233_v47 = vadd.f32 %v4207_v41, %v3967_v11  ;;  %v3949_v48 = vpop.f32.mrf.mxu2 }
 0x772   : > { %v4258_v38 = vadd.f32 %v9658_v59, %v4232_v2  ;;  %v4259_v20 = vadd.f32 %v9660_v28, %v4233_v47 }
 0x774   : > { %v4278_v29 = vmax.f32 %v4258_v38, 0.0  ;;  %v4279_v27 = vmax.f32 %v4259_v20, 0.0 }
 0x776   : > { %v9669_v10 = vpack.c.bf16 %v4278_v29, %v4276_v37  ;;  %v9671_v7 = vpack.c.bf16 %v4279_v27, %v4277_v50  ;;  %v3416_v50 = vadd.f32 %v9497_v26, %v9425_v52  ;;  %v3406_v27 = vadd.f32 %v9385_v15, %v9345_v18 }
 0x777   : > { %v4176_v62 = vpop.f32.mrf.mxu0  ;;  %v4210_v25 = vpop.f32.mrf.mxu1  ;;  %v3401_v52 = vadd.f32 %v9330_v31, %v9319_v35  ;;  %v3440_v26 = vadd.f32 %v9357_v4, %v9368_v58 }
 0x778   : > { %10142 = vst [vmem:[#allocation13_spill] sm:$0xff] %v9671_v7  ;;  %v9674_v36 = vadd.f32 %v4176_v62, %v9527_v1  ;;  %v9676_v43 = vadd.f32 %v4210_v25, %v3969_v12  ;;  %v3951_v42 = vpop.f32.mrf.mxu2  ;;  %v3411_v12 = vadd.f32 %v9421_v6, %v9401_v63  ;;  %v3445_v62 = vadd.f32 %v9411_v40, %v9419_v9 }
 0x779   : > { %v3435_v25 = vadd.f32 %v9324_v51, %v9326_v13  ;;  %v3450_v7 = vadd.f32 %v9429_v55, %v9499_v21  ;;  %v3716_v63 = vadd.f32 %v9630_v61, %v3416_v50  ;;  %v3708_v18 = vadd.f32 %v9558_v60, %v3406_v27 }
 0x77a   : > { %v3712_v29 = vadd.f32 %v9618_v22, %v3411_v12  ;;  %v3713_v15 = vadd.f32 %v9620_v5, %v3445_v62  ;;  %v3704_v21 = vadd.f32 %v9529_v49, %v3401_v52  ;;  %v3709_v31 = vadd.f32 %v9560_v57, %v3440_v26 }
 0x77b   : > { %v3717_v13 = vadd.f32 %v9632_v56, %v3450_v7  ;;  %v3705_v22 = vadd.f32 %v9531_v33, %v3435_v25  ;;  %v3982_v4 = vadd.f32 %v9646_v24, %v3716_v63  ;;  %v3974_v5 = vadd.f32 %v9562_v46, %v3708_v18 }
 0x77c   : > { %v3978_v51 = vadd.f32 %v9622_v44, %v3712_v29  ;;  %v3970_v57 = vadd.f32 %v9533_v39, %v3704_v21  ;;  %v3973_v24 = vadd.f32 %v3949_v48, %v9540_v3 }
 0x77d   : > { %v3971_v48 = vadd.f32 %v9663_v8, %v3705_v22 }
 0x77f   : > { %v9678_v32 = vpop.f32.mrf.mxu0  ;;  %v9680_v16 = vpop.f32.mrf.mxu1 }
 0x780   : > { %v3954_v11 = vpop.f32.mrf.mxu2  ;;  %v4237_v27 = vadd.f32 %v9680_v16, %v3971_v48 }
 0x781   : > { %v3977_v44 = vadd.f32 %v3954_v11, %v9590_v19 }
 0x782   : > { %v4263_v18 = vadd.f32 %v9660_v28, %v4237_v27 }
 0x784   : > { %v4283_v22 = vmax.f32 %v4263_v18, 0.0 }
 0x787   : > { %v4181_v14 = vpop.f32.mrf.mxu0  ;;  %v9682_v45 = vpop.f32.mrf.mxu1 }
 0x788   : > { %v3956_v23 = vpop.f32.mrf.mxu2 }
 0x789   : > { %v3979_v35 = vadd.f32 %v3956_v23, %v3713_v15 }
 0x78f   : > { %v4183_v30 = vpop.f32.mrf.mxu0  ;;  %v4217_v41 = vpop.f32.mrf.mxu1 }
 0x790   : > { %v3959_v1 = vpop.f32.mrf.mxu2  ;;  %v4240_v46 = vadd.f32 %v4183_v30, %v3974_v5  ;;  %v4239_v30 = vadd.f32 %v9682_v45, %v3973_v24  ;;  %v4310_v5 = vld [vmem:[%s10020_s8 + $0x10] sm:$0xf]  ;;  %v7105_v24 = vld [vmem:[%s10021_s9 + $0x28] sm:$0xff] }
 0x791   : > { %v3981_v6 = vadd.f32 %v3959_v1, %v9626_v54 }
 0x792   : > { %v4266_v29 = vadd.f32 %v9658_v59, %v4240_v46  ;;  %v4265_v8 = vadd.f32 %v9660_v28, %v4239_v30  ;;  %v7113_v46 = vld [vmem:[%s10021_s9 + $0x68] sm:$0xff] }
 0x794   : > { %v4286_v52 = vmax.f32 %v4266_v29, 0.0 }
 0x797   : > { %v4186_v0 = vpop.f32.mrf.mxu0  ;;  %v4220_v2 = vpop.f32.mrf.mxu1 }
 0x798   : > { %v3961_v40 = vpop.f32.mrf.mxu2  ;;  %v4242_v54 = vadd.f32 %v4186_v0, %v9604_v53  ;;  %v4243_v1 = vadd.f32 %v4220_v2, %v3977_v44  ;;  %v4238_v0 = vadd.f32 %v4181_v14, %v9542_v34  ;;  %v6522_v44 = vld [vmem:[%s10020_s8 + $0x24] sm:$0xf] }
 0x799   : > { %v3983_v58 = vadd.f32 %v3961_v40, %v3717_v13  ;;  %v4260_v40 = vadd.f32 %v9658_v59, %v9674_v36  ;;  %v4261_v13 = vadd.f32 %v9660_v28, %v9676_v43  ;;  %v10143_v36 = vld [vmem:[#allocation13_spill] sm:$0xff]  ;;  %v7097_v43 = vld [vmem:[%s10020_s8 + $0x8] sm:$0xff] }
 0x79a   : > { %v4268_v12 = vadd.f32 %v9658_v59, %v4242_v54  ;;  %v4269_v2 = vadd.f32 %v9660_v28, %v4243_v1  ;;  %v4264_v63 = vadd.f32 %v9658_v59, %v4238_v0  ;;  %v4320_v54 = vunpack.c.l.b16 %v4310_v5  ;;  %v7104_v1 = vld [vmem:[%s10021_s9 + $0x20] sm:$0xff]  ;;  %v7111_v0 = vld [vmem:[%s10021_s9 + $0x58] sm:$0xff] }
 0x79f   : > { %v4188_v47 = vpop.f32.mrf.mxu0  ;;  %v4222_v38 = vpop.f32.mrf.mxu1 }
 0x7a0   : > { %v4244_v60 = vadd.f32 %v4188_v47, %v3978_v51  ;;  %v4245_v61 = vadd.f32 %v4222_v38, %v3979_v35  ;;  %v3975_v47 = vadd.f32 %v3951_v42, %v3709_v31  ;;  %v4236_v42 = vadd.f32 %v9678_v32, %v3970_v57  ;;  %v7115_v57 = vld [vmem:[%s10021_s9 + $0x78] sm:$0xff] }
 0x7a1   : > { %v4289_v32 = vmax.f32 %v4269_v2, 0.0  ;;  %v4284_v51 = vmax.f32 %v4264_v63, 0.0  ;;  %v4280_v31 = vmax.f32 %v4260_v40, 0.0  ;;  %v7108_v63 = vld [vmem:[%s10021_s9 + $0x40] sm:$0xff] }
 0x7a2   : > { %v4270_v19 = vadd.f32 %v9658_v59, %v4244_v60  ;;  %v4241_v38 = vadd.f32 %v4217_v41, %v3975_v47  ;;  %v4262_v45 = vadd.f32 %v9658_v59, %v4236_v42  ;;  %v7114_v47 = vld [vmem:[%s10021_s9 + $0x70] sm:$0xff] }
 0x7a3   : > { %v4300_v21 = vpack.c.bf16 %v4286_v52, %v4284_v51 }
 0x7a4   : > { %v4290_v34 = vmax.f32 %v4270_v19, 0.0  ;;  %v4267_v62 = vadd.f32 %v9660_v28, %v4241_v38  ;;  %v7103_v19 = vld [vmem:[%s10021_s9 + $0x18] sm:$0xff]  ;;  %v7101_v38 = vld [vmem:[%s10021_s9 + $0x8] sm:$0xff] }
 0x7a6   : > { %v4287_v15 = vmax.f32 %v4267_v62, 0.0 }
 0x7a7   : > { %v4191_v20 = vpop.f32.mrf.mxu0  ;;  %v4225_v37 = vpop.f32.mrf.mxu1 }
 0x7a8   : > { %v4246_v9 = vadd.f32 %v4191_v20, %v9628_v17  ;;  %v4247_v55 = vadd.f32 %v4225_v37, %v3981_v6  ;;  %v4271_v20 = vadd.f32 %v9660_v28, %v4245_v61  ;;  %v4288_v6 = vmax.f32 %v4268_v12, 0.0  ;;  %v7110_v12 = vld [vmem:[%s10021_s9 + $0x50] sm:$0xff] }
 0x7a9   : > { %v4395_v61 = vunpack.c.l.b16 %v6522_v44 }
 0x7aa   : > { %v4272_v49 = vadd.f32 %v9658_v59, %v4246_v9  ;;  %v4273_v33 = vadd.f32 %v9660_v28, %v4247_v55  ;;  %v4291_v25 = vmax.f32 %v4271_v20, 0.0  ;;  %v4302_v26 = vpack.c.bf16 %v4290_v34, %v4288_v6  ;;  %v7100_v20 = vld [vmem:[%s10021_s9] sm:$0xff]  ;;  %v7118_v6 = vld [vmem:[%s10021_s9 + $0x90] sm:$0xff] }
 0x7ab   : > { %v4285_v9 = vmax.f32 %v4265_v8, 0.0  ;;  %v4282_v55 = vmax.f32 %v4262_v45, 0.0 }
 0x7ac   : > { %v4292_v37 = vmax.f32 %v4272_v49, 0.0  ;;  %v4293_v39 = vmax.f32 %v4273_v33, 0.0  ;;  %v4303_v16 = vpack.c.bf16 %v4291_v25, %v4289_v32  ;;  %v7117_v49 = vld [vmem:[%s10021_s9 + $0x88] sm:$0xff]  ;;  %v7107_v33 = vld [vmem:[%s10021_s9 + $0x38] sm:$0xff] }
 0x7ad   : > { %v4301_v35 = vpack.c.bf16 %v4287_v15, %v4285_v9  ;;  %4560 = vmatpush.bf16.msrb.mxu1 %v7107_v33  ;;  %v7124_v33 = vld [vmem:[%s10022_s10 + $0x20] sm:$0xff] }
 0x7af   : > { %v4193_v17 = vpop.f32.mrf.mxu0  ;;  %v4227_v56 = vpop.f32.mrf.mxu1 }
 0x7b0   : > { %v4248_v7 = vadd.f32 %v4193_v17, %v3982_v4  ;;  %v4249_v23 = vadd.f32 %v4227_v56, %v3983_v58  ;;  %v4281_v4 = vmax.f32 %v4261_v13, 0.0  ;;  %v4298_v58 = vpack.c.bf16 %v4282_v55, %v4280_v31 }
 0x7b1   : > { %v4323_v17 = vpack.c.b16 %v4320_v54, %v4320_v54  ;;  %v4398_v56 = vpack.c.b16 %v4395_v61, %v4395_v61 }
 0x7b2   : > { %v4274_v53 = vadd.f32 %v9658_v59, %v4248_v7  ;;  %v4275_v11 = vadd.f32 %v9660_v28, %v4249_v23  ;;  %v4299_v60 = vpack.c.bf16 %v4283_v22, %v4281_v4  ;;  %v7096_v59 = vld [vmem:[%s10020_s8] sm:$0xff]  ;;  %v7098_v28 = vld [vmem:[%s10020_s8 + $0x14] sm:$0xff] }
 0x7b3   : > { %v7116_v7 = vld [vmem:[%s10021_s9 + $0x80] sm:$0xff]  ;;  %v7106_v23 = vld [vmem:[%s10021_s9 + $0x30] sm:$0xff] }
 0x7b4   : > { %v4294_v50 = vmax.f32 %v4274_v53, 0.0  ;;  %v4295_v3 = vmax.f32 %v4275_v11, 0.0  ;;  %4561 = vmatpush.bf16.msrb.mxu1 %v7106_v23  ;;  %v7112_v53 = vld [vmem:[%s10021_s9 + $0x60] sm:$0xff]  ;;  %v7102_v11 = vld [vmem:[%s10021_s9 + $0x10] sm:$0xff] }
 0x7b6   : > { %v4304_v14 = vpack.c.bf16 %v4294_v50, %v4292_v37  ;;  %v4305_v41 = vpack.c.bf16 %v4295_v3, %v4293_v39 }
 0x7b8   : > { %4337 = vmatpush.bf16.msra.mxu2 %v4304_v14  ;;  %4411 = vmatpush.bf16.msrb.mxu3 %v4304_v14  ;;  %v7109_v14 = vld [vmem:[%s10021_s9 + $0x48] sm:$0xff] }
 0x7b9   : > { %4434 = vmatpush.bf16.msrb.mxu0 %v4305_v41  ;;  %4562 = vmatpush.bf16.msrb.mxu1 %v7105_v24  ;;  %v7122_v24 = vld [vmem:[%s10022_s10 + $0x10] sm:$0xff] }
 0x7bc   : > { %4338 = vmatpush.bf16.msra.mxu2 %v4302_v26  ;;  %4412 = vmatpush.bf16.msrb.mxu3 %v4302_v26 }
 0x7bd   : > { %4435 = vmatpush.bf16.msrb.mxu0 %v4303_v16  ;;  %4563 = vmatpush.bf16.msrb.mxu1 %v7104_v1 }
 0x7c0   : > { %4339 = vmatpush.bf16.msra.mxu2 %v4300_v21  ;;  %4413 = vmatpush.bf16.msrb.mxu3 %v4300_v21 }
 0x7c1   : > { %4436 = vmatpush.bf16.msrb.mxu0 %v4301_v35  ;;  %4564 = vmatpush.bf16.msrb.mxu1 %v7103_v19 }
 0x7c4   : > { %4340 = vmatpush.bf16.msra.mxu2 %v4298_v58  ;;  %4414 = vmatpush.bf16.msrb.mxu3 %v4298_v58  ;;  %v7129_v58 = vld [vmem:[%s10022_s10 + $0x48] sm:$0xff] }
 0x7c5   : > { %4437 = vmatpush.bf16.msrb.mxu0 %v4299_v60  ;;  %4565 = vmatpush.bf16.msrb.mxu1 %v7102_v11  ;;  %v7126_v11 = vld [vmem:[%s10022_s10 + $0x30] sm:$0xff] }
 0x7c8   : > { %4341 = vmatpush.bf16.msra.mxu2 %v9669_v10  ;;  %4415 = vmatpush.bf16.msrb.mxu3 %v9669_v10  ;;  %v7099_v10 = vld [vmem:[%s10020_s8 + $0x1c] sm:$0xff] }
 0x7c9   : > { %4438 = vmatpush.bf16.msrb.mxu0 %v10143_v36  ;;  %4566 = vmatpush.bf16.msrb.mxu1 %v7101_v38  ;;  %v7125_v38 = vld [vmem:[%s10022_s10 + $0x28] sm:$0xff] }
 0x7cb   : > { %6512 = vmatmul.msk.bf16.vlgmr.msra.gmra.mxu2 %vm4324_vm6, %v7096_v59  ;;  %6531 = vmatmul.msk.bf16.vlgmr.msrb.gmra.mxu3 %vm4324_vm6, %v7098_v28 }
 0x7cc   : > { %4360 = vmatpush.bf16.msrb.mxu2 %v4305_v41  ;;  %6534 = vmatmul.msk.bf16.vlgmr.msrb.gmra.mxu0 %vm4324_vm6, %v7098_v28  ;;  %v7119_v41 = vld [vmem:[%s10021_s9 + $0x98] sm:$0xff] }
 0x7cd   : > { %4687 = vmatpush.bf16.msra.mxu3 %v7117_v49  ;;  %4567 = vmatpush.bf16.msrb.mxu1 %v7100_v20 }
 0x7ce   : > { %4716 = vmatpush.bf16.msra.mxu0 %v7119_v41 }
 0x7d0   : > { %4361 = vmatpush.bf16.msrb.mxu2 %v4303_v16 }
 0x7d1   : > { %4688 = vmatpush.bf16.msra.mxu3 %v7116_v7  ;;  %4797 = vmatpush.bf16.msra.mxu1 %v7129_v58  ;;  %v7123_v7 = vld [vmem:[%s10022_s10 + $0x18] sm:$0xff] }
 0x7d2   : > { %4717 = vmatpush.bf16.msra.mxu0 %v7118_v6 }
 0x7d4   : > { %4362 = vmatpush.bf16.msrb.mxu2 %v4301_v35 }
 0x7d5   : > { %4689 = vmatpush.bf16.msra.mxu3 %v7115_v57 }
 0x7d8   : > { %4363 = vmatpush.bf16.msrb.mxu2 %v4299_v60  ;;  %v7128_v60 = vld [vmem:[%s10022_s10 + $0x40] sm:$0xff] }
 0x7d9   : > { %4690 = vmatpush.bf16.msra.mxu3 %v7114_v47  ;;  %4798 = vmatpush.bf16.msra.mxu1 %v7128_v60  ;;  %v7121_v47 = vld [vmem:[%s10022_s10 + $0x8] sm:$0xff] }
 0x7db   : > { %6513 = vmatmul.msk.bf16.gmra.mxu2 %vm4324_vm6, %v7097_v43  ;;  %6532 = vmatmul.msk.bf16.gmra.mxu3 %vm4324_vm6, %v7099_v10 }
 0x7dc   : > { %4364 = vmatpush.bf16.msrb.mxu2 %v10143_v36  ;;  %6535 = vmatmul.msk.bf16.gmra.mxu0 %vm4324_vm6, %v7099_v10 }
 0x7dd   : > { %4691 = vmatpush.bf16.msra.mxu3 %v7113_v46  ;;  %v7127_v46 = vld [vmem:[%s10022_s10 + $0x38] sm:$0xff] }
 0x7de   : > { %4799 = vmatpush.bf16.msra.mxu1 %v7127_v46 }
 0x7e0   : > { %4589 = vmatpush.bf16.msra.mxu2 %v7109_v14 }
 0x7e1   : > { %4692 = vmatpush.bf16.msra.mxu3 %v7112_v53  ;;  %v7120_v53 = vld [vmem:[%s10022_s10] sm:$0xff] }
 0x7e2   : > { %4800 = vmatpush.bf16.msra.mxu1 %v7126_v11 }
 0x7e4   : > { %4590 = vmatpush.bf16.msra.mxu2 %v7108_v63 }
 0x7e5   : > { %4693 = vmatpush.bf16.msra.mxu3 %v7111_v0 }
 0x7e6   : > { %4801 = vmatpush.bf16.msra.mxu1 %v7125_v38  ;;  %v7160_v38 = vld [vmem:[%s10026_s14 + $0x38] sm:$0xff] }
 0x7e7   : > { %5188 = vmatpush.bf16.msrb.mxu0 %v7160_v38 }
 0x7e9   : > { %4694 = vmatpush.bf16.msra.mxu3 %v7110_v12  ;;  %v7134_v12 = vld [vmem:[%s10022_s10 + $0x70] sm:$0xff] }
 0x7eb   : > { %6514 = vmatmul.msk.bf16.gmra.mxu2 %vm4324_vm6, %v4323_v17  ;;  %6533 = vmatmul.msk.bf16.gmra.mxu3 %vm4324_vm6, %v4398_v56 }
 0x7ec   : > { %6536 = vmatmul.msk.bf16.gmra.mxu0 %vm4324_vm6, %v4398_v56 }
 0x7fb   : > { %6515 = vmatmul.msk.bf16.vlgmr.msrb.gmra.mxu2 %vm4324_vm6, %v7096_v59 }
 0x7fc   : > { %4843 = vmatpush.bf16.msrb.mxu2 %v7124_v33  ;;  %v7152_v33 = vld [vmem:[%s10024_s12 + $0x38] sm:$0xff] }
 0x7fd   : > { %5105 = vmatpush.bf16.msrb.mxu3 %v7152_v33 }
 0x800   : > { %4844 = vmatpush.bf16.msrb.mxu2 %v7123_v7  ;;  %v7151_v7 = vld [vmem:[%s10024_s12 + $0x30] sm:$0xff] }
 0x801   : > { %5106 = vmatpush.bf16.msrb.mxu3 %v7151_v7 }
 0x804   : > { %4845 = vmatpush.bf16.msrb.mxu2 %v7122_v24  ;;  %v7148_v24 = vld [vmem:[%s10024_s12 + $0x18] sm:$0xff] }
 0x808   : > { %4846 = vmatpush.bf16.msrb.mxu2 %v7121_v47  ;;  %v7147_v47 = vld [vmem:[%s10024_s12 + $0x10] sm:$0xff] }
 0x80b   : > { %6516 = vmatmul.msk.bf16.gmra.mxu2 %vm4324_vm6, %v7097_v43 }
 0x80c   : > { %4847 = vmatpush.bf16.msrb.mxu2 %v7120_v53  ;;  %v7145_v53 = vld [vmem:[%s10024_s12] sm:$0xff] }
 0x81b   : > { %6517 = vmatmul.msk.bf16.gmra.mxu2 %vm4324_vm6, %v4323_v17 }
 0x849   : > { %v4440_v2 = vpop.f32.mrf.mxu0 }
 0x84e   : > { %v4343_v37 = vpop.f32.mrf.mxu2  ;;  %v4417_v39 = vpop.f32.mrf.mxu3 }
 0x84f   : > { %v4454_v48 = vmax.f32 %v4343_v37, %v4417_v39  ;;  %v7139_v37 = vld [vmem:[%s10022_s10 + $0x98] sm:$0xff]  ;;  %v7133_v39 = vld [vmem:[%s10022_s10 + $0x68] sm:$0xff] }
 0x851   : > { %v4442_v27 = vpop.f32.mrf.mxu0 }
 0x856   : > { %v4345_v50 = vpop.f32.mrf.mxu2  ;;  %v4419_v3 = vpop.f32.mrf.mxu3 }
 0x857   : > { %v4456_v42 = vmax.f32 %v4345_v50, %v4419_v3  ;;  %v7138_v50 = vld [vmem:[%s10022_s10 + $0x90] sm:$0xff]  ;;  %v7132_v3 = vld [vmem:[%s10022_s10 + $0x60] sm:$0xff] }
 0x859   : > { %v4464_v30 = vpack.c.bf16 %v4456_v42, %v4454_v48  ;;  %v4445_v26 = vpop.f32.mrf.mxu0 }
 0x85b   : > { %4695 = vmatmul.bf16.vlgmr.msra.gmra.mxu3 %v4464_v30  ;;  %4568 = vmatmul.bf16.vlgmr.msrb.gmra.mxu1 %v4464_v30  ;;  %v7137_v30 = vld [vmem:[%s10022_s10 + $0x88] sm:$0xff] }
 0x85c   : > { %4901 = vmatpush.bf16.msrb.mxu1 %v7134_v12  ;;  %v7159_v12 = vld [vmem:[%s10026_s14 + $0x30] sm:$0xff] }
 0x85d   : > { %5189 = vmatpush.bf16.msrb.mxu0 %v7159_v12 }
 0x85e   : > { %v4348_v29 = vpop.f32.mrf.mxu2  ;;  %v4422_v34 = vpop.f32.mrf.mxu3 }
 0x85f   : > { %v4458_v8 = vmax.f32 %v4348_v29, %v4422_v34  ;;  %v7136_v29 = vld [vmem:[%s10022_s10 + $0x80] sm:$0xff]  ;;  %v7130_v34 = vld [vmem:[%s10022_s10 + $0x50] sm:$0xff] }
 0x860   : > { %4902 = vmatpush.bf16.msrb.mxu1 %v7133_v39  ;;  %v7157_v39 = vld [vmem:[%s10026_s14 + $0x20] sm:$0xff] }
 0x861   : > { %v4447_v40 = vpop.f32.mrf.mxu0 }
 0x864   : > { %4903 = vmatpush.bf16.msrb.mxu1 %v7132_v3  ;;  %v7156_v3 = vld [vmem:[%s10026_s14 + $0x18] sm:$0xff] }
 0x866   : > { %v4350_v62 = vpop.f32.mrf.mxu2  ;;  %v4424_v25 = vpop.f32.mrf.mxu3 }
 0x867   : > { %v4460_v32 = vmax.f32 %v4350_v62, %v4424_v25 }
 0x869   : > { %v4466_v45 = vpack.c.bf16 %v4460_v32, %v4458_v8  ;;  %v4450_v55 = vpop.f32.mrf.mxu0 }
 0x86b   : > { %4700 = vmatmul.bf16.gmra.mxu3 %v4466_v45  ;;  %4573 = vmatmul.bf16.gmra.mxu1 %v4466_v45 }
 0x86e   : > { %v4353_v52 = vpop.f32.mrf.mxu2  ;;  %v4427_v18 = vpop.f32.mrf.mxu3 }
 0x86f   : > { %v4462_v15 = vmax.f32 %v4353_v52, %v4427_v18 }
 0x871   : > { %v4468_v13 = vpack.c.bf16 %v4462_v15, %v4462_v15  ;;  %v4452_v22 = vpop.f32.mrf.mxu0 }
 0x876   : > { %v4355_v16 = vpop.f32.mrf.mxu2  ;;  %v4429_v51 = vpop.f32.mrf.mxu3 }
 0x877   : > { %v7144_v16 = vld [vmem:[%s10022_s10 + $0xc0] sm:$0xff] }
 0x87b   : > { %4705 = vmatmul.bf16.gmra.mxu3 %v4468_v13  ;;  %4578 = vmatmul.bf16.gmra.mxu1 %v4468_v13  ;;  %v7143_v13 = vld [vmem:[%s10022_s10 + $0xb8] sm:$0xff] }
 0x87e   : > { %v4366_v9 = vpop.f32.mrf.mxu2 }
 0x87f   : > { %v4455_v35 = vmax.f32 %v4366_v9, %v4440_v2  ;;  %v7131_v2 = vld [vmem:[%s10022_s10 + $0x58] sm:$0xff] }
 0x880   : > { %4904 = vmatpush.bf16.msrb.mxu1 %v7131_v2 }
 0x884   : > { %4905 = vmatpush.bf16.msrb.mxu1 %v7130_v34 }
 0x886   : > { %v4368_v21 = vpop.f32.mrf.mxu2 }
 0x887   : > { %v4457_v31 = vmax.f32 %v4368_v21, %v4442_v27  ;;  %v7135_v27 = vld [vmem:[%s10022_s10 + $0x78] sm:$0xff] }
 0x889   : > { %v4465_v4 = vpack.c.bf16 %v4457_v31, %v4455_v35  ;;  %v7141_v31 = vld [vmem:[%s10022_s10 + $0xa8] sm:$0xff] }
 0x88b   : > { %6577 = vmatmul.msk.bf16.vlgmr.msra.gmra.mxu2 %vm4550_vm7, %v4465_v4  ;;  %6640 = vmatmul.msk.bf16.vlgmr.msra.gmra.mxu0 %vm4550_vm7, %v4465_v4 }
 0x88c   : > { %4960 = vmatpush.bf16.msra.mxu2 %v7139_v37 }
 0x88e   : > { %v4371_v59 = vpop.f32.mrf.mxu2 }
 0x88f   : > { %v4459_v28 = vmax.f32 %v4371_v59, %v4445_v26 }
 0x890   : > { %4961 = vmatpush.bf16.msra.mxu2 %v7138_v50 }
 0x894   : > { %4962 = vmatpush.bf16.msra.mxu2 %v7137_v30  ;;  %v7155_v30 = vld [vmem:[%s10026_s14 + $0x10] sm:$0xff] }
 0x896   : > { %v4373_v36 = vpop.f32.mrf.mxu2 }
 0x897   : > { %v4461_v43 = vmax.f32 %v4373_v36, %v4447_v40  ;;  %v7140_v36 = vld [vmem:[%s10022_s10 + $0xa0] sm:$0xff] }
 0x898   : > { %4963 = vmatpush.bf16.msra.mxu2 %v7136_v29 }
 0x899   : > { %v4467_v10 = vpack.c.bf16 %v4461_v43, %v4459_v28 }
 0x89b   : > { %6578 = vmatmul.msk.bf16.gmra.mxu2 %vm4550_vm7, %v4467_v10  ;;  %6641 = vmatmul.msk.bf16.gmra.mxu0 %vm4550_vm7, %v4467_v10 }
 0x89c   : > { %4964 = vmatpush.bf16.msra.mxu2 %v7135_v27 }
 0x89e   : > { %v4376_v5 = vpop.f32.mrf.mxu2 }
 0x89f   : > { %v4463_v44 = vmax.f32 %v4376_v5, %v4450_v55  ;;  %v7142_v55 = vld [vmem:[%s10022_s10 + $0xb0] sm:$0xff] }
 0x8a1   : > { %v4469_v61 = vpack.c.bf16 %v4463_v44, %v4463_v44 }
 0x8a6   : > { %v4378_v54 = vpop.f32.mrf.mxu2 }
 0x8ab   : > { %6579 = vmatmul.msk.bf16.gmra.mxu2 %vm4550_vm7, %v4469_v61  ;;  %6642 = vmatmul.msk.bf16.gmra.mxu0 %vm4550_vm7, %v4469_v61 }
 0x8d8   : > { %v4569_v17 = vpop.f32.mrf.mxu1 }
 0x8de   : > { %v4696_v56 = vpop.f32.mrf.mxu3 }
 0x8e0   : > { %v4571_v49 = vpop.f32.mrf.mxu1 }
 0x8e6   : > { %v4698_v23 = vpop.f32.mrf.mxu3 }
 0x8e8   : > { %v4574_v57 = vpop.f32.mrf.mxu1 }
 0x8ee   : > { %v4701_v1 = vpop.f32.mrf.mxu3 }
 0x8f0   : > { %v4576_v19 = vpop.f32.mrf.mxu1 }
 0x8f6   : > { %v4703_v0 = vpop.f32.mrf.mxu3 }
 0x8f8   : > { %v9873_v20 = vpop.f32.mrf.mxu1 }
 0x8fe   : > { %v4706_v48 = vpop.f32.mrf.mxu3 }
 0x900   : > { %v4581_v42 = vpop.f32.mrf.mxu1 }
 0x906   : > { %v4708_v14 = vpop.f32.mrf.mxu3 }
 0x907   : > { %v7200_v14 = vld [vmem:[%s10023_s11] ss:$0 sm:$0xff] }
 0x908   : > { %v4719_v41 = vpop.f32.mrf.mxu0 }
 0x909   : > { %v4720_v63 = vadd.f32 %v4719_v41, %v4696_v56 }
 0x90e   : > { %v4592_v62 = vpop.f32.mrf.mxu2 }
 0x90f   : > { %v4593_v25 = vadd.f32 %v4592_v62, %v4569_v17 }
 0x910   : > { %v4721_v6 = vpop.f32.mrf.mxu0 }
 0x911   : > { %v4733_v8 = vmax.f32 %v4593_v25, %v4720_v63  ;;  %v4722_v26 = vadd.f32 %v4721_v6, %v4698_v23  ;;  %v7150_v23 = vld [vmem:[%s10024_s12 + $0x28] sm:$0xff] }
 0x912   : > { %5107 = vmatpush.bf16.msrb.mxu3 %v7150_v23 }
 0x913   : > { %v4738_v32 = vpack.c.bf16 %v4733_v8, %v4733_v8  ;;  %v7154_v8 = vld [vmem:[%s10026_s14 + $0x8] sm:$0xff] }
 0x915   : > { %6694 = vmatmul.msk.bf16.vlgmr.msrb.gmra.mxu2 %vm4324_vm6, %v4738_v32  ;;  %v7153_v32 = vld [vmem:[%s10026_s14] sm:$0xff] }
 0x916   : > { %v4594_v45 = vpop.f32.mrf.mxu2 }
 0x917   : > { %v4595_v52 = vadd.f32 %v4594_v45, %v4571_v49  ;;  %v7201_v45 = vld [vmem:[%s10025_s13] ss:$0 sm:$0xff] }
 0x918   : > { %v4724_v18 = vpop.f32.mrf.mxu0 }
 0x919   : > { %v4734_v15 = vmax.f32 %v4595_v52, %v4722_v26  ;;  %v4725_v22 = vadd.f32 %v4724_v18, %v4701_v1 }
 0x91b   : > { %v4749_v40 = vpack.c.bf16 %v4734_v15, %v4734_v15 }
 0x91d   : > { %6673 = vmatmul.msk.bf16.vlgmr.msra.gmra.mxu1 %vm4324_vm6, %v4749_v40  ;;  %v7202_v40 = vld [vmem:[%s10027_s15] ss:$0 sm:$0xff] }
 0x91e   : > { %v4597_v51 = vpop.f32.mrf.mxu2  ;;  %5019 = vmatpush.bf16.msra.mxu1 %v7144_v16 }
 0x91f   : > { %v4598_v21 = vadd.f32 %v4597_v51, %v4574_v57  ;;  %v7149_v57 = vld [vmem:[%s10024_s12 + $0x20] sm:$0xff] }
 0x920   : > { %v4726_v9 = vpop.f32.mrf.mxu0  ;;  %5108 = vmatpush.bf16.msrb.mxu3 %v7149_v57 }
 0x921   : > { %v4735_v4 = vmax.f32 %v4598_v21, %v4725_v22  ;;  %v4727_v60 = vadd.f32 %v4726_v9, %v4703_v0 }
 0x922   : > { %5020 = vmatpush.bf16.msra.mxu1 %v7143_v13 }
 0x923   : > { %v4853_v43 = vpack.c.bf16 %v4735_v4, %v4735_v4 }
 0x924   : > { %5109 = vmatpush.bf16.msrb.mxu3 %v7148_v24 }
 0x926   : > { %v4599_v35 = vpop.f32.mrf.mxu2  ;;  %5021 = vmatpush.bf16.msra.mxu1 %v7142_v55 }
 0x927   : > { %v4600_v58 = vadd.f32 %v4599_v35, %v4576_v19  ;;  %v7146_v19 = vld [vmem:[%s10024_s12 + $0x8] sm:$0xff] }
 0x928   : > { %v4729_v59 = vpop.f32.mrf.mxu0  ;;  %5110 = vmatpush.bf16.msrb.mxu3 %v7147_v47 }
 0x929   : > { %v4736_v28 = vmax.f32 %v4600_v58, %v4727_v60  ;;  %v4730_v61 = vadd.f32 %v4729_v59, %v4706_v48 }
 0x92a   : > { %5022 = vmatpush.bf16.msra.mxu1 %v7141_v31 }
 0x92b   : > { %v4912_v10 = vpack.c.bf16 %v4736_v28, %v4736_v28 }
 0x92c   : > { %5111 = vmatpush.bf16.msrb.mxu3 %v7146_v19 }
 0x92d   : > { %6725 = vmatmul.msk.bf16.vlgmr.msrb.gmra.mxu1 %vm4324_vm6, %v4853_v43  ;;  %6756 = vmatmul.msk.bf16.vlgmr.msra.gmra.mxu2 %vm4324_vm6, %v4912_v10 }
 0x92e   : > { %v4602_v5 = vpop.f32.mrf.mxu2  ;;  %5023 = vmatpush.bf16.msra.mxu1 %v7140_v36 }
 0x92f   : > { %v4603_v54 = vadd.f32 %v4602_v5, %v9873_v20  ;;  %v7158_v20 = vld [vmem:[%s10026_s14 + $0x28] sm:$0xff] }
 0x930   : > { %v4731_v44 = vpop.f32.mrf.mxu0  ;;  %5112 = vmatpush.bf16.msrb.mxu3 %v7145_v53  ;;  %5190 = vmatpush.bf16.msrb.mxu0 %v7158_v20 }
 0x931   : > { %v4737_v56 = vmax.f32 %v4603_v54, %v4730_v61 }
 0x933   : > { %v4971_v49 = vpack.c.bf16 %v4737_v56, %v4737_v56 }
 0x934   : > { %5191 = vmatpush.bf16.msrb.mxu0 %v7157_v39 }
 0x936   : > { %v4604_v17 = vpop.f32.mrf.mxu2 }
 0x938   : > { %5192 = vmatpush.bf16.msrb.mxu0 %v7156_v3 }
 0x93c   : > { %5193 = vmatpush.bf16.msrb.mxu0 %v7155_v30 }
 0x93d   : > { %6787 = vmatmul.msk.bf16.vlgmr.msra.gmra.mxu1 %vm4324_vm6, %v4971_v49 }
 0x940   : > { %5194 = vmatpush.bf16.msrb.mxu0 %v7154_v8 }
 0x944   : > { %5195 = vmatpush.bf16.msrb.mxu0 %v7153_v32 }
 0x998   : > { %v4849_v1 = vpop.f32.mrf.mxu2 }
 0x99a   : > { %v4803_v46 = vpop.f32.mrf.mxu1 }
 0x99b   : > { %v4850_v42 = vadd.f32 %v4849_v1, %v4803_v46 }
 0x9a0   : > { %v4851_v11 = vpop.f32.mrf.mxu2 }
 0x9a2   : > { %v4805_v0 = vpop.f32.mrf.mxu1 }
 0x9aa   : > { %v4907_v37 = vpop.f32.mrf.mxu1 }
 0x9ab   : > { %v4911_v2 = vadd.f32 %v4907_v37, %v4850_v42 }
 0x9b0   : > { %v4966_v50 = vpop.f32.mrf.mxu2 }
 0x9b1   : > { %v4970_v34 = vadd.f32 %v4966_v50, %v4911_v2 }
 0x9b2   : > { %v4909_v48 = vpop.f32.mrf.mxu1 }
 0x9b8   : > { %v4968_v29 = vpop.f32.mrf.mxu2 }
 0x9ba   : > { %v5025_v41 = vpop.f32.mrf.mxu1 }
 0x9bb   : > { %v5029_v27 = vadd.f32 %v5025_v41, %v4970_v34 }
 0x9bd   : > { %v5034_v62 = vadd.f32 %v7200_v14, %v5029_v27 }
 0x9bf   : > { %v5035_v25 = vmax.f32 %v5034_v62, 0.0 }
 0x9c1   : > { %v5036_v63 = vpack.c.bf16 %v5035_v25, %v5035_v25 }
 0x9c2   : > { %v5027_v6 = vpop.f32.mrf.mxu1 }
 0x9c3   : > { %5113 = vmatmul.bf16.vlgmr.msrb.gmra.mxu3 %v5036_v63 }
 0xa46   : > { %v5114_v52 = vpop.f32.mrf.mxu3 }
 0xa47   : > { %v5115_v26 = vadd.f32 %v7201_v45, %v5114_v52 }
 0xa49   : > { %v5118_v18 = vmax.f32 %v5115_v26, 0.0 }
 0xa4b   : > { %v5119_v15 = vpack.c.bf16 %v5118_v18, %v5118_v18 }
 0xa4d   : > { %5196 = vmatmul.bf16.vlgmr.msrb.gmra.mxu0 %v5119_v15 }
 0xa4e   : > { %v5116_v16 = vpop.f32.mrf.mxu3 }
 0xaca   : > { %v5197_v51 = vpop.f32.mrf.mxu0 }
 0xacb   : > { %v5198_v13 = vadd.f32 %v7202_v40, %v5197_v51 }
 0xacd   : > { %5201 = vst [vmem:[%s517_s28] sm:$0xff] %v5198_v13 }
 0xace   : > { %7230 = shalt.err (!%p7227_p3)
}
 0xacf   : > { %7161 = dma.vmem_to_hbm [thread:$0]  (%p7390_p5), %s5216_s21, 128, %s5218_s17, %s5203_s24  }
 0xad2   : > { %v5199_v9 = vpop.f32.mrf.mxu0 }
 0xad3 PF: > { %s10144_s27 = sld [smem:[#allocation7_spill]] }
 0xad4   : > { %s10145_s26 = sld [smem:[#allocation5_spill]] }
 0xad9   : > { %p7167_p4 = scmp.ge.s32.totalorder %s10144_s27, 2 }
 0xada   : > { %s5229_s28 = sand.u32 1, %s10145_s26  }
 0xadb   : > { %p7164_p7 = pnand %p7167_p4, %p7394_p6  ;;  %s5230_s29 = scalar_lea.sflag [#allocation3], %s5229_s28 }
 0xadd   : > { %p7165_p8 = pneg %p7164_p7 }
 0xadf   : > { %7248 = dma.done.wait (%p7165_p8), %s5230_s29, 128  }
 0xae0   : > { %7250 = vsyncadd (%p7165_p8), %s5230_s29, 4294967168  ;;  %s10147_s24 = sld [smem:[#allocation8_spill]]  ;;  %s10150_s21 = smov %s7257_s22 }
 0xae1   : > { %s10148_s1 = sld [smem:[#allocation6_spill]] }
 0xae2   : > { %s10149_s23 = sld [smem:[#allocation9_spill]] }
 0xae6   : > { %p26_p9 = scmp.ge.s32.totalorder %s10147_s24, 4  }
 0xae7   : > { %s10151_s22 = smov %s10148_s1 }
 0xae8   :  { %28 = sbr.rel (!%p26_p9) target bundleno = 6 (0x6), region = 135 }
 0xaed   :  { %5236 = vsyncpa [#allocation3], 1 }
 0xaee   :  { %5238 = vsyncpa [#allocation3 + $0x1], 1 }

</bundles_post_ra>
